<compile_context>
chip_gen: v5e
topology: v5e:2x2
jax: 0.10.0
libtpu: 0.0.40
codegen_flags: <defaults>
</compile_context>

<pallas_src>
import functools

import jax
import jax.numpy as jnp
from jax.experimental import pallas as pl
from jax.experimental.pallas import tpu as pltpu


def _conv_bn_relu_kernel(x_ref, w_ref, b_ref, o_ref, lhs_ref,
                         *, kh, kw, stride, ho, wo):
    # x_ref:   (nb, Hp, Wp, Cin)        zero-padded NHWC input slab, bf16
    # w_ref:   (kh*kw*Cin, Cout)        conv weight with BN scale folded, bf16
    # b_ref:   (1, Cout)                folded BN bias, f32
    # o_ref:   (nb, Ho*Wo, Cout)        output, bf16
    # lhs_ref: (Ho*Wo, kh*kw*Cin)       VMEM scratch: fused im2col LHS, bf16
    nb = x_ref.shape[0]
    cin = x_ref.shape[-1]
    m = ho * wo
    for n in range(nb):  # images per grid step (static unroll)
        # Build the fused im2col LHS once per image (one small masked store per
        # tap into the VMEM scratch), then do a single K = kh*kw*Cin matmul
        # instead of kh*kw accumulated K=Cin matmuls.
        for ki in range(kh):
            for kj in range(kw):
                if stride == 1:
                    xs = x_ref[n, pl.ds(ki, ho), pl.ds(kj, wo), :]
                else:
                    # TODO(synk): pre-split strided rows/cols in the wrapper so
                    # these become contiguous reads (perf only, not correctness).
                    xs = x_ref[n, pl.ds(ki, ho, stride), pl.ds(kj, wo, stride), :]
                t = ki * kw + kj
                lhs_ref[:, t * cin:(t + 1) * cin] = xs.reshape(m, cin)
        # One MXU matmul, f32 accumulation; no carried register accumulator.
        y = jnp.dot(lhs_ref[...], w_ref[...], preferred_element_type=jnp.float32)
        y = jnp.maximum(y + b_ref[...], 0.0)
        o_ref[n] = y.astype(o_ref.dtype)


@functools.partial(jax.jit, static_argnames=("kernel_size", "stride", "padding"))
def conv_block_forward(x_nchw, weight, gamma, beta, running_mean, running_var,
                       *, kernel_size, stride, padding, eps=1e-3):
    """ConvBlock.forward: conv(no bias) -> BatchNorm2d(eval, eps=1e-3) -> ReLU."""
    N, Cin, H, W = x_nchw.shape
    Cout = weight.shape[0]
    kh = kw = kernel_size
    Ho = (H + 2 * padding - kh) // stride + 1
    Wo = (W + 2 * padding - kw) // stride + 1
    Hp, Wp = H + 2 * padding, W + 2 * padding

    # Fold eval-mode BN: scale into the weight, bias separate.
    scale = gamma / jnp.sqrt(running_var + eps)
    bias = (beta - running_mean * scale).astype(jnp.float32).reshape(1, Cout)

    # weight (Cout, Cin, kh, kw) -> scale-folded (kh*kw*Cin, Cout) bf16, row
    # order (ki*kw + kj)*Cin + c matching the in-kernel LHS column order.
    w_scaled = weight * scale[:, None, None, None]
    w_flat = jnp.transpose(w_scaled, (2, 3, 1, 0)).reshape(kh * kw * Cin, Cout)
    w_flat = w_flat.astype(jnp.bfloat16)

    # NCHW -> NHWC at the module boundary only; spatial zero-pad; bf16 operands.
    x_nhwc = jnp.transpose(x_nchw, (0, 2, 3, 1))
    x_pad = jnp.pad(
        x_nhwc, ((0, 0), (padding, padding), (padding, padding), (0, 0))
    ).astype(jnp.bfloat16)

    # 2 grid steps when possible (both v7x TensorCores busy, few fat steps for
    # single-TC v5e/v6e); otherwise one image per step.
    if N % 2 == 0:
        num_steps = 2
    else:
        num_steps = N
    nb = N // num_steps

    kernel = functools.partial(
        _conv_bn_relu_kernel, kh=kh, kw=kw, stride=stride, ho=Ho, wo=Wo)

    out = pl.pallas_call(
        kernel,
        out_shape=jax.ShapeDtypeStruct((N, Ho * Wo, Cout), jnp.bfloat16),
        grid_spec=pltpu.PrefetchScalarGridSpec(
            num_scalar_prefetch=0,
            grid=(num_steps,),
            in_specs=[
                pl.BlockSpec((nb, Hp, Wp, Cin), lambda n: (n, 0, 0, 0)),
                pl.BlockSpec((kh * kw * Cin, Cout), lambda n: (0, 0)),
                pl.BlockSpec((1, Cout), lambda n: (0, 0)),
            ],
            out_specs=pl.BlockSpec((nb, Ho * Wo, Cout), lambda n: (n, 0, 0)),
            scratch_shapes=[pltpu.VMEM((Ho * Wo, kh * kw * Cin), jnp.bfloat16)],
        ),
        compiler_params=pltpu.CompilerParams(
            dimension_semantics=("parallel",),
        ),
    )(x_pad, w_flat, bias)

    # Module boundary: back to NCHW f32 (one fused reshape/transpose/cast pass).
    # For chained ConvBlocks, keep the NHWC bf16 kernel layout and skip this.
    out = out.reshape(N, Ho, Wo, Cout)
    return jnp.transpose(out, (0, 3, 1, 2)).astype(jnp.float32)


def _reference(x_nchw, weight, gamma, beta, running_mean, running_var,
               kernel_size, stride, padding, eps=1e-3, cast_bf16=False):
    """Pure-JAX reference (lax conv). cast_bf16 mirrors the kernel's operand dtype."""
    scale = gamma / jnp.sqrt(running_var + eps)
    bias = beta - running_mean * scale
    w = weight * scale[:, None, None, None]
    xr, wr = x_nchw, w
    if cast_bf16:
        xr = xr.astype(jnp.bfloat16)
        wr = wr.astype(jnp.bfloat16)
    y = jax.lax.conv_general_dilated(
        xr, wr,
        window_strides=(stride, stride),
        padding=[(padding, padding), (padding, padding)],
        dimension_numbers=("NCHW", "OIHW", "NCHW"),
        preferred_element_type=jnp.float32)
    y = y + bias[None, :, None, None]
    return jnp.maximum(y, 0.0)


if __name__ == "__main__":
    # ConvBlock(inplanes=4, planes=8, kernel_size=3, stride=1)
    N, Cin, H, W = 2, 4, 16, 16
    Cout, ksize, stride = 8, 3, 1
    padding = ksize // 2

    key = jax.random.PRNGKey(0)
    k_x, k_w, k_g, k_b, k_m, k_v = jax.random.split(key, 6)

    x = jax.random.normal(k_x, (N, Cin, H, W), dtype=jnp.float32)
    weight = 0.1 * jax.random.normal(k_w, (Cout, Cin, ksize, ksize), dtype=jnp.float32)
    gamma = 1.0 + 0.1 * jax.random.normal(k_g, (Cout,), dtype=jnp.float32)
    beta = 0.1 * jax.random.normal(k_b, (Cout,), dtype=jnp.float32)
    running_mean = 0.05 * jax.random.normal(k_m, (Cout,), dtype=jnp.float32)
    running_var = 1.0 + 0.1 * jax.random.uniform(k_v, (Cout,), dtype=jnp.float32)

    out = conv_block_forward(
        x, weight, gamma, beta, running_mean, running_var,
        kernel_size=ksize, stride=stride, padding=padding)
    out = jax.block_until_ready(out)

    assert out.shape == (N, Cout, H, W), out.shape

    # Matched-precision check: reference with identical bf16 operands and a
    # bf16-rounded output (mirrors the kernel's storage dtype).
    ref_bf16 = _reference(x, weight, gamma, beta, running_mean, running_var,
                          ksize, stride, padding, cast_bf16=True)
    ref_match = ref_bf16.astype(jnp.bfloat16).astype(jnp.float32)
    assert jnp.allclose(out, ref_match, rtol=2e-2, atol=2e-2), float(
        jnp.max(jnp.abs(out - ref_match)))

    # Loose check against full-f32 module semantics (bf16 operand+output budget).
    ref_f32 = _reference(x, weight, gamma, beta, running_mean, running_var,
                         ksize, stride, padding, cast_bf16=False)
    assert jnp.allclose(out, ref_f32, rtol=5e-2, atol=5e-2), float(
        jnp.max(jnp.abs(out - ref_f32)))

    print("KERNEL_OK")
</pallas_src>

<mosaic_0001>
module attributes {stable_mosaic.version = 11 : i64} {
  func.func @_conv_bn_relu_kernel(%arg0: i32, %arg1: memref<1x18x18x4xbf16, #tpu.memory_space<vmem>>, %arg2: memref<36x8xbf16, #tpu.memory_space<vmem>>, %arg3: memref<1x8xf32, #tpu.memory_space<vmem>>, %arg4: memref<1x256x8xbf16, #tpu.memory_space<vmem>>, %arg5: memref<256x36xbf16, #tpu.memory_space<vmem>>) attributes {dimension_semantics = [#tpu.dimension_semantics<parallel>], iteration_bounds = array<i64: 2>, scalar_prefetch = 0 : i64, scratch_operands = 1 : i64, tpu.core_type = #tpu.core_type<tc>, window_params = [{transform_indices = @transform_0, window_bounds = array<i64: 1, 18, 18, 4>}, {pipeline_mode = #tpu.pipeline_mode<synchronous>, transform_indices = @transform_1, window_bounds = array<i64: 36, 8>}, {pipeline_mode = #tpu.pipeline_mode<synchronous>, transform_indices = @transform_2, window_bounds = array<i64: 1, 8>}, {transform_indices = @transform_3, window_bounds = array<i64: 1, 256, 8>}]} {
    %c0 = arith.constant 0 : index
    %c0_0 = arith.constant 0 : index
    %c0_1 = arith.constant 0 : index
    %c0_2 = arith.constant 0 : index
    %0 = vector.load %arg1[%c0, %c0_0, %c0_1, %c0_2] : memref<1x18x18x4xbf16, #tpu.memory_space<vmem>>, vector<1x16x16x4xbf16>
    %1 = vector.shape_cast %0 : vector<1x16x16x4xbf16> to vector<16x16x4xbf16>
    %2 = vector.shape_cast %1 : vector<16x16x4xbf16> to vector<256x4xbf16>
    %c0_3 = arith.constant 0 : index
    %c0_4 = arith.constant 0 : index
    %3 = vector.load %arg5[%c0_3, %c0_4] : memref<256x36xbf16, #tpu.memory_space<vmem>>, vector<256x4xbf16>
    tpu.vector_store %arg5[%c0_3, %c0_4], %2 {strides = array<i32>} : memref<256x36xbf16, #tpu.memory_space<vmem>>, vector<256x4xbf16>,
    %c0_5 = arith.constant 0 : index
    %c0_6 = arith.constant 0 : index
    %c1 = arith.constant 1 : index
    %c0_7 = arith.constant 0 : index
    %4 = vector.load %arg1[%c0_5, %c0_6, %c1, %c0_7] : memref<1x18x18x4xbf16, #tpu.memory_space<vmem>>, vector<1x16x16x4xbf16>
    %5 = vector.shape_cast %4 : vector<1x16x16x4xbf16> to vector<16x16x4xbf16>
    %6 = vector.shape_cast %5 : vector<16x16x4xbf16> to vector<256x4xbf16>
    %c0_8 = arith.constant 0 : index
    %c4 = arith.constant 4 : index
    %7 = vector.load %arg5[%c0_8, %c4] : memref<256x36xbf16, #tpu.memory_space<vmem>>, vector<256x4xbf16>
    tpu.vector_store %arg5[%c0_8, %c4], %6 {strides = array<i32>} : memref<256x36xbf16, #tpu.memory_space<vmem>>, vector<256x4xbf16>,
    %c0_9 = arith.constant 0 : index
    %c0_10 = arith.constant 0 : index
    %c2 = arith.constant 2 : index
    %c0_11 = arith.constant 0 : index
    %8 = vector.load %arg1[%c0_9, %c0_10, %c2, %c0_11] : memref<1x18x18x4xbf16, #tpu.memory_space<vmem>>, vector<1x16x16x4xbf16>
    %9 = vector.shape_cast %8 : vector<1x16x16x4xbf16> to vector<16x16x4xbf16>
    %10 = vector.shape_cast %9 : vector<16x16x4xbf16> to vector<256x4xbf16>
    %c0_12 = arith.constant 0 : index
    %c8 = arith.constant 8 : index
    %11 = vector.load %arg5[%c0_12, %c8] : memref<256x36xbf16, #tpu.memory_space<vmem>>, vector<256x4xbf16>
    tpu.vector_store %arg5[%c0_12, %c8], %10 {strides = array<i32>} : memref<256x36xbf16, #tpu.memory_space<vmem>>, vector<256x4xbf16>,
    %c0_13 = arith.constant 0 : index
    %c1_14 = arith.constant 1 : index
    %c0_15 = arith.constant 0 : index
    %c0_16 = arith.constant 0 : index
    %12 = vector.load %arg1[%c0_13, %c1_14, %c0_15, %c0_16] : memref<1x18x18x4xbf16, #tpu.memory_space<vmem>>, vector<1x16x16x4xbf16>
    %13 = vector.shape_cast %12 : vector<1x16x16x4xbf16> to vector<16x16x4xbf16>
    %14 = vector.shape_cast %13 : vector<16x16x4xbf16> to vector<256x4xbf16>
    %c0_17 = arith.constant 0 : index
    %c12 = arith.constant 12 : index
    %15 = vector.load %arg5[%c0_17, %c12] : memref<256x36xbf16, #tpu.memory_space<vmem>>, vector<256x4xbf16>
    tpu.vector_store %arg5[%c0_17, %c12], %14 {strides = array<i32>} : memref<256x36xbf16, #tpu.memory_space<vmem>>, vector<256x4xbf16>,
    %c0_18 = arith.constant 0 : index
    %c1_19 = arith.constant 1 : index
    %c1_20 = arith.constant 1 : index
    %c0_21 = arith.constant 0 : index
    %16 = vector.load %arg1[%c0_18, %c1_19, %c1_20, %c0_21] : memref<1x18x18x4xbf16, #tpu.memory_space<vmem>>, vector<1x16x16x4xbf16>
    %17 = vector.shape_cast %16 : vector<1x16x16x4xbf16> to vector<16x16x4xbf16>
    %18 = vector.shape_cast %17 : vector<16x16x4xbf16> to vector<256x4xbf16>
    %c0_22 = arith.constant 0 : index
    %c16 = arith.constant 16 : index
    %19 = vector.load %arg5[%c0_22, %c16] : memref<256x36xbf16, #tpu.memory_space<vmem>>, vector<256x4xbf16>
    tpu.vector_store %arg5[%c0_22, %c16], %18 {strides = array<i32>} : memref<256x36xbf16, #tpu.memory_space<vmem>>, vector<256x4xbf16>,
    %c0_23 = arith.constant 0 : index
    %c1_24 = arith.constant 1 : index
    %c2_25 = arith.constant 2 : index
    %c0_26 = arith.constant 0 : index
    %20 = vector.load %arg1[%c0_23, %c1_24, %c2_25, %c0_26] : memref<1x18x18x4xbf16, #tpu.memory_space<vmem>>, vector<1x16x16x4xbf16>
    %21 = vector.shape_cast %20 : vector<1x16x16x4xbf16> to vector<16x16x4xbf16>
    %22 = vector.shape_cast %21 : vector<16x16x4xbf16> to vector<256x4xbf16>
    %c0_27 = arith.constant 0 : index
    %c20 = arith.constant 20 : index
    %23 = vector.load %arg5[%c0_27, %c20] : memref<256x36xbf16, #tpu.memory_space<vmem>>, vector<256x4xbf16>
    tpu.vector_store %arg5[%c0_27, %c20], %22 {strides = array<i32>} : memref<256x36xbf16, #tpu.memory_space<vmem>>, vector<256x4xbf16>,
    %c0_28 = arith.constant 0 : index
    %c2_29 = arith.constant 2 : index
    %c0_30 = arith.constant 0 : index
    %c0_31 = arith.constant 0 : index
    %24 = vector.load %arg1[%c0_28, %c2_29, %c0_30, %c0_31] : memref<1x18x18x4xbf16, #tpu.memory_space<vmem>>, vector<1x16x16x4xbf16>
    %25 = vector.shape_cast %24 : vector<1x16x16x4xbf16> to vector<16x16x4xbf16>
    %26 = vector.shape_cast %25 : vector<16x16x4xbf16> to vector<256x4xbf16>
    %c0_32 = arith.constant 0 : index
    %c24 = arith.constant 24 : index
    %27 = vector.load %arg5[%c0_32, %c24] : memref<256x36xbf16, #tpu.memory_space<vmem>>, vector<256x4xbf16>
    tpu.vector_store %arg5[%c0_32, %c24], %26 {strides = array<i32>} : memref<256x36xbf16, #tpu.memory_space<vmem>>, vector<256x4xbf16>,
    %c0_33 = arith.constant 0 : index
    %c2_34 = arith.constant 2 : index
    %c1_35 = arith.constant 1 : index
    %c0_36 = arith.constant 0 : index
    %28 = vector.load %arg1[%c0_33, %c2_34, %c1_35, %c0_36] : memref<1x18x18x4xbf16, #tpu.memory_space<vmem>>, vector<1x16x16x4xbf16>
    %29 = vector.shape_cast %28 : vector<1x16x16x4xbf16> to vector<16x16x4xbf16>
    %30 = vector.shape_cast %29 : vector<16x16x4xbf16> to vector<256x4xbf16>
    %c0_37 = arith.constant 0 : index
    %c28 = arith.constant 28 : index
    %31 = vector.load %arg5[%c0_37, %c28] : memref<256x36xbf16, #tpu.memory_space<vmem>>, vector<256x4xbf16>
    tpu.vector_store %arg5[%c0_37, %c28], %30 {strides = array<i32>} : memref<256x36xbf16, #tpu.memory_space<vmem>>, vector<256x4xbf16>,
    %c0_38 = arith.constant 0 : index
    %c2_39 = arith.constant 2 : index
    %c2_40 = arith.constant 2 : index
    %c0_41 = arith.constant 0 : index
    %32 = vector.load %arg1[%c0_38, %c2_39, %c2_40, %c0_41] : memref<1x18x18x4xbf16, #tpu.memory_space<vmem>>, vector<1x16x16x4xbf16>
    %33 = vector.shape_cast %32 : vector<1x16x16x4xbf16> to vector<16x16x4xbf16>
    %34 = vector.shape_cast %33 : vector<16x16x4xbf16> to vector<256x4xbf16>
    %c0_42 = arith.constant 0 : index
    %c32 = arith.constant 32 : index
    %35 = vector.load %arg5[%c0_42, %c32] : memref<256x36xbf16, #tpu.memory_space<vmem>>, vector<256x4xbf16>
    tpu.vector_store %arg5[%c0_42, %c32], %34 {strides = array<i32>} : memref<256x36xbf16, #tpu.memory_space<vmem>>, vector<256x4xbf16>,
    %c0_43 = arith.constant 0 : index
    %c0_44 = arith.constant 0 : index
    %36 = vector.load %arg5[%c0_43, %c0_44] : memref<256x36xbf16, #tpu.memory_space<vmem>>, vector<256x36xbf16>
    %c0_45 = arith.constant 0 : index
    %c0_46 = arith.constant 0 : index
    %37 = vector.load %arg2[%c0_45, %c0_46] : memref<36x8xbf16, #tpu.memory_space<vmem>>, vector<36x8xbf16>
    %cst = arith.constant dense<0.000000e+00> : vector<256x8xf32>
    %38 = tpu.matmul %36, %37, %cst {dimension_numbers = #tpu.dot_dimension_numbers<[1], [0], [0], [1], [0, 0, 1, 1], [], []>} : vector<256x36xbf16>, vector<36x8xbf16>, vector<256x8xf32> -> vector<256x8xf32>
    %c0_47 = arith.constant 0 : index
    %c0_48 = arith.constant 0 : index
    %39 = vector.load %arg3[%c0_47, %c0_48] : memref<1x8xf32, #tpu.memory_space<vmem>>, vector<1x8xf32>
    %40 = vector.broadcast %39 : vector<1x8xf32> to vector<256x8xf32>
    %41 = arith.addf %38, %40 : vector<256x8xf32>
    %cst_49 = arith.constant 0.000000e+00 : f32
    %42 = vector.broadcast %cst_49 : f32 to vector<256x8xf32>
    %43 = arith.maximumf %41, %42 : vector<256x8xf32>
    %44 = arith.truncf %43 : vector<256x8xf32> to vector<256x8xbf16>
    %c0_50 = arith.constant 0 : index
    %c0_51 = arith.constant 0 : index
    %c0_52 = arith.constant 0 : index
    %45 = vector.load %arg4[%c0_50, %c0_51, %c0_52] : memref<1x256x8xbf16, #tpu.memory_space<vmem>>, vector<1x256x8xbf16>
    %46 = vector.shape_cast %45 : vector<1x256x8xbf16> to vector<256x8xbf16>
    %47 = vector.shape_cast %44 : vector<256x8xbf16> to vector<1x256x8xbf16>
    tpu.vector_store %arg4[%c0_50, %c0_51, %c0_52], %47 {strides = array<i32>} : memref<1x256x8xbf16, #tpu.memory_space<vmem>>, vector<1x256x8xbf16>,
    return
  }
  func.func @transform_0(%arg0: i32) -> (i32, i32, i32, i32) {
    %c0_i32 = arith.constant 0 : i32
    %c0_i32_0 = arith.constant 0 : i32
    %c0_i32_1 = arith.constant 0 : i32
    %c0_i32_2 = arith.constant 0 : i32
    return %arg0, %c0_i32, %c0_i32_0, %c0_i32_1 : i32, i32, i32, i32
  }
  func.func @transform_1(%arg0: i32) -> (i32, i32) {
    %c0_i32 = arith.constant 0 : i32
    %c0_i32_0 = arith.constant 0 : i32
    %c0_i32_1 = arith.constant 0 : i32
    return %c0_i32, %c0_i32_0 : i32, i32
  }
  func.func @transform_2(%arg0: i32) -> (i32, i32) {
    %c0_i32 = arith.constant 0 : i32
    %c0_i32_0 = arith.constant 0 : i32
    %c0_i32_1 = arith.constant 0 : i32
    return %c0_i32, %c0_i32_0 : i32, i32
  }
  func.func @transform_3(%arg0: i32) -> (i32, i32, i32) {
    %c0_i32 = arith.constant 0 : i32
    %c0_i32_0 = arith.constant 0 : i32
    %c0_i32_1 = arith.constant 0 : i32
    return %arg0, %c0_i32, %c0_i32_0 : i32, i32, i32
  }
}

</mosaic_0001>

<bundles_post_ra>
// kernel: conv_block_forward.1
= control target key start
LH: loop header
LB: loop body
LE: loop exit
PB: predicated region body
PF: predicated region fallthrough
CT: control target
= control target key end

     0   :  { %s4239_s12 = smov 0   ;;  %s5784_s0 = inlined_call_operand.vmem [shape: bf16[2,18,18,4], index: 0, kind: input, shape index: {}]   ;;  %s5785_s1 = inlined_call_operand.vmem [shape: bf16[36,8], index: 1, kind: input, shape index: {}]   ;;  %s5786_s2 = inlined_call_operand.vmem [shape: f32[1,8], index: 2, kind: input, shape index: {}]   ;;  %s5787_s3 = inlined_call_operand.vmem [shape: bf16[2,256,8], index: 3, kind: output, shape index: {}]  }
   0x1 LB: > { %s3755_s13 = sadd.s32 4294967295, %s4209_s12   ;;  %p3759_p0 = scmp.ge.s32.totalorder %s4209_s12, 1  ;;  %s4209_s12 = sphi %s4239_s12, %s13_s12  }
   0x2   : > { %p137_p1 = scmp.lt.s32.totalorder %s4209_s12, 3 }
   0x4   : > { %p138_p2 = pnand %p3759_p0, %p137_p1 }
   0x5   : > { %p161_p3 = scmp.lt.s32.totalorder (!%p138_p2), %s3755_s13, 1  ;;  %s4211_s18 = smov (!%p138_p2), 4  }
   0x6   : > { %141 = sbr.rel (%p138_p2) target bundleno = 970 (0x3ca), region = 32  ;;  %s4212_s19 = smov (!%p138_p2), 8  }
   0x7   : > { %s4213_s20 = smov (!%p138_p2), 12   ;;  %s4214_s21 = smov (!%p138_p2), 16  }
   0x8   : > { %s4215_s22 = smov (!%p138_p2), 20   ;;  %s4216_s23 = smov (!%p138_p2), 24  }
   0x9   : > { %s4217_s24 = smov (!%p138_p2), 28   ;;  %s4218_s25 = smov (!%p138_p2), 32  }
   0xb   : > { %s5793_s13 = smov (!%p161_p3, %s3755_s13), 1  ;;  %vm285_vm0 = vsmask.f32 3328  ;;  %vm286_vm1 = vsmask.f32 7440  ;;  %vm897_vm3 = vcmask 1042432  }
   0xc   : > { %s4185_s14 = smul.u32 216, %s5793_s13  ;;  %vm4264_vm2 = vmor %vm285_vm0, %vm286_vm1  ;;  %vm898_vm4 = vcmask 1046532   ;;  %vm204_vm5 = vcmask 27648   ;;  %vm768_vm7 = vcmask 60448   ;;  %vm1108_vm8 = vcmask 93248   ;;  %s4157_s7 = sshll.u32 %s5793_s13, 7 }
   0xd   : > { %vm4439_vm6 = vmor %vm897_vm3, %vm898_vm4  ;;  %vm1302_vm9 = vcmask 126048   ;;  %vm1863_vm10 = vcmask 158848   ;;  %vm2200_vm11 = vcmask 191648   ;;  %vm2394_vm12 = vcmask 224448   ;;  %s5662_s10 = scalar_lea.vmem %s5787_s3, %s4157_s7 }
   0xe   : > { %s4253_s17 = scalar_lea.vmem %s5784_s0, %s4185_s14  ;;  %vm3510_vm13 = vcmask 1041408   ;;  %vm2955_vm14 = vcmask 257248   ;;  %vm3292_vm15 = vcmask 290048   ;;  %vm3461_vm0 = vcmask 293888  }
   0xf   : > { %v240_v0 = vld [vmem:[%s4253_s17 + $0xc] sm:$0xf]  ;;  %v241_v1 = vld [vmem:[%s4253_s17 + $0x10] sm:$0xf]  ;;  %v237_v2 = vld [vmem:[%s4253_s17] sm:$0xf] }
  0x10   : > { %v313_v3 = vshrl.u32 %v240_v0, 16  ;;  %v316_v4 = vshll.u32 %v240_v0, 16  ;;  %v322_v5 = vshll.u32 %v241_v1, 16  ;;  %v326_v6 = vshrl.u32 %v241_v1, 16  ;;  %v238_v7 = vld [vmem:[%s4253_s17 + $0x4] sm:$0xf] }
  0x11   : > { %v289_v8 = vshrl.u32 %v237_v2, 16  ;;  %v292_v9 = vshll.u32 %v237_v2, 16  ;;  %v298_v10 = vshll.u32 %v238_v7, 16  ;;  %v302_v11 = vshrl.u32 %v238_v7, 16  ;;  %v242_v12 = vld [vmem:[%s4253_s17 + $0x14] sm:$0x1] }
  0x12   : > { %v315_v13 = vrot.slane %v313_v3, 4  ;;  %v318_v14 = vrot.slane %v316_v4, 5  ;;  %v324_v15 = vrot.slane %v322_v5, 5  ;;  %v328_v16 = vrot.slane %v326_v6, 4  ;;  %v239_v17 = vld [vmem:[%s4253_s17 + $0x8] sm:$0x1] }
  0x13   : > { %v291_v18 = vrot.slane %v289_v8, 4  ;;  %v294_v19 = vrot.slane %v292_v9, 5  ;;  %v304_v20 = vrot.slane %v302_v11, 4  ;;  %v247_v21 = vld [vmem:[%s4253_s17 + $0x28] sm:$0xf]  ;;  %v332_v24 = vshll.u32 %v242_v12, 16 }
  0x14   : > { %v319_v22 = vor.u32 %v318_v14, %v315_v13  ;;  %v329_v23 = vor.u32 %v328_v16, %v324_v15  ;;  %v300_v27 = vrot.slane %v298_v10, 5  ;;  %v370_v28 = vshll.u32 %v247_v21, 16  ;;  %v246_v30 = vld [vmem:[%s4253_s17 + $0x24] sm:$0xf]  ;;  %v243_v35 = vld [vmem:[%s4253_s17 + $0x18] sm:$0xf] }
  0x15   : > { %v295_v26 = vor.u32 %v294_v19, %v291_v18  ;;  %v374_v29 = vshrl.u32 %v247_v21, 16  ;;  %v308_v32 = vshll.u32 %v239_v17, 16  ;;  %v334_v38 = vrot.slane %v332_v24, 5  ;;  %v244_v40 = vld [vmem:[%s4253_s17 + $0x1c] sm:$0xf] }
  0x16   : > { %v320_v31 = vrot.slane %v319_v22, 4  ;;  %v305_v34 = vor.u32 %v304_v20, %v300_v27  ;;  %v330_v37 = vrot.slane %v329_v23, 4  ;;  %v361_v39 = vshrl.u32 %v246_v30, 16  ;;  %v248_v42 = vld [vmem:[%s4253_s17 + $0x2c] sm:$0x1] }
  0x17   : > { %v296_v33 = vrot.slane %v295_v26, 4  ;;  %v4277_v43 = vrot.slane %v370_v28, 5  ;;  %v376_v44 = vrot.slane %v374_v29, 4  ;;  %v364_v45 = vshll.u32 %v246_v30, 16  ;;  %v252_v50 = vld [vmem:[%s4253_s17 + $0x3c] sm:$0xf] }
  0x18   : > { %v325_v36 = vsel %vm4264_vm2, %v320_v31, %v324_v15  ;;  %v310_v46 = vrot.slane %v308_v32, 5  ;;  %v363_v47 = vrot.slane %v361_v39, 4  ;;  %v337_v48 = vshrl.u32 %v243_v35, 16  ;;  %v250_v58 = vld [vmem:[%s4253_s17 + $0x34] sm:$0xf] }
  0x19   : > { %676 = vrot.lane.b32.xlu1 %v325_v36, %s4211_s18  ;;  %v301_v41 = vsel %vm4264_vm2, %v296_v33, %v300_v27  ;;  %v340_v49 = vshll.u32 %v243_v35, 16  ;;  %v306_v51 = vrot.slane %v305_v34, 4  ;;  %v366_v52 = vrot.slane %v364_v45, 5  ;;  %v245_v6 = vld [vmem:[%s4253_s17 + $0x20] sm:$0x1] }
  0x1a   : > { %672 = vrot.lane.b32.xlu0 %v301_v41, %s4211_s18  ;;  %v346_v53 = vshll.u32 %v244_v40, 16  ;;  %v350_v54 = vshrl.u32 %v244_v40, 16  ;;  %v380_v55 = vshll.u32 %v248_v42, 16  ;;  %v339_v56 = vrot.slane %v337_v48, 4  ;;  %v253_v15 = vld [vmem:[%s4253_s17 + $0x40] sm:$0xf] }
  0x1b   : > { %v342_v57 = vrot.slane %v340_v49, 5  ;;  %v377_v59 = vor.u32 %v376_v44, %v4277_v43  ;;  %v409_v61 = vshrl.u32 %v252_v50, 16  ;;  %v412_v62 = vshll.u32 %v252_v50, 16  ;;  %v251_v16 = vld [vmem:[%s4253_s17 + $0x38] sm:$0x1] }
  0x1c   : > { %v352_v60 = vrot.slane %v350_v54, 4  ;;  %v335_v63 = vsel %vm4264_vm2, %v330_v37, %v334_v38  ;;  %v367_v0 = vor.u32 %v366_v52, %v363_v47  ;;  %v348_v2 = vrot.slane %v346_v53, 5  ;;  %v256_v20 = vld [vmem:[%s4253_s17 + $0x4c] sm:$0xf]  ;;  %v249_v21 = vld [vmem:[%s4253_s17 + $0x30] sm:$0xf] }
  0x1d   : > { %v343_v1 = vor.u32 %v342_v57, %v339_v56  ;;  %v311_v3 = vsel %vm4264_vm2, %v306_v51, %v310_v46  ;;  %v394_v4 = vshll.u32 %v250_v58, 16  ;;  %v398_v5 = vshrl.u32 %v250_v58, 16  ;;  %v255_v24 = vld [vmem:[%s4253_s17 + $0x48] sm:$0xf]  ;;  %v261_v47 = vld [vmem:[%s4253_s17 + $0x60] sm:$0xf] }
  0x1e   : > { %v382_v7 = vrot.slane %v380_v55, 5  ;;  %v378_v9 = vrot.slane %v377_v59, 4  ;;  %v411_v10 = vrot.slane %v409_v61, 4  ;;  %v414_v11 = vrot.slane %v412_v62, 5  ;;  %v257_v49 = vld [vmem:[%s4253_s17 + $0x50] sm:$0x1] }
  0x1f   : > { %v344_v8 = vrot.slane %v343_v1, 4  ;;  %v353_v12 = vor.u32 %v352_v60, %v348_v2  ;;  %v368_v13 = vrot.slane %v367_v0, 4  ;;  %v356_v17 = vshll.u32 %v245_v6, 16  ;;  %v259_v53 = vld [vmem:[%s4253_s17 + $0x58] sm:$0xf] }
  0x20   : > { %v4295_v18 = vrot.slane %v394_v4, 5  ;;  %v400_v19 = vrot.slane %v398_v5, 4  ;;  %v383_v26 = vsel %vm4264_vm2, %v378_v9, %v382_v7  ;;  %v415_v27 = vor.u32 %v414_v11, %v411_v10  ;;  %v254_v58 = vld [vmem:[%s4253_s17 + $0x44] sm:$0x1]  ;;  %v265_v11 = vld [vmem:[%s4253_s17 + $0x70] sm:$0xf] }
  0x21   : > { %678 = vrot.lane.b32.xlu1 %v335_v63, %s4211_s18  ;;  %v349_v14 = vsel %vm4264_vm2, %v344_v8, %v348_v2  ;;  %v354_v22 = vrot.slane %v353_v12, 4  ;;  %v358_v23 = vrot.slane %v356_v17, 5  ;;  %v418_v28 = vshll.u32 %v253_v15, 16  ;;  %v258_v2 = vld [vmem:[%s4253_s17 + $0x54] sm:$0xf] }
  0x22   : > { %674 = vrot.lane.b32.xlu0 %v311_v3, %s4211_s18  ;;  %680 = vrot.lane.b32.xlu2 %v349_v14, %s4211_s18  ;;  %v404_v29 = vshll.u32 %v251_v16, 16  ;;  %v373_v30 = vsel %vm4264_vm2, %v368_v13, %v4277_v43  ;;  %v442_v31 = vshll.u32 %v256_v20, 16  ;;  %v446_v32 = vshrl.u32 %v256_v20, 16  ;;  %v262_v6 = vld [vmem:[%s4253_s17 + $0x64] sm:$0xf] }
  0x23   : > { %v385_v33 = vshrl.u32 %v249_v21, 16  ;;  %v401_v34 = vor.u32 %v400_v19, %v4295_v18  ;;  %v433_v35 = vshrl.u32 %v255_v24, 16  ;;  %v436_v36 = vshll.u32 %v255_v24, 16  ;;  %v264_v20 = vld [vmem:[%s4253_s17 + $0x6c] sm:$0xf] }
  0x24   : > { %v388_v37 = vshll.u32 %v249_v21, 16  ;;  %v422_v38 = vshrl.u32 %v253_v15, 16  ;;  %v359_v39 = vsel %vm4264_vm2, %v354_v22, %v358_v23  ;;  %v420_v41 = vrot.slane %v418_v28, 5  ;;  %v260_v15 = vld [vmem:[%s4253_s17 + $0x5c] sm:$0x1] }
  0x25   : > { %v387_v40 = vrot.slane %v385_v33, 4  ;;  %v416_v43 = vrot.slane %v415_v27, 4  ;;  %v406_v44 = vrot.slane %v404_v29, 5  ;;  %v4310_v45 = vrot.slane %v442_v31, 5 }
  0x26   : > { %v390_v42 = vrot.slane %v388_v37, 5  ;;  %v448_v46 = vrot.slane %v446_v32, 4  ;;  %v402_v48 = vrot.slane %v401_v34, 4  ;;  %v435_v50 = vrot.slane %v433_v35, 4 }
  0x27   : > { %v438_v51 = vrot.slane %v436_v36, 5  ;;  %v424_v54 = vrot.slane %v422_v38, 4  ;;  %v481_v56 = vshrl.u32 %v261_v47, 16  ;;  %v484_v57 = vshll.u32 %v261_v47, 16  ;;  %v268_v47 = vld [vmem:[%s4253_s17 + $0x7c] sm:$0xf] }
  0x28   : > { %v391_v52 = vor.u32 %v390_v42, %v387_v40  ;;  %v421_v59 = vsel %vm4264_vm2, %v416_v43, %v420_v41  ;;  %v449_v60 = vor.u32 %v448_v46, %v4310_v45  ;;  %v452_v61 = vshll.u32 %v257_v49, 16  ;;  %v270_v42 = vld [vmem:[%s4253_s17 + $0x84] sm:$0xf]  ;;  %v263_v49 = vld [vmem:[%s4253_s17 + $0x68] sm:$0x1] }
  0x29   : > { %686 = vrot.lane.b32.xlu1 %v383_v26, %s4211_s18  ;;  %v407_v62 = vsel %vm4264_vm2, %v402_v48, %v406_v44  ;;  %v439_v63 = vor.u32 %v438_v51, %v435_v50  ;;  %v466_v0 = vshll.u32 %v259_v53, 16  ;;  %v470_v1 = vshrl.u32 %v259_v53, 16 }
  0x2a   : > { %684 = vrot.lane.b32.xlu0 %v373_v30, %s4211_s18  ;;  %682 = vrot.lane.b32.xlu2 %v359_v39, %s4211_s18  ;;  %v392_v55 = vrot.slane %v391_v52, 4  ;;  %v425_v4 = vor.u32 %v424_v54, %v420_v41  ;;  %v428_v5 = vshll.u32 %v254_v58, 16  ;;  %v483_v7 = vrot.slane %v481_v56, 4  ;;  %v266_v41 = vld [vmem:[%s4253_s17 + $0x74] sm:$0x1] }
  0x2b   : > { %v486_v8 = vrot.slane %v484_v57, 5  ;;  %v450_v9 = vrot.slane %v449_v60, 4  ;;  %v454_v10 = vrot.slane %v452_v61, 5  ;;  %v457_v12 = vshrl.u32 %v258_v2, 16  ;;  %v267_v54 = vld [vmem:[%s4253_s17 + $0x78] sm:$0xf] }
  0x2c   : > { %v397_v3 = vsel %vm4264_vm2, %v392_v55, %v4295_v18  ;;  %v460_v13 = vshll.u32 %v258_v2, 16  ;;  %v440_v14 = vrot.slane %v439_v63, 4  ;;  %v4332_v16 = vrot.slane %v466_v0, 5 }
  0x2d   : > { %v472_v17 = vrot.slane %v470_v1, 4  ;;  %v426_v18 = vrot.slane %v425_v4, 4  ;;  %v430_v19 = vrot.slane %v428_v5, 5  ;;  %v459_v21 = vrot.slane %v457_v12, 4  ;;  %v271_v4 = vld [vmem:[%s4253_s17 + $0x88] sm:$0xf] }
  0x2e   : > { %v462_v22 = vrot.slane %v460_v13, 5  ;;  %v487_v23 = vor.u32 %v486_v8, %v483_v7  ;;  %v490_v24 = vshll.u32 %v262_v6, 16  ;;  %v514_v26 = vshll.u32 %v265_v11, 16 }
  0x2f   : > { %v518_v27 = vshrl.u32 %v265_v11, 16  ;;  %v455_v28 = vsel %vm4264_vm2, %v450_v9, %v454_v10  ;;  %v476_v29 = vshll.u32 %v260_v15, 16  ;;  %v445_v30 = vsel %vm4264_vm2, %v440_v14, %v4310_v45  ;;  %v274_v9 = vld [vmem:[%s4253_s17 + $0x94] sm:$0xf]  ;;  %v269_v11 = vld [vmem:[%s4253_s17 + $0x80] sm:$0x1] }
  0x30   : > { %v473_v31 = vor.u32 %v472_v17, %v4332_v16  ;;  %v505_v32 = vshrl.u32 %v264_v20, 16  ;;  %v508_v33 = vshll.u32 %v264_v20, 16  ;;  %v494_v34 = vshrl.u32 %v262_v6, 16  ;;  %v273_v14 = vld [vmem:[%s4253_s17 + $0x90] sm:$0xf] }
  0x31   : > { %692 = vrot.lane.b32.xlu1 %v421_v59, %s4211_s18  ;;  %v431_v35 = vsel %vm4264_vm2, %v426_v18, %v430_v19  ;;  %v463_v36 = vor.u32 %v462_v22, %v459_v21  ;;  %v488_v37 = vrot.slane %v487_v23, 4  ;;  %v492_v38 = vrot.slane %v490_v24, 5 }
  0x32   : > { %690 = vrot.lane.b32.xlu0 %v407_v62, %s4211_s18  ;;  %688 = vrot.lane.b32.xlu2 %v397_v3, %s4211_s18  ;;  %v4344_v39 = vrot.slane %v514_v26, 5  ;;  %v520_v40 = vrot.slane %v518_v27, 4  ;;  %v474_v43 = vrot.slane %v473_v31, 4  ;;  %v478_v44 = vrot.slane %v476_v29, 5 }
  0x33   : > { %v507_v45 = vrot.slane %v505_v32, 4  ;;  %v510_v46 = vrot.slane %v508_v33, 5  ;;  %v464_v48 = vrot.slane %v463_v36, 4  ;;  %v496_v50 = vrot.slane %v494_v34, 4 }
  0x34   : > { %v493_v51 = vsel %vm4264_vm2, %v488_v37, %v492_v38  ;;  %v521_v52 = vor.u32 %v520_v40, %v4344_v39  ;;  %v524_v53 = vshll.u32 %v266_v41, 16  ;;  %v553_v55 = vshrl.u32 %v270_v42, 16  ;;  %v275_v37 = vld [vmem:[%s4253_s17 + $0x98] sm:$0x1]  ;;  %v279_v40 = vld [vmem:[%s4253_s17 + $0xa8] sm:$0xf] }
  0x35   : > { %v556_v56 = vshll.u32 %v270_v42, 16  ;;  %v538_v57 = vshll.u32 %v268_v47, 16  ;;  %v542_v58 = vshrl.u32 %v268_v47, 16  ;;  %v479_v59 = vsel %vm4264_vm2, %v474_v43, %v478_v44  ;;  %v277_v42 = vld [vmem:[%s4253_s17 + $0xa0] sm:$0xf] }
  0x36   : > { %v511_v60 = vor.u32 %v510_v46, %v507_v45  ;;  %v500_v61 = vshll.u32 %v263_v49, 16  ;;  %v469_v62 = vsel %vm4264_vm2, %v464_v48, %v4332_v16  ;;  %v497_v63 = vor.u32 %v496_v50, %v492_v38  ;;  %v272_v43 = vld [vmem:[%s4253_s17 + $0x8c] sm:$0x1]  ;;  %v276_v47 = vld [vmem:[%s4253_s17 + $0x9c] sm:$0xf] }
  0x37   : > { %v529_v0 = vshrl.u32 %v267_v54, 16  ;;  %v532_v1 = vshll.u32 %v267_v54, 16  ;;  %v522_v2 = vrot.slane %v521_v52, 4  ;;  %v526_v3 = vrot.slane %v524_v53, 5 }
  0x38   : > { %v555_v5 = vrot.slane %v553_v55, 4  ;;  %v558_v6 = vrot.slane %v556_v56, 5  ;;  %v4364_v7 = vrot.slane %v538_v57, 5  ;;  %v544_v8 = vrot.slane %v542_v58, 4 }
  0x39   : > { %698 = vrot.lane.b32.xlu1 %v455_v28, %s4211_s18  ;;  %v512_v10 = vrot.slane %v511_v60, 4  ;;  %v498_v12 = vrot.slane %v497_v63, 4  ;;  %v502_v13 = vrot.slane %v500_v61, 5  ;;  %v531_v15 = vrot.slane %v529_v0, 4 }
  0x3a   : > { %696 = vrot.lane.b32.xlu0 %v445_v30, %s4211_s18  ;;  %694 = vrot.lane.b32.xlu2 %v431_v35, %s4211_s18  ;;  %v534_v16 = vrot.slane %v532_v1, 5  ;;  %v562_v17 = vshll.u32 %v271_v4, 16  ;;  %v586_v18 = vshll.u32 %v274_v9, 16  ;;  %v590_v19 = vshrl.u32 %v274_v9, 16  ;;  %v278_v1 = vld [vmem:[%s4253_s17 + $0xa4] sm:$0x1] }
  0x3b   : > { %v527_v20 = vsel %vm4264_vm2, %v522_v2, %v526_v3  ;;  %v559_v21 = vor.u32 %v558_v6, %v555_v5  ;;  %v545_v22 = vor.u32 %v544_v8, %v4364_v7  ;;  %v548_v23 = vshll.u32 %v269_v11, 16  ;;  %v283_v5 = vld [vmem:[%s4253_s17 + $0xb8] sm:$0xf]  ;;  %v282_v8 = vld [vmem:[%s4253_s17 + $0xb4] sm:$0xf] }
  0x3c   : > { %v517_v24 = vsel %vm4264_vm2, %v512_v10, %v4344_v39  ;;  %v577_v26 = vshrl.u32 %v273_v14, 16  ;;  %v580_v27 = vshll.u32 %v273_v14, 16  ;;  %v566_v28 = vshrl.u32 %v271_v4, 16 }
  0x3d   : > { %v503_v29 = vsel %vm4264_vm2, %v498_v12, %v502_v13  ;;  %v535_v30 = vor.u32 %v534_v16, %v531_v15  ;;  %v4379_v31 = vrot.slane %v586_v18, 5  ;;  %v592_v32 = vrot.slane %v590_v19, 4 }
  0x3e   : > { %v560_v33 = vrot.slane %v559_v21, 4  ;;  %v564_v34 = vrot.slane %v562_v17, 5  ;;  %v546_v35 = vrot.slane %v545_v22, 4  ;;  %v550_v36 = vrot.slane %v548_v23, 5 }
  0x3f   : > { %v579_v38 = vrot.slane %v577_v26, 4  ;;  %v582_v39 = vrot.slane %v580_v27, 5  ;;  %v536_v41 = vrot.slane %v535_v30, 4  ;;  %v568_v44 = vrot.slane %v566_v28, 4 }
  0x40   : > { %v593_v45 = vor.u32 %v592_v32, %v4379_v31  ;;  %v596_v46 = vshll.u32 %v275_v37, 16  ;;  %v565_v48 = vsel %vm4264_vm2, %v560_v33, %v564_v34  ;;  %v551_v49 = vsel %vm4264_vm2, %v546_v35, %v550_v36  ;;  %v281_v36 = vld [vmem:[%s4253_s17 + $0xb0] sm:$0x1] }
  0x41   : > { %704 = vrot.lane.b32.xlu1 %v493_v51, %s4211_s18  ;;  %v625_v50 = vshrl.u32 %v279_v40, 16  ;;  %v628_v51 = vshll.u32 %v279_v40, 16  ;;  %v583_v52 = vor.u32 %v582_v39, %v579_v38  ;;  %v610_v53 = vshll.u32 %v277_v42, 16 }
  0x42   : > { %702 = vrot.lane.b32.xlu0 %v479_v59, %s4211_s18  ;;  %700 = vrot.lane.b32.xlu2 %v469_v62, %s4211_s18  ;;  %v614_v54 = vshrl.u32 %v277_v42, 16  ;;  %v572_v55 = vshll.u32 %v272_v43, 16  ;;  %v541_v56 = vsel %vm4264_vm2, %v536_v41, %v4364_v7  ;;  %v569_v57 = vor.u32 %v568_v44, %v564_v34  ;;  %v280_v62 = vld [vmem:[%s4253_s17 + $0xac] sm:$0xf] }
  0x43   : > { %v601_v58 = vshrl.u32 %v276_v47, 16  ;;  %v604_v59 = vshll.u32 %v276_v47, 16  ;;  %v594_v60 = vrot.slane %v593_v45, 4  ;;  %v598_v61 = vrot.slane %v596_v46, 5 }
  0x44   : > { %v627_v63 = vrot.slane %v625_v50, 4  ;;  %v630_v0 = vrot.slane %v628_v51, 5  ;;  %v584_v2 = vrot.slane %v583_v52, 4  ;;  %v612_v3 = vrot.slane %v610_v53, 5  ;;  %v804_v51 = vld [vmem:[%s4253_s17 + $0xc] sm:$0xe] }
  0x45   : > { %v616_v4 = vrot.slane %v614_v54, 4  ;;  %v570_v6 = vrot.slane %v569_v57, 4  ;;  %v574_v7 = vrot.slane %v572_v55, 5  ;;  %v603_v9 = vrot.slane %v601_v58, 4  ;;  %v805_v53 = vld [vmem:[%s4253_s17 + $0x10] sm:$0xf] }
  0x46   : > { %v606_v10 = vrot.slane %v604_v59, 5  ;;  %v599_v11 = vsel %vm4264_vm2, %v594_v60, %v598_v61  ;;  %v634_v12 = vshll.u32 %v280_v62, 16  ;;  %v631_v13 = vor.u32 %v630_v0, %v627_v63  ;;  %v803_v54 = vld [vmem:[%s4253_s17 + $0x8] sm:$0x1]  ;;  %v801_v61 = vld [vmem:[%s4253_s17] sm:$0xe] }
  0x47   : > { %v620_v14 = vshll.u32 %v278_v1, 16  ;;  %v658_v15 = vshll.u32 %v283_v5, 16  ;;  %v662_v16 = vshrl.u32 %v283_v5, 16  ;;  %v589_v17 = vsel %vm4264_vm2, %v584_v2, %v4379_v31  ;;  %v284_v31 = vld [vmem:[%s4253_s17 + $0xbc] sm:$0x1] }
  0x48   : > { %v617_v18 = vor.u32 %v616_v4, %v612_v3  ;;  %v649_v19 = vshrl.u32 %v282_v8, 16  ;;  %v638_v21 = vshrl.u32 %v280_v62, 16  ;;  %v575_v22 = vsel %vm4264_vm2, %v570_v6, %v574_v7  ;;  %v808_v63 = vld [vmem:[%s4253_s17 + $0x1c] sm:$0xf]  ;;  %v176_v0 = vld [vmem:[%s4253_s17 + $0x18] sm:$0xf] }
  0x49   : > { %710 = vrot.lane.b32.xlu1 %v527_v20, %s4211_s18  ;;  %v652_v20 = vshll.u32 %v282_v8, 16  ;;  %v607_v23 = vor.u32 %v606_v10, %v603_v9  ;;  %v636_v26 = vrot.slane %v634_v12, 5  ;;  %v660_v27 = vrot.slane %v658_v15, 5  ;;  %209 = vst.msk [vmem:[#allocation2 + $0x10] sm:$0xf] %vm204_vm5, %v176_v0 }
  0x4a   : > { %708 = vrot.lane.b32.xlu0 %v517_v24, %s4211_s18  ;;  %706 = vrot.lane.b32.xlu2 %v503_v29, %s4211_s18  ;;  %v632_v24 = vrot.slane %v631_v13, 4  ;;  %v664_v28 = vrot.slane %v662_v16, 4  ;;  %v618_v29 = vrot.slane %v617_v18, 4  ;;  %v622_v30 = vrot.slane %v620_v14, 5  ;;  %v174_v2 = vld [vmem:[%s4253_s17 + $0xc] sm:$0xf] }
  0x4b   : > { %v651_v32 = vrot.slane %v649_v19, 4  ;;  %v654_v33 = vrot.slane %v652_v20, 5  ;;  %v608_v34 = vrot.slane %v607_v23, 4  ;;  %v640_v35 = vrot.slane %v638_v21, 4  ;;  %207 = vst.msk [vmem:[#allocation2 + $0x8] sm:$0xf] %vm204_vm5, %v174_v2 }
  0x4c   : > { %v637_v37 = vsel %vm4264_vm2, %v632_v24, %v636_v26  ;;  %v665_v38 = vor.u32 %v664_v28, %v660_v27  ;;  %v668_v39 = vshll.u32 %v284_v31, 16  ;;  %v623_v40 = vsel %vm4264_vm2, %v618_v29, %v622_v30  ;;  %v809_v6 = vld [vmem:[%s4253_s17 + $0x20] sm:$0x1]  ;;  %v807_v9 = vld [vmem:[%s4253_s17 + $0x18] sm:$0xe] }
  0x4d   : > { %v655_v41 = vor.u32 %v654_v33, %v651_v32  ;;  %v613_v42 = vsel %vm4264_vm2, %v608_v34, %v612_v3  ;;  %v641_v43 = vor.u32 %v640_v35, %v636_v26  ;;  %v644_v44 = vshll.u32 %v281_v36, 16  ;;  %v172_v3 = vld [vmem:[%s4253_s17] sm:$0xf]  ;;  %v806_v12 = vld [vmem:[%s4253_s17 + $0x14] sm:$0x1] }
  0x4e   : > { %v666_v45 = vrot.slane %v665_v38, 4  ;;  %v670_v46 = vrot.slane %v668_v39, 5  ;;  %v3764_v58 = vrot.slane %v804_v51, 9  ;;  %v909_v59 = vrot.slane %v805_v53, 5  ;;  %205 = vst.msk [vmem:[#allocation2] sm:$0xf] %vm204_vm5, %v172_v3 }
  0x4f   : > { %v656_v47 = vrot.slane %v655_v41, 4  ;;  %v646_v50 = vrot.slane %v644_v44, 5  ;;  %v905_v60 = vrot.slane %v803_v54, 5  ;;  %v3763_v4 = vrot.slane %v801_v61, 9  ;;  %v811_v15 = vld [vmem:[%s4253_s17 + $0x28] sm:$0xf] }
  0x50   : > { %v671_v52 = vsel %vm4264_vm2, %v666_v45, %v670_v46  ;;  %v910_v5 = vsel %vm4439_vm6, %v3764_v58, %v909_v59  ;;  %v916_v7 = vrot.slane %v808_v63, 5  ;;  %v3765_v14 = vrot.slane %v807_v9, 9  ;;  %v177_v16 = vld [vmem:[%s4253_s17 + $0x1c] sm:$0xf]  ;;  %v173_v18 = vld [vmem:[%s4253_s17 + $0x4] sm:$0xf] }
  0x51   : > { %716 = vrot.lane.b32.xlu1 %v565_v48, %s4211_s18  ;;  %v802_v48 = vld [vmem:[%s4253_s17 + $0x4] sm:$0xf]  ;;  %210 = vst.msk [vmem:[#allocation2 + $0x14] sm:$0xf] %vm204_vm5, %v177_v16  ;;  %v911_v19 = vrot.slane %v909_v59, 4  ;;  %v912_v20 = vrot.slane %v806_v12, 5 }
  0x52   : > { %714 = vrot.lane.b32.xlu0 %v551_v49, %s4211_s18  ;;  %712 = vrot.lane.b32.xlu2 %v541_v56, %s4211_s18  ;;  %v642_v49 = vrot.slane %v641_v43, 4  ;;  %v902_v55 = vrot.slane %v802_v48, 5  ;;  %v661_v56 = vsel %vm4264_vm2, %v656_v47, %v660_v27  ;;  %v918_v13 = vrot.slane %v916_v7, 4  ;;  %206 = vst.msk [vmem:[#allocation2 + $0x4] sm:$0xf] %vm204_vm5, %v173_v18 }
  0x53   : > { %v814_v23 = vld [vmem:[%s4253_s17 + $0x34] sm:$0xf]  ;;  %v923_v24 = vrot.slane %v811_v15, 5  ;;  %v917_v26 = vsel %vm4439_vm6, %v3765_v14, %v916_v7  ;;  %v812_v27 = vld [vmem:[%s4253_s17 + $0x2c] sm:$0x1]  ;;  %v913_v28 = vsel %vm4439_vm6, %v911_v19, %v912_v20  ;;  %vm3667_vm1 = vcmask 60416  }
  0x54   : > { %v647_v57 = vsel %vm4264_vm2, %v642_v49, %v646_v50  ;;  %v904_v62 = vrot.slane %v902_v55, 4  ;;  %v903_v10 = vsel %vm4439_vm6, %v3763_v4, %v902_v55  ;;  %v930_v30 = vrot.slane %v814_v23, 5  ;;  %v810_v31 = vld [vmem:[%s4253_s17 + $0x24] sm:$0xe]  ;;  %v817_v34 = vld [vmem:[%s4253_s17 + $0x40] sm:$0xf] }
  0x55   : > { %v925_v32 = vrot.slane %v923_v24, 4  ;;  %v926_v33 = vrot.slane %v812_v27, 5  ;;  %v180_v35 = vld [vmem:[%s4253_s17 + $0x30] sm:$0xf]  ;;  %v179_v36 = vld [vmem:[%s4253_s17 + $0x28] sm:$0xf] }
  0x56   : > { %v906_v8 = vsel %vm4439_vm6, %v904_v62, %v905_v60  ;;  %213 = vst.msk [vmem:[#allocation2 + $0x20] sm:$0xf] %vm204_vm5, %v180_v35  ;;  %v3766_v38 = vrot.slane %v810_v31, 9  ;;  %v937_v41 = vrot.slane %v817_v34, 5  ;;  %v818_v43 = vld [vmem:[%s4253_s17 + $0x44] sm:$0x1] }
  0x57   : > { %212 = vst.msk [vmem:[#allocation2 + $0x1c] sm:$0xf] %vm204_vm5, %v179_v36  ;;  %v816_v44 = vld [vmem:[%s4253_s17 + $0x3c] sm:$0xe]  ;;  %v815_v46 = vld [vmem:[%s4253_s17 + $0x38] sm:$0x1] }
  0x58   : > { %v924_v45 = vsel %vm4439_vm6, %v3766_v38, %v923_v24  ;;  %v939_v47 = vrot.slane %v937_v41, 4  ;;  %v940_v48 = vrot.slane %v818_v43, 5  ;;  %v3768_v49 = vrot.slane %v816_v44, 9  ;;  %v183_v50 = vld [vmem:[%s4253_s17 + $0x40] sm:$0xf] }
  0x59   : > { %722 = vrot.lane.b32.xlu1 %v599_v11, %s4211_s18  ;;  %v919_v11 = vrot.slane %v809_v6, 5  ;;  %216 = vst.msk [vmem:[#allocation2 + $0x2c] sm:$0xf] %vm204_vm5, %v183_v50  ;;  %v182_v51 = vld [vmem:[%s4253_s17 + $0x3c] sm:$0xf]  ;;  %v932_v54 = vrot.slane %v930_v30, 4 }
  0x5a   : > { %720 = vrot.lane.b32.xlu0 %v589_v17, %s4211_s18  ;;  %718 = vrot.lane.b32.xlu2 %v575_v22, %s4211_s18  ;;  %v175_v17 = vld [vmem:[%s4253_s17 + $0x10] sm:$0xf]  ;;  %v820_v53 = vld [vmem:[%s4253_s17 + $0x4c] sm:$0xf]  ;;  %v933_v55 = vrot.slane %v815_v46, 5  ;;  %v938_v58 = vsel %vm4439_vm6, %v3768_v49, %v937_v41 }
  0x5b   : > { %208 = vst.msk [vmem:[#allocation2 + $0xc] sm:$0xf] %vm204_vm5, %v175_v17  ;;  %v920_v21 = vsel %vm4439_vm6, %v918_v13, %v919_v11  ;;  %v813_v22 = vld [vmem:[%s4253_s17 + $0x30] sm:$0xe]  ;;  %v822_v59 = vld [vmem:[%s4253_s17 + $0x54] sm:$0xe] }
  0x5c   : > { %v3767_v29 = vrot.slane %v813_v22, 9  ;;  %215 = vst.msk [vmem:[#allocation2 + $0x28] sm:$0xf] %vm204_vm5, %v182_v51  ;;  %v823_v60 = vld [vmem:[%s4253_s17 + $0x58] sm:$0xf]  ;;  %v944_v61 = vrot.slane %v820_v53, 5  ;;  %v934_v63 = vsel %vm4439_vm6, %v932_v54, %v933_v55 }
  0x5d   : > { %v821_v62 = vld [vmem:[%s4253_s17 + $0x50] sm:$0x1]  ;;  %v819_v0 = vld [vmem:[%s4253_s17 + $0x48] sm:$0xe]  ;;  %v3770_v2 = vrot.slane %v822_v59, 9  ;;  %v951_v3 = vrot.slane %v823_v60, 5 }
  0x5e   : > { %v186_v4 = vld [vmem:[%s4253_s17 + $0x54] sm:$0xf]  ;;  %v946_v6 = vrot.slane %v944_v61, 4  ;;  %v947_v7 = vrot.slane %v821_v62, 5  ;;  %v185_v11 = vld [vmem:[%s4253_s17 + $0x4c] sm:$0xf] }
  0x5f   : > { %219 = vst.msk [vmem:[#allocation2 + $0x38] sm:$0xf] %vm204_vm5, %v186_v4  ;;  %v184_v13 = vld [vmem:[%s4253_s17 + $0x48] sm:$0xf]  ;;  %v952_v14 = vsel %vm4439_vm6, %v3770_v2, %v951_v3  ;;  %v825_v18 = vld [vmem:[%s4253_s17 + $0x60] sm:$0xe] }
  0x60   : > { %v948_v16 = vsel %vm4439_vm6, %v946_v6, %v947_v7  ;;  %v827_v17 = vld [vmem:[%s4253_s17 + $0x68] sm:$0x1]  ;;  %218 = vst.msk [vmem:[#allocation2 + $0x34] sm:$0xf] %vm204_vm5, %v185_v11  ;;  %v824_v20 = vld [vmem:[%s4253_s17 + $0x5c] sm:$0x1] }
  0x61   : > { %728 = vrot.lane.b32.xlu1 %v637_v37, %s4211_s18  ;;  %v178_v37 = vld [vmem:[%s4253_s17 + $0x24] sm:$0xf]  ;;  %217 = vst.msk [vmem:[#allocation2 + $0x30] sm:$0xf] %vm204_vm5, %v184_v13  ;;  %v961_v22 = vrot.slane %v827_v17, 5 }
  0x62   : > { %726 = vrot.lane.b32.xlu0 %v623_v40, %s4211_s18  ;;  %724 = vrot.lane.b32.xlu2 %v613_v42, %s4211_s18  ;;  %211 = vst.msk [vmem:[#allocation2 + $0x18] sm:$0xf] %vm204_vm5, %v178_v37  ;;  %v931_v40 = vsel %vm4439_vm6, %v3767_v29, %v930_v30  ;;  %v927_v42 = vsel %vm4439_vm6, %v925_v32, %v926_v33  ;;  %v189_v23 = vld [vmem:[%s4253_s17 + $0x64] sm:$0xf]  ;;  %v829_v27 = vld [vmem:[%s4253_s17 + $0x70] sm:$0xf] }
  0x63   : > { %222 = vst.msk [vmem:[#allocation2 + $0x44] sm:$0xf] %vm204_vm5, %v189_v23  ;;  %v953_v29 = vrot.slane %v951_v3, 4  ;;  %v954_v30 = vrot.slane %v824_v20, 5  ;;  %v188_v31 = vld [vmem:[%s4253_s17 + $0x60] sm:$0xf] }
  0x64   : > { %v187_v33 = vld [vmem:[%s4253_s17 + $0x58] sm:$0xf]  ;;  %v832_v37 = vld [vmem:[%s4253_s17 + $0x7c] sm:$0xf]  ;;  %v965_v38 = vrot.slane %v829_v27, 5 }
  0x65   : > { %v831_v35 = vld [vmem:[%s4253_s17 + $0x78] sm:$0xe]  ;;  %221 = vst.msk [vmem:[#allocation2 + $0x40] sm:$0xf] %vm204_vm5, %v188_v31  ;;  %v828_v41 = vld [vmem:[%s4253_s17 + $0x6c] sm:$0xe] }
  0x66   : > { %220 = vst.msk [vmem:[#allocation2 + $0x3c] sm:$0xf] %vm204_vm5, %v187_v33  ;;  %v972_v43 = vrot.slane %v832_v37, 5  ;;  %v192_v44 = vld [vmem:[%s4253_s17 + $0x78] sm:$0xf]  ;;  %v967_v46 = vrot.slane %v965_v38, 4 }
  0x67   : > { %225 = vst.msk [vmem:[#allocation2 + $0x50] sm:$0xf] %vm204_vm5, %v192_v44  ;;  %v3772_v50 = vrot.slane %v828_v41, 9  ;;  %v191_v51 = vld [vmem:[%s4253_s17 + $0x70] sm:$0xf] }
  0x68   : > { %v190_v53 = vld [vmem:[%s4253_s17 + $0x6c] sm:$0xf]  ;;  %224 = vst.msk [vmem:[#allocation2 + $0x4c] sm:$0xf] %vm204_vm5, %v191_v51  ;;  %v833_v60 = vld [vmem:[%s4253_s17 + $0x80] sm:$0x1] }
  0x69   : > { %734 = vrot.lane.b32.xlu1 %v671_v52, %s4211_s18  ;;  %v181_v52 = vld [vmem:[%s4253_s17 + $0x34] sm:$0xf]  ;;  %v966_v59 = vsel %vm4439_vm6, %v3772_v50, %v965_v38  ;;  %223 = vst.msk [vmem:[#allocation2 + $0x48] sm:$0xf] %vm204_vm5, %v190_v53  ;;  %v975_v6 = vrot.slane %v833_v60, 5 }
  0x6a   : > { %732 = vrot.lane.b32.xlu0 %v661_v56, %s4211_s18  ;;  %730 = vrot.lane.b32.xlu2 %v647_v57, %s4211_s18  ;;  %214 = vst.msk [vmem:[#allocation2 + $0x24] sm:$0xf] %vm204_vm5, %v181_v52  ;;  %v941_v57 = vsel %vm4439_vm6, %v939_v47, %v940_v48  ;;  %v835_v48 = vld [vmem:[%s4253_s17 + $0x88] sm:$0xf]  ;;  %v838_v3 = vld [vmem:[%s4253_s17 + $0x94] sm:$0xf] }
  0x6b   : > { %v979_v55 = vrot.slane %v835_v48, 5  ;;  %v194_v7 = vld [vmem:[%s4253_s17 + $0x84] sm:$0xf]  ;;  %v840_v11 = vld [vmem:[%s4253_s17 + $0x9c] sm:$0xe] }
  0x6c   : > { %v841_v13 = vld [vmem:[%s4253_s17 + $0xa0] sm:$0xf]  ;;  %227 = vst.msk [vmem:[#allocation2 + $0x58] sm:$0xf] %vm204_vm5, %v194_v7  ;;  %v837_v17 = vld [vmem:[%s4253_s17 + $0x90] sm:$0xe] }
  0x6d   : > { %v198_v20 = vld [vmem:[%s4253_s17 + $0x9c] sm:$0xf]  ;;  %v3775_v27 = vrot.slane %v837_v17, 9  ;;  %v842_v37 = vld [vmem:[%s4253_s17 + $0xa4] sm:$0x1] }
  0x6e   : > { %231 = vst.msk [vmem:[#allocation2 + $0x68] sm:$0xf] %vm204_vm5, %v198_v20  ;;  %v848_v53 = vld [vmem:[%s4253_s17 + $0xbc] sm:$0x1] }
  0x6f   : > { %v3782_v7 = vld [vmem:[%s4253_s17 + $0x1c] sm:$0xf] }
  0x70   : > { %v3787_v20 = vld [vmem:[%s4253_s17 + $0x3c] sm:$0xf] }
  0x71   : > { %1016 = vrot.lane.b32.xlu1 %v910_v5, %s4212_s19 }
  0x72   : > { %1014 = vrot.lane.b32.xlu0 %v906_v8, %s4212_s19  ;;  %1012 = vrot.lane.b32.xlu2 %v903_v10, %s4212_s19  ;;  %v826_v8 = vld [vmem:[%s4253_s17 + $0x64] sm:$0xf]  ;;  %v3769_v10 = vrot.slane %v819_v0, 9 }
  0x73   : > { %v958_v15 = vrot.slane %v826_v8, 5 }
  0x74   : > { %v945_v19 = vsel %vm4439_vm6, %v3769_v10, %v944_v61  ;;  %v981_v61 = vrot.slane %v979_v55, 4 }
  0x79   : > { %1022 = vrot.lane.b32.xlu1 %v920_v21, %s4212_s19  ;;  %v960_v21 = vrot.slane %v958_v15, 4 }
  0x7a   : > { %1020 = vrot.lane.b32.xlu0 %v917_v26, %s4212_s19  ;;  %1018 = vrot.lane.b32.xlu2 %v913_v28, %s4212_s19  ;;  %v3771_v26 = vrot.slane %v825_v18, 9  ;;  %v3776_v18 = vrot.slane %v840_v11, 9 }
  0x7b   : > { %v962_v34 = vsel %vm4439_vm6, %v960_v21, %v961_v22 }
  0x7c   : > { %v681_v39 = vpop.permute.xlu2 %680  ;;  %v959_v36 = vsel %vm4439_vm6, %v3771_v26, %v958_v15  ;;  %v839_v15 = vld [vmem:[%s4253_s17 + $0x98] sm:$0x1] }
  0x7d   : > { %773 = vst.msk [vmem:[#allocation2 + $0x10] sm:$0xf] %vm768_vm7, %v681_v39  ;;  %v830_v39 = vld [vmem:[%s4253_s17 + $0x74] sm:$0x1]  ;;  %v989_v23 = vrot.slane %v839_v15, 5 }
  0x7e   : > { %v968_v47 = vrot.slane %v830_v39, 5  ;;  %v3783_v15 = vld [vmem:[%s4253_s17 + $0x24] sm:$0xf] }
  0x81   : > { %1028 = vrot.lane.b32.xlu1 %v931_v40, %s4212_s19  ;;  %v955_v40 = vsel %vm4439_vm6, %v953_v29, %v954_v30  ;;  %v196_v30 = vld [vmem:[%s4253_s17 + $0x90] sm:$0xf] }
  0x82   : > { %1026 = vrot.lane.b32.xlu0 %v927_v42, %s4212_s19  ;;  %1024 = vrot.lane.b32.xlu2 %v924_v45, %s4212_s19  ;;  %v3773_v42 = vrot.slane %v831_v35, 9  ;;  %v843_v35 = vld [vmem:[%s4253_s17 + $0xa8] sm:$0xe]  ;;  %229 = vst.msk [vmem:[#allocation2 + $0x60] sm:$0xf] %vm204_vm5, %v196_v30 }
  0x84   : > { %v683_v56 = vpop.permute.xlu2 %682  ;;  %v973_v54 = vsel %vm4439_vm6, %v3773_v42, %v972_v43  ;;  %v3777_v42 = vrot.slane %v843_v35, 9 }
  0x85   : > { %774 = vst.msk [vmem:[#allocation2 + $0x14] sm:$0xf] %vm768_vm7, %v683_v56  ;;  %v969_v56 = vsel %vm4439_vm6, %v967_v46, %v968_v47  ;;  %v996_v46 = vrot.slane %v842_v37, 5  ;;  %v200_v47 = vld [vmem:[%s4253_s17 + $0xa8] sm:$0xf] }
  0x86   : > { %233 = vst.msk [vmem:[#allocation2 + $0x70] sm:$0xf] %vm204_vm5, %v200_v47 }
  0x89   : > { %1034 = vrot.lane.b32.xlu1 %v941_v57, %s4212_s19  ;;  %v836_v57 = vld [vmem:[%s4253_s17 + $0x8c] sm:$0x1] }
  0x8a   : > { %1032 = vrot.lane.b32.xlu0 %v938_v58, %s4212_s19  ;;  %1030 = vrot.lane.b32.xlu2 %v934_v63, %s4212_s19  ;;  %v834_v58 = vld [vmem:[%s4253_s17 + $0x84] sm:$0xe]  ;;  %v982_v62 = vrot.slane %v836_v57, 5  ;;  %v195_v63 = vld [vmem:[%s4253_s17 + $0x88] sm:$0xf] }
  0x8b   : > { %v677_v5 = vpop.permute.xlu1 %676  ;;  %v3774_v2 = vrot.slane %v834_v58, 9  ;;  %228 = vst.msk [vmem:[#allocation2 + $0x5c] sm:$0xf] %vm204_vm5, %v195_v63  ;;  %v1010_v58 = vrot.slane %v848_v53, 5  ;;  %v202_v63 = vld [vmem:[%s4253_s17 + $0xb4] sm:$0xf] }
  0x8c   : > { %771 = vst.msk [vmem:[#allocation2 + $0x8] sm:$0xf] %vm768_vm7, %v677_v5  ;;  %v673_v9 = vpop.permute.xlu0 %672  ;;  %v689_v12 = vpop.permute.xlu2 %688  ;;  %v974_v5 = vrot.slane %v972_v43, 4  ;;  %v983_v10 = vsel %vm4439_vm6, %v981_v61, %v982_v62  ;;  %v847_v43 = vld [vmem:[%s4253_s17 + $0xb8] sm:$0xf] }
  0x8d   : > { %769 = vst.msk [vmem:[#allocation2] sm:$0xf] %vm768_vm7, %v673_v9  ;;  %v193_v9 = vld [vmem:[%s4253_s17 + $0x7c] sm:$0xf]  ;;  %v203_v61 = vld [vmem:[%s4253_s17 + $0xb8] sm:$0xf] }
  0x8e   : > { %777 = vst.msk [vmem:[#allocation2 + $0x20] sm:$0xf] %vm768_vm7, %v689_v12  ;;  %v980_v12 = vsel %vm4439_vm6, %v3774_v2, %v979_v55  ;;  %v846_v55 = vld [vmem:[%s4253_s17 + $0xb4] sm:$0xe]  ;;  %v3812_v53 = vld [vmem:[%s4253_s17 + $0x10] sm:$0xf] }
  0x8f   : > { %226 = vst.msk [vmem:[#allocation2 + $0x54] sm:$0xf] %vm204_vm5, %v193_v9  ;;  %v3778_v60 = vrot.slane %v846_v55, 9  ;;  %v3780_v9 = vld [vmem:[%s4253_s17 + $0x10] sm:$0xf] }
  0x90   : > { %236 = vst.msk [vmem:[#allocation2 + $0x7c] sm:$0xf] %vm204_vm5, %v203_v61  ;;  %v3805_v61 = vld [vmem:[%s4253_s17 + $0xa8] sm:$0xf] }
  0x91   : > { %1040 = vrot.lane.b32.xlu1 %v952_v14, %s4212_s19  ;;  %v986_v14 = vrot.slane %v838_v3, 5  ;;  %235 = vst.msk [vmem:[#allocation2 + $0x78] sm:$0xf] %vm204_vm5, %v202_v63 }
  0x92   : > { %1038 = vrot.lane.b32.xlu0 %v948_v16, %s4212_s19  ;;  %1036 = vrot.lane.b32.xlu2 %v945_v19, %s4212_s19  ;;  %v976_v16 = vsel %vm4439_vm6, %v974_v5, %v975_v6  ;;  %v993_v19 = vrot.slane %v841_v13, 5  ;;  %v3785_v13 = vld [vmem:[%s4253_s17 + $0x30] sm:$0xf] }
  0x93   : > { %v679_v24 = vpop.permute.xlu1 %678  ;;  %v988_v22 = vrot.slane %v986_v14, 4 }
  0x94   : > { %772 = vst.msk [vmem:[#allocation2 + $0xc] sm:$0xf] %vm768_vm7, %v679_v24  ;;  %v675_v28 = vpop.permute.xlu0 %674  ;;  %v695_v32 = vpop.permute.xlu2 %694  ;;  %v844_v24 = vld [vmem:[%s4253_s17 + $0xac] sm:$0xf]  ;;  %v994_v31 = vsel %vm4439_vm6, %v3776_v18, %v993_v19 }
  0x95   : > { %770 = vst.msk [vmem:[#allocation2 + $0x4] sm:$0xf] %vm768_vm7, %v675_v28  ;;  %v197_v28 = vld [vmem:[%s4253_s17 + $0x94] sm:$0xf]  ;;  %v990_v33 = vsel %vm4439_vm6, %v988_v22, %v989_v23 }
  0x96   : > { %780 = vst.msk [vmem:[#allocation2 + $0x2c] sm:$0xf] %vm768_vm7, %v695_v32  ;;  %v1000_v32 = vrot.slane %v844_v24, 5 }
  0x97   : > { %230 = vst.msk [vmem:[#allocation2 + $0x64] sm:$0xf] %vm204_vm5, %v197_v28  ;;  %v3789_v28 = vld [vmem:[%s4253_s17 + $0x48] sm:$0xf] }
  0x98   : > { %v1002_v38 = vrot.slane %v1000_v32, 4  ;;  %v1001_v51 = vsel %vm4439_vm6, %v3777_v42, %v1000_v32  ;;  %v3794_v32 = vld [vmem:[%s4253_s17 + $0x64] sm:$0xf] }
  0x99   : > { %1046 = vrot.lane.b32.xlu1 %v962_v34, %s4212_s19  ;;  %v845_v34 = vld [vmem:[%s4253_s17 + $0xb0] sm:$0x1] }
  0x9a   : > { %1044 = vrot.lane.b32.xlu0 %v959_v36, %s4212_s19  ;;  %1042 = vrot.lane.b32.xlu2 %v955_v40, %s4212_s19  ;;  %v987_v36 = vsel %vm4439_vm6, %v3775_v27, %v986_v14  ;;  %v1003_v39 = vrot.slane %v845_v34, 5  ;;  %v201_v40 = vld [vmem:[%s4253_s17 + $0xac] sm:$0xf]  ;;  %v3784_v14 = vld [vmem:[%s4253_s17 + $0x28] sm:$0xf] }
  0x9b   : > { %v687_v45 = vpop.permute.xlu1 %686  ;;  %234 = vst.msk [vmem:[#allocation2 + $0x74] sm:$0xf] %vm204_vm5, %v201_v40  ;;  %v3790_v27 = vld [vmem:[%s4253_s17 + $0x4c] sm:$0xf]  ;;  %v3792_v34 = vld [vmem:[%s4253_s17 + $0x58] sm:$0xf] }
  0x9c   : > { %776 = vst.msk [vmem:[#allocation2 + $0x1c] sm:$0xf] %vm768_vm7, %v687_v45  ;;  %v685_v49 = vpop.permute.xlu0 %684  ;;  %v701_v52 = vpop.permute.xlu2 %700  ;;  %v995_v45 = vrot.slane %v993_v19, 4  ;;  %v1004_v50 = vsel %vm4439_vm6, %v1002_v38, %v1003_v39  ;;  %v3788_v19 = vld [vmem:[%s4253_s17 + $0x40] sm:$0xf] }
  0x9d   : > { %775 = vst.msk [vmem:[#allocation2 + $0x18] sm:$0xf] %vm768_vm7, %v685_v49  ;;  %v199_v49 = vld [vmem:[%s4253_s17 + $0xa0] sm:$0xf]  ;;  %v3797_v38 = vld [vmem:[%s4253_s17 + $0x78] sm:$0xf] }
  0x9e   : > { %783 = vst.msk [vmem:[#allocation2 + $0x38] sm:$0xf] %vm768_vm7, %v701_v52  ;;  %v1007_v52 = vrot.slane %v847_v43, 5  ;;  %v3796_v39 = vld [vmem:[%s4253_s17 + $0x70] sm:$0xf] }
  0x9f   : > { %232 = vst.msk [vmem:[#allocation2 + $0x6c] sm:$0xf] %vm204_vm5, %v199_v49  ;;  %v3795_v40 = vld [vmem:[%s4253_s17 + $0x6c] sm:$0xf] }
  0xa0   : > { %v1009_v57 = vrot.slane %v1007_v52, 4  ;;  %v1008_v3 = vsel %vm4439_vm6, %v3778_v60, %v1007_v52  ;;  %v3801_v52 = vld [vmem:[%s4253_s17 + $0x90] sm:$0xf]  ;;  %v3806_v60 = vld [vmem:[%s4253_s17 + $0xac] sm:$0xf] }
  0xa1   : > { %1052 = vrot.lane.b32.xlu1 %v973_v54, %s4212_s19  ;;  %v997_v54 = vsel %vm4439_vm6, %v995_v45, %v996_v46  ;;  %v3799_v45 = vld [vmem:[%s4253_s17 + $0x84] sm:$0xf]  ;;  %v3798_v46 = vld [vmem:[%s4253_s17 + $0x7c] sm:$0xf] }
  0xa2   : > { %1050 = vrot.lane.b32.xlu0 %v969_v56, %s4212_s19  ;;  %1048 = vrot.lane.b32.xlu2 %v966_v59, %s4212_s19  ;;  %v1011_v2 = vsel %vm4439_vm6, %v1009_v57, %v1010_v58  ;;  %v1393_v58 = vshll.u32 %v3812_v53, 16 }
  0xa3   : > { %v693_v0 = vpop.permute.xlu1 %692 }
  0xa4   : > { %779 = vst.msk [vmem:[#allocation2 + $0x28] sm:$0xf] %vm768_vm7, %v693_v0  ;;  %v691_v4 = vpop.permute.xlu0 %690  ;;  %v707_v8 = vpop.permute.xlu2 %706  ;;  %v3779_v0 = vld [vmem:[%s4253_s17 + $0xc] sm:$0xf] }
  0xa5   : > { %778 = vst.msk [vmem:[#allocation2 + $0x24] sm:$0xf] %vm768_vm7, %v691_v4 }
  0xa6   : > { %786 = vst.msk [vmem:[#allocation2 + $0x44] sm:$0xf] %vm768_vm7, %v707_v8  ;;  %v3781_v8 = vld [vmem:[%s4253_s17 + $0x18] sm:$0xf] }
  0xa9   : > { %1058 = vrot.lane.b32.xlu1 %v983_v10, %s4212_s19 }
  0xaa   : > { %1056 = vrot.lane.b32.xlu0 %v980_v12, %s4212_s19  ;;  %1054 = vrot.lane.b32.xlu2 %v976_v16, %s4212_s19 }
  0xab   : > { %v699_v21 = vpop.permute.xlu1 %698 }
  0xac   : > { %782 = vst.msk [vmem:[#allocation2 + $0x34] sm:$0xf] %vm768_vm7, %v699_v21  ;;  %v697_v26 = vpop.permute.xlu0 %696  ;;  %v713_v29 = vpop.permute.xlu2 %712  ;;  %v3786_v21 = vld [vmem:[%s4253_s17 + $0x34] sm:$0xf] }
  0xad   : > { %781 = vst.msk [vmem:[#allocation2 + $0x30] sm:$0xf] %vm768_vm7, %v697_v26  ;;  %v3791_v26 = vld [vmem:[%s4253_s17 + $0x54] sm:$0xf] }
  0xae   : > { %789 = vst.msk [vmem:[#allocation2 + $0x50] sm:$0xf] %vm768_vm7, %v713_v29 }
  0xb1   : > { %1064 = vrot.lane.b32.xlu1 %v994_v31, %s4212_s19 }
  0xb2   : > { %1062 = vrot.lane.b32.xlu0 %v990_v33, %s4212_s19  ;;  %1060 = vrot.lane.b32.xlu2 %v987_v36, %s4212_s19  ;;  %v3793_v33 = vld [vmem:[%s4253_s17 + $0x60] sm:$0xf] }
  0xb3   : > { %v705_v41 = vpop.permute.xlu1 %704 }
  0xb4   : > { %785 = vst.msk [vmem:[#allocation2 + $0x40] sm:$0xf] %vm768_vm7, %v705_v41  ;;  %v703_v44 = vpop.permute.xlu0 %702  ;;  %v719_v48 = vpop.permute.xlu2 %718 }
  0xb5   : > { %784 = vst.msk [vmem:[#allocation2 + $0x3c] sm:$0xf] %vm768_vm7, %v703_v44  ;;  %v3800_v44 = vld [vmem:[%s4253_s17 + $0x88] sm:$0xf] }
  0xb6   : > { %792 = vst.msk [vmem:[#allocation2 + $0x5c] sm:$0xf] %vm768_vm7, %v719_v48 }
  0xb9   : > { %1070 = vrot.lane.b32.xlu1 %v1004_v50, %s4212_s19  ;;  %v3803_v50 = vld [vmem:[%s4253_s17 + $0x9c] sm:$0xf] }
  0xba   : > { %1068 = vrot.lane.b32.xlu0 %v1001_v51, %s4212_s19  ;;  %1066 = vrot.lane.b32.xlu2 %v997_v54, %s4212_s19  ;;  %v3802_v51 = vld [vmem:[%s4253_s17 + $0x94] sm:$0xf] }
  0xbb   : > { %v711_v56 = vpop.permute.xlu1 %710 }
  0xbc   : > { %788 = vst.msk [vmem:[#allocation2 + $0x4c] sm:$0xf] %vm768_vm7, %v711_v56  ;;  %v709_v59 = vpop.permute.xlu0 %708  ;;  %v725_v62 = vpop.permute.xlu2 %724  ;;  %v3811_v56 = vld [vmem:[%s4253_s17 + $0xc] sm:$0xf] }
  0xbd   : > { %787 = vst.msk [vmem:[#allocation2 + $0x48] sm:$0xf] %vm768_vm7, %v709_v59  ;;  %v1397_v59 = vshrl.u32 %v3812_v53, 16  ;;  %v1387_v63 = vshll.u32 %v3811_v56, 16  ;;  %v3810_v53 = vld [vmem:[%s4253_s17 + $0xc4] sm:$0xf] }
  0xbe   : > { %795 = vst.msk [vmem:[#allocation2 + $0x68] sm:$0xf] %vm768_vm7, %v725_v62  ;;  %v1384_v62 = vshrl.u32 %v3811_v56, 16 }
  0xc1   : > { %1206 = vrot.lane.b32.xlu1 %v3779_v0, %s4213_s20  ;;  %v3804_v0 = vld [vmem:[%s4253_s17 + $0xa0] sm:$0xf] }
  0xc2   : > { %1074 = vrot.lane.b32.xlu0 %v1011_v2, %s4212_s19  ;;  %1072 = vrot.lane.b32.xlu2 %v1008_v3, %s4212_s19  ;;  %v4751_v2 = vrot.slane %v1393_v58, 5  ;;  %v1399_v3 = vrot.slane %v1397_v59, 4 }
  0xc3   : > { %v717_v4 = vpop.permute.xlu1 %716 }
  0xc4   : > { %791 = vst.msk [vmem:[#allocation2 + $0x58] sm:$0xf] %vm768_vm7, %v717_v4  ;;  %v715_v5 = vpop.permute.xlu0 %714  ;;  %v731_v6 = vpop.permute.xlu2 %730  ;;  %v3813_v4 = vld [vmem:[%s4253_s17 + $0x14] sm:$0x1] }
  0xc5   : > { %790 = vst.msk [vmem:[#allocation2 + $0x54] sm:$0xf] %vm768_vm7, %v715_v5 }
  0xc6   : > { %798 = vst.msk [vmem:[#allocation2 + $0x74] sm:$0xf] %vm768_vm7, %v731_v6  ;;  %v1386_v6 = vrot.slane %v1384_v62, 4  ;;  %v3826_v62 = vld [vmem:[%s4253_s17 + $0x48] sm:$0xf] }
  0xc9   : > { %1212 = vrot.lane.b32.xlu1 %v3782_v7, %s4213_s20  ;;  %v1389_v7 = vrot.slane %v1387_v63, 5 }
  0xca   : > { %1210 = vrot.lane.b32.xlu0 %v3781_v8, %s4213_s20  ;;  %1208 = vrot.lane.b32.xlu2 %v3780_v9, %s4213_s20  ;;  %v3817_v8 = vld [vmem:[%s4253_s17 + $0x24] sm:$0xf] }
  0xcb   : > { %v723_v10 = vpop.permute.xlu1 %722 }
  0xcc   : > { %794 = vst.msk [vmem:[#allocation2 + $0x64] sm:$0xf] %vm768_vm7, %v723_v10  ;;  %v721_v11 = vpop.permute.xlu0 %720  ;;  %v1013_v12 = vpop.permute.xlu2 %1012  ;;  %v3815_v10 = vld [vmem:[%s4253_s17 + $0x1c] sm:$0xf] }
  0xcd   : > { %793 = vst.msk [vmem:[#allocation2 + $0x60] sm:$0xf] %vm768_vm7, %v721_v11  ;;  %v1400_v11 = vor.u32 %v1399_v3, %v4751_v2  ;;  %v3824_v3 = vld [vmem:[%s4253_s17 + $0x40] sm:$0xf] }
  0xce   : > { %1109 = vst.msk [vmem:[#allocation2] sm:$0xf] %vm1108_vm8, %v1013_v12  ;;  %v1403_v12 = vshll.u32 %v3813_v4, 16 }
  0xd1   : > { %1218 = vrot.lane.b32.xlu1 %v3785_v13, %s4213_s20 }
  0xd2   : > { %1216 = vrot.lane.b32.xlu0 %v3784_v14, %s4213_s20  ;;  %1214 = vrot.lane.b32.xlu2 %v3783_v15, %s4213_s20  ;;  %v3814_v14 = vld [vmem:[%s4253_s17 + $0x18] sm:$0xf]  ;;  %v3809_v15 = vld [vmem:[%s4253_s17 + $0xc0] sm:$0xf] }
  0xd3   : > { %v729_v16 = vpop.permute.xlu1 %728 }
  0xd4   : > { %797 = vst.msk [vmem:[#allocation2 + $0x70] sm:$0xf] %vm768_vm7, %v729_v16  ;;  %v727_v17 = vpop.permute.xlu0 %726  ;;  %v1019_v18 = vpop.permute.xlu2 %1018  ;;  %v1432_v16 = vshrl.u32 %v3817_v8, 16 }
  0xd5   : > { %796 = vst.msk [vmem:[#allocation2 + $0x6c] sm:$0xf] %vm768_vm7, %v727_v17  ;;  %v1435_v17 = vshll.u32 %v3817_v8, 16 }
  0xd6   : > { %1112 = vst.msk [vmem:[#allocation2 + $0xc] sm:$0xf] %vm1108_vm8, %v1019_v18  ;;  %v3808_v18 = vld [vmem:[%s4253_s17 + $0xb8] sm:$0xf] }
  0xd9   : > { %1224 = vrot.lane.b32.xlu1 %v3788_v19, %s4213_s20  ;;  %v1390_v19 = vor.u32 %v1389_v7, %v1386_v6  ;;  %v3823_v7 = vld [vmem:[%s4253_s17 + $0x3c] sm:$0xf] }
  0xda   : > { %1222 = vrot.lane.b32.xlu0 %v3787_v20, %s4213_s20  ;;  %1220 = vrot.lane.b32.xlu2 %v3786_v21, %s4213_s20  ;;  %v1417_v20 = vshll.u32 %v3815_v10, 16  ;;  %v1421_v21 = vshrl.u32 %v3815_v10, 16 }
  0xdb   : > { %v735_v22 = vpop.permute.xlu1 %734 }
  0xdc   : > { %800 = vst.msk [vmem:[#allocation2 + $0x7c] sm:$0xf] %vm768_vm7, %v735_v22  ;;  %v733_v23 = vpop.permute.xlu0 %732  ;;  %v1025_v24 = vpop.permute.xlu2 %1024  ;;  %v3807_v22 = vld [vmem:[%s4253_s17 + $0xb4] sm:$0xf] }
  0xdd   : > { %799 = vst.msk [vmem:[#allocation2 + $0x78] sm:$0xf] %vm768_vm7, %v733_v23  ;;  %v1408_v23 = vshrl.u32 %v3814_v14, 16 }
  0xde   : > { %1115 = vst.msk [vmem:[#allocation2 + $0x18] sm:$0xf] %vm1108_vm8, %v1025_v24  ;;  %v1411_v24 = vshll.u32 %v3814_v14, 16 }
  0xe1   : > { %1230 = vrot.lane.b32.xlu1 %v3791_v26, %s4213_s20  ;;  %v1401_v26 = vrot.slane %v1400_v11, 4 }
  0xe2   : > { %1228 = vrot.lane.b32.xlu0 %v3790_v27, %s4213_s20  ;;  %1226 = vrot.lane.b32.xlu2 %v3789_v28, %s4213_s20  ;;  %v1405_v27 = vrot.slane %v1403_v12, 5  ;;  %v1434_v28 = vrot.slane %v1432_v16, 4  ;;  %v1504_v12 = vshrl.u32 %v3826_v62, 16  ;;  %v1489_v16 = vshll.u32 %v3824_v3, 16 }
  0xe3   : > { %v1017_v29 = vpop.permute.xlu1 %1016 }
  0xe4   : > { %1111 = vst.msk [vmem:[#allocation2 + $0x8] sm:$0xf] %vm1108_vm8, %v1017_v29  ;;  %v1015_v30 = vpop.permute.xlu0 %1014  ;;  %v1031_v31 = vpop.permute.xlu2 %1030  ;;  %v1437_v29 = vrot.slane %v1435_v17, 5  ;;  %v1493_v17 = vshrl.u32 %v3824_v3, 16 }
  0xe5   : > { %1110 = vst.msk [vmem:[#allocation2 + $0x4] sm:$0xf] %vm1108_vm8, %v1015_v30  ;;  %v3821_v30 = vld [vmem:[%s4253_s17 + $0x34] sm:$0xf] }
  0xe6   : > { %1118 = vst.msk [vmem:[#allocation2 + $0x24] sm:$0xf] %vm1108_vm8, %v1031_v31  ;;  %v3820_v31 = vld [vmem:[%s4253_s17 + $0x30] sm:$0xf] }
  0xe9   : > { %1236 = vrot.lane.b32.xlu1 %v3794_v32, %s4213_s20 }
  0xea   : > { %1234 = vrot.lane.b32.xlu0 %v3793_v33, %s4213_s20  ;;  %1232 = vrot.lane.b32.xlu2 %v3792_v34, %s4213_s20  ;;  %v1391_v33 = vrot.slane %v1390_v19, 4  ;;  %v3818_v34 = vld [vmem:[%s4253_s17 + $0x28] sm:$0xf]  ;;  %v3830_v19 = vld [vmem:[%s4253_s17 + $0x58] sm:$0xf] }
  0xeb   : > { %v1023_v35 = vpop.permute.xlu1 %1022 }
  0xec   : > { %1114 = vst.msk [vmem:[#allocation2 + $0x14] sm:$0xf] %vm1108_vm8, %v1023_v35  ;;  %v1021_v36 = vpop.permute.xlu0 %1020  ;;  %v1037_v37 = vpop.permute.xlu2 %1036  ;;  %v4772_v35 = vrot.slane %v1417_v20, 5  ;;  %v1480_v20 = vshrl.u32 %v3823_v7, 16 }
  0xed   : > { %1113 = vst.msk [vmem:[#allocation2 + $0x10] sm:$0xf] %vm1108_vm8, %v1021_v36  ;;  %v1423_v36 = vrot.slane %v1421_v21, 4  ;;  %v1483_v21 = vshll.u32 %v3823_v7, 16  ;;  %v3833_v7 = vld [vmem:[%s4253_s17 + $0x64] sm:$0xf] }
  0xee   : > { %1121 = vst.msk [vmem:[#allocation2 + $0x30] sm:$0xf] %vm1108_vm8, %v1037_v37 }
  0xf1   : > { %1242 = vrot.lane.b32.xlu1 %v3797_v38, %s4213_s20  ;;  %v3816_v38 = vld [vmem:[%s4253_s17 + $0x20] sm:$0x1] }
  0xf2   : > { %1240 = vrot.lane.b32.xlu0 %v3796_v39, %s4213_s20  ;;  %1238 = vrot.lane.b32.xlu2 %v3795_v40, %s4213_s20  ;;  %v1410_v39 = vrot.slane %v1408_v23, 4  ;;  %v1413_v40 = vrot.slane %v1411_v24, 5 }
  0xf3   : > { %v1029_v41 = vpop.permute.xlu1 %1028 }
  0xf4   : > { %1117 = vst.msk [vmem:[#allocation2 + $0x20] sm:$0xf] %vm1108_vm8, %v1029_v41  ;;  %v1027_v42 = vpop.permute.xlu0 %1026  ;;  %v1043_v43 = vpop.permute.xlu2 %1042 }
  0xf5   : > { %1116 = vst.msk [vmem:[#allocation2 + $0x1c] sm:$0xf] %vm1108_vm8, %v1027_v42  ;;  %v1465_v42 = vshll.u32 %v3821_v30, 16 }
  0xf6   : > { %1124 = vst.msk [vmem:[#allocation2 + $0x3c] sm:$0xf] %vm1108_vm8, %v1043_v43  ;;  %v1469_v43 = vshrl.u32 %v3821_v30, 16  ;;  %v1506_v30 = vrot.slane %v1504_v12, 4 }
  0xf8   : > { %v1471_v56 = vrot.slane %v1469_v43, 4 }
  0xf9   : > { %1248 = vrot.lane.b32.xlu1 %v3800_v44, %s4213_s20  ;;  %v1456_v44 = vshrl.u32 %v3820_v31, 16 }
  0xfa   : > { %1246 = vrot.lane.b32.xlu0 %v3799_v45, %s4213_s20  ;;  %1244 = vrot.lane.b32.xlu2 %v3798_v46, %s4213_s20  ;;  %v1459_v45 = vshll.u32 %v3820_v31, 16  ;;  %v1406_v46 = vsel %vm4264_vm2, %v1401_v26, %v1405_v27 }
  0xfb   : > { %v1035_v47 = vpop.permute.xlu1 %1034 }
  0xfc   : > { %1120 = vst.msk [vmem:[#allocation2 + $0x2c] sm:$0xf] %vm1108_vm8, %v1035_v47  ;;  %v1033_v48 = vpop.permute.xlu0 %1032  ;;  %v1049_v49 = vpop.permute.xlu2 %1048  ;;  %v1438_v47 = vor.u32 %v1437_v29, %v1434_v28  ;;  %v1461_v58 = vrot.slane %v1459_v45, 5  ;;  %v3827_v29 = vld [vmem:[%s4253_s17 + $0x4c] sm:$0xf] }
  0xfd   : > { %1119 = vst.msk [vmem:[#allocation2 + $0x28] sm:$0xf] %vm1108_vm8, %v1033_v48  ;;  %v1441_v48 = vshll.u32 %v3818_v34, 16 }
  0xfe   : > { %1127 = vst.msk [vmem:[#allocation2 + $0x48] sm:$0xf] %vm1108_vm8, %v1049_v49  ;;  %v1396_v49 = vsel %vm4264_vm2, %v1391_v33, %v4751_v2  ;;  %v1439_v59 = vrot.slane %v1438_v47, 4  ;;  %v4811_v33 = vrot.slane %v1489_v16, 5 }
 0x101   : > { %1254 = vrot.lane.b32.xlu1 %v3803_v50, %s4213_s20  ;;  %v1424_v50 = vor.u32 %v1423_v36, %v4772_v35  ;;  %v1537_v36 = vshll.u32 %v3830_v19, 16 }
 0x102   : > { %1252 = vrot.lane.b32.xlu0 %v3802_v51, %s4213_s20  ;;  %1250 = vrot.lane.b32.xlu2 %v3801_v52, %s4213_s20  ;;  %v1427_v51 = vshll.u32 %v3816_v38, 16  ;;  %v1445_v52 = vshrl.u32 %v3818_v34, 16  ;;  %v1495_v34 = vrot.slane %v1493_v17, 4  ;;  %v3829_v38 = vld [vmem:[%s4253_s17 + $0x54] sm:$0xf]  ;;  %v1561_v17 = vshll.u32 %v3833_v7, 16 }
 0x103   : > { %v1041_v54 = vpop.permute.xlu1 %1040 }
 0x104   : > { %1123 = vst.msk [vmem:[#allocation2 + $0x38] sm:$0xf] %vm1108_vm8, %v1041_v54  ;;  %v1039_v55 = vpop.permute.xlu0 %1038  ;;  %v1055_v57 = vpop.permute.xlu2 %1054  ;;  %v1414_v54 = vor.u32 %v1413_v40, %v1410_v39  ;;  %v1429_v2 = vrot.slane %v1427_v51, 5  ;;  %v1447_v6 = vrot.slane %v1445_v52, 4  ;;  %v1482_v39 = vrot.slane %v1480_v20, 4 }
 0x105   : > { %1122 = vst.msk [vmem:[#allocation2 + $0x34] sm:$0xf] %vm1108_vm8, %v1039_v55  ;;  %v4786_v55 = vrot.slane %v1465_v42, 5  ;;  %v1485_v40 = vrot.slane %v1483_v21, 5  ;;  %v1528_v51 = vshrl.u32 %v3829_v38, 16  ;;  %v4824_v52 = vrot.slane %v1537_v36, 5 }
 0x106   : > { %1130 = vst.msk [vmem:[#allocation2 + $0x54] sm:$0xf] %vm1108_vm8, %v1055_v57  ;;  %v1458_v57 = vrot.slane %v1456_v44, 4 }
 0x107   : > { %v1472_v8 = vor.u32 %v1471_v56, %v4786_v55  ;;  %v1486_v56 = vor.u32 %v1485_v40, %v1482_v39 }
 0x108   : > { %v1462_v10 = vor.u32 %v1461_v58, %v1458_v57  ;;  %v1517_v57 = vshrl.u32 %v3827_v29, 16 }
 0x109   : > { %1260 = vrot.lane.b32.xlu1 %v3806_v60, %s4213_s20  ;;  %v1443_v60 = vrot.slane %v1441_v48, 5  ;;  %v1473_v26 = vrot.slane %v1472_v8, 4 }
 0x10a   : > { %1258 = vrot.lane.b32.xlu0 %v3805_v61, %s4213_s20  ;;  %1256 = vrot.lane.b32.xlu2 %v3804_v0, %s4213_s20  ;;  %v3822_v61 = vld [vmem:[%s4253_s17 + $0x38] sm:$0x1]  ;;  %v1425_v0 = vrot.slane %v1424_v50, 4  ;;  %v1463_v28 = vrot.slane %v1462_v10, 4 }
 0x10b   : > { %v1047_v5 = vpop.permute.xlu1 %1046  ;;  %v1444_v14 = vsel %vm4264_vm2, %v1439_v59, %v1443_v60  ;;  %v1448_v23 = vor.u32 %v1447_v6, %v1443_v60  ;;  %v3835_v60 = vld [vmem:[%s4253_s17 + $0x6c] sm:$0xf]  ;;  %v1487_v6 = vrot.slane %v1486_v56, 4 }
 0x10c   : > { %1126 = vst.msk [vmem:[#allocation2 + $0x44] sm:$0xf] %vm1108_vm8, %v1047_v5  ;;  %v1045_v9 = vpop.permute.xlu0 %1044  ;;  %v1061_v13 = vpop.permute.xlu2 %1060  ;;  %v1415_v5 = vrot.slane %v1414_v54, 4  ;;  %v1468_v45 = vsel %vm4264_vm2, %v1463_v28, %v4786_v55  ;;  %v1531_v54 = vshll.u32 %v3829_v38, 16  ;;  %v3831_v55 = vld [vmem:[%s4253_s17 + $0x5c] sm:$0x1] }
 0x10d   : > { %1125 = vst.msk [vmem:[#allocation2 + $0x40] sm:$0xf] %vm1108_vm8, %v1045_v9  ;;  %v1475_v9 = vshll.u32 %v3822_v61, 16  ;;  %v1449_v42 = vrot.slane %v1448_v23, 4  ;;  %v1579_v10 = vshll.u32 %v3835_v60, 16 }
 0x10e   : > { %1133 = vst.msk [vmem:[#allocation2 + $0x60] sm:$0xf] %vm1108_vm8, %v1061_v13  ;;  %v3819_v13 = vld [vmem:[%s4253_s17 + $0x2c] sm:$0x1]  ;;  %v3834_v38 = vld [vmem:[%s4253_s17 + $0x68] sm:$0x1] }
 0x10f   : > { %v1451_v24 = vshll.u32 %v3819_v13, 16  ;;  %v1477_v27 = vrot.slane %v1475_v9, 5  ;;  %v1576_v9 = vshrl.u32 %v3835_v60, 16  ;;  %v3828_v13 = vld [vmem:[%s4253_s17 + $0x50] sm:$0x1] }
 0x111   : > { %1266 = vrot.lane.b32.xlu1 %v3809_v15, %s4213_s20  ;;  %v1507_v15 = vshll.u32 %v3826_v62, 16  ;;  %v1453_v43 = vrot.slane %v1451_v24, 5  ;;  %v1478_v44 = vsel %vm4264_vm2, %v1473_v26, %v1477_v27  ;;  %v1523_v24 = vshll.u32 %v3828_v13, 16 }
 0x112   : > { %1264 = vrot.lane.b32.xlu0 %v3808_v18, %s4213_s20  ;;  %1262 = vrot.lane.b32.xlu2 %v3807_v22, %s4213_s20  ;;  %v1430_v18 = vsel %vm4264_vm2, %v1425_v0, %v1429_v2  ;;  %v1420_v22 = vsel %vm4264_vm2, %v1415_v5, %v4772_v35  ;;  %v1541_v35 = vshrl.u32 %v3830_v19, 16  ;;  %v1530_v0 = vrot.slane %v1528_v51, 4 }
 0x113   : > { %v1053_v32 = vpop.permute.xlu1 %1052  ;;  %v1509_v31 = vrot.slane %v1507_v15, 5  ;;  %v1454_v58 = vsel %vm4264_vm2, %v1449_v42, %v1453_v43  ;;  %v1533_v5 = vrot.slane %v1531_v54, 5  ;;  %v1578_v28 = vrot.slane %v1576_v9, 4  ;;  %v3841_v9 = vld [vmem:[%s4253_s17 + $0x84] sm:$0xf] }
 0x114   : > { %1129 = vst.msk [vmem:[#allocation2 + $0x50] sm:$0xf] %vm1108_vm8, %v1053_v32  ;;  %v1051_v37 = vpop.permute.xlu0 %1050  ;;  %v1067_v41 = vpop.permute.xlu2 %1066  ;;  %v3825_v32 = vld [vmem:[%s4253_s17 + $0x44] sm:$0x1] }
 0x115   : > { %1128 = vst.msk [vmem:[#allocation2 + $0x4c] sm:$0xf] %vm1108_vm8, %v1051_v37  ;;  %v1510_v48 = vor.u32 %v1509_v31, %v1506_v30  ;;  %v1499_v50 = vshll.u32 %v3825_v32, 16  ;;  %v1534_v21 = vor.u32 %v1533_v5, %v1530_v0  ;;  %v4849_v30 = vrot.slane %v1561_v17, 5  ;;  %v3839_v32 = vld [vmem:[%s4253_s17 + $0x7c] sm:$0xf] }
 0x116   : > { %1136 = vst.msk [vmem:[#allocation2 + $0x6c] sm:$0xf] %vm1108_vm8, %v1067_v41  ;;  %v3842_v5 = vld [vmem:[%s4253_s17 + $0x88] sm:$0xf] }
 0x117   : > { %v1511_v61 = vrot.slane %v1510_v48, 4 }
 0x119   : > { %1769 = vrot.lane.b32.xlu1 %v1406_v46, %s4214_s21  ;;  %v1513_v46 = vshll.u32 %v3827_v29, 16  ;;  %v1581_v29 = vrot.slane %v1579_v10, 5 }
 0x11a   : > { %1767 = vrot.lane.b32.xlu0 %v1396_v49, %s4214_s21  ;;  %1268 = vrot.lane.b32.xlu2 %v3810_v53, %s4213_s20  ;;  %v1496_v49 = vor.u32 %v1495_v34, %v4811_v33  ;;  %v1543_v53 = vrot.slane %v1541_v35, 4  ;;  %v3838_v34 = vld [vmem:[%s4253_s17 + $0x78] sm:$0xf]  ;;  %v3836_v35 = vld [vmem:[%s4253_s17 + $0x70] sm:$0xf] }
 0x11b   : > { %v1059_v63 = vpop.permute.xlu1 %1058  ;;  %v1515_v59 = vrot.slane %v1513_v46, 5  ;;  %v1613_v46 = vshrl.u32 %v3839_v32, 16  ;;  %v1603_v48 = vshll.u32 %v3838_v34, 16  ;;  %v1589_v56 = vshrl.u32 %v3836_v35, 16 }
 0x11c   : > { %1132 = vst.msk [vmem:[#allocation2 + $0x5c] sm:$0xf] %vm1108_vm8, %v1059_v63  ;;  %v1057_v4 = vpop.permute.xlu0 %1056  ;;  %v1073_v11 = vpop.permute.xlu2 %1072  ;;  %v1497_v62 = vrot.slane %v1496_v49, 4  ;;  %v1501_v63 = vrot.slane %v1499_v50, 5  ;;  %v1544_v3 = vor.u32 %v1543_v53, %v4824_v52  ;;  %v1582_v49 = vor.u32 %v1581_v29, %v1578_v28 }
 0x11d   : > { %1131 = vst.msk [vmem:[#allocation2 + $0x58] sm:$0xf] %vm1108_vm8, %v1057_v4  ;;  %v1547_v4 = vshll.u32 %v3831_v55, 16  ;;  %v1516_v15 = vsel %vm4264_vm2, %v1511_v61, %v1515_v59  ;;  %v1585_v50 = vshll.u32 %v3836_v35, 16  ;;  %v1571_v53 = vshll.u32 %v3834_v38, 16 }
 0x11e   : > { %1139 = vst.msk [vmem:[#allocation2 + $0x78] sm:$0xf] %vm1108_vm8, %v1073_v11  ;;  %v1519_v11 = vrot.slane %v1517_v57, 4  ;;  %v1502_v16 = vsel %vm4264_vm2, %v1497_v62, %v1501_v63  ;;  %v1545_v19 = vrot.slane %v1544_v3, 4  ;;  %v1605_v61 = vrot.slane %v1603_v48, 5 }
 0x11f   : > { %v1549_v20 = vrot.slane %v1547_v4, 5  ;;  %v1583_v62 = vrot.slane %v1582_v49, 4  ;;  %v1587_v63 = vrot.slane %v1585_v50, 5  ;;  %v1573_v0 = vrot.slane %v1571_v53, 5  ;;  %v3844_v4 = vld [vmem:[%s4253_s17 + $0x90] sm:$0xf] }
 0x120   : > { %v1520_v23 = vor.u32 %v1519_v11, %v1515_v59  ;;  %v1615_v59 = vrot.slane %v1613_v46, 4  ;;  %v1648_v17 = vshrl.u32 %v3844_v4, 16 }
 0x121   : > { %1775 = vrot.lane.b32.xlu1 %v1444_v14, %s4214_s21  ;;  %v3832_v14 = vld [vmem:[%s4253_s17 + $0x60] sm:$0xf] }
 0x122   : > { %1773 = vrot.lane.b32.xlu0 %v1430_v18, %s4214_s21  ;;  %1771 = vrot.lane.b32.xlu2 %v1420_v22, %s4214_s21  ;;  %v1565_v18 = vshrl.u32 %v3833_v7, 16  ;;  %v1492_v22 = vsel %vm4264_vm2, %v1487_v6, %v4811_v33  ;;  %v1552_v26 = vshrl.u32 %v3832_v14, 16  ;;  %v1555_v27 = vshll.u32 %v3832_v14, 16  ;;  %v3837_v14 = vld [vmem:[%s4253_s17 + $0x74] sm:$0x1] }
 0x123   : > { %v1065_v37 = vpop.permute.xlu1 %1064  ;;  %v1550_v33 = vsel %vm4264_vm2, %v1545_v19, %v1549_v20  ;;  %v1521_v40 = vrot.slane %v1520_v23, 4  ;;  %v1633_v19 = vshll.u32 %v3842_v5, 16  ;;  %v1637_v20 = vshrl.u32 %v3842_v5, 16 }
 0x124   : > { %1135 = vst.msk [vmem:[#allocation2 + $0x68] sm:$0xf] %vm1108_vm8, %v1065_v37  ;;  %v1063_v41 = vpop.permute.xlu0 %1062  ;;  %v1209_v47 = vpop.permute.xlu2 %1208  ;;  %v1567_v31 = vrot.slane %v1565_v18, 4  ;;  %v1535_v37 = vrot.slane %v1534_v21, 4  ;;  %v1554_v42 = vrot.slane %v1552_v26, 4  ;;  %v1557_v43 = vrot.slane %v1555_v27, 5 }
 0x125   : > { %1134 = vst.msk [vmem:[#allocation2 + $0x64] sm:$0xf] %vm1108_vm8, %v1063_v41  ;;  %v1525_v41 = vrot.slane %v1523_v24, 5  ;;  %v1651_v18 = vshll.u32 %v3844_v4, 16  ;;  %v1624_v21 = vshrl.u32 %v3841_v9, 16  ;;  %v1595_v26 = vshll.u32 %v3837_v14, 16 }
 0x126   : > { %1304 = vst.msk [vmem:[#allocation2 + $0x4] sm:$0xf] %vm1302_vm9, %v1209_v47  ;;  %v1600_v47 = vshrl.u32 %v3838_v34, 16  ;;  %v1568_v51 = vor.u32 %v1567_v31, %v4849_v30  ;;  %v1540_v54 = vsel %vm4264_vm2, %v1535_v37, %v4824_v52  ;;  %v1650_v31 = vrot.slane %v1648_v17, 4  ;;  %v3848_v34 = vld [vmem:[%s4253_s17 + $0xa0] sm:$0xf] }
 0x127   : > { %v1526_v57 = vsel %vm4264_vm2, %v1521_v40, %v1525_v41  ;;  %v3845_v37 = vld [vmem:[%s4253_s17 + $0x94] sm:$0xf]  ;;  %v4894_v35 = vrot.slane %v1633_v19, 5  ;;  %v1626_v38 = vrot.slane %v1624_v21, 4  ;;  %v3843_v41 = vld [vmem:[%s4253_s17 + $0x8c] sm:$0x1] }
 0x128   : > { %v1602_v60 = vrot.slane %v1600_v47, 4  ;;  %v1569_v52 = vrot.slane %v1568_v51, 4  ;;  %v1685_v46 = vshrl.u32 %v3848_v34, 16  ;;  %v1657_v51 = vshll.u32 %v3845_v37, 16  ;;  %v3846_v14 = vld [vmem:[%s4253_s17 + $0x98] sm:$0x1] }
 0x129   : > { %1781 = vrot.lane.b32.xlu1 %v1478_v44, %s4214_s21 }
 0x12a   : > { %1779 = vrot.lane.b32.xlu0 %v1468_v45, %s4214_s21  ;;  %1777 = vrot.lane.b32.xlu2 %v1454_v58, %s4214_s21  ;;  %v1609_v45 = vshll.u32 %v3839_v32, 16  ;;  %v1558_v58 = vor.u32 %v1557_v43, %v1554_v42  ;;  %v1653_v32 = vrot.slane %v1651_v18, 5  ;;  %v1597_v43 = vrot.slane %v1595_v26, 5 }
 0x12b   : > { %v1071_v2 = vpop.permute.xlu1 %1070 }
 0x12c   : > { %1138 = vst.msk [vmem:[#allocation2 + $0x74] sm:$0xf] %vm1108_vm8, %v1071_v2  ;;  %v1069_v8 = vpop.permute.xlu0 %1068  ;;  %v1215_v12 = vpop.permute.xlu2 %1214  ;;  %v4868_v55 = vrot.slane %v1609_v45, 5  ;;  %v3840_v2 = vld [vmem:[%s4253_s17 + $0x80] sm:$0x1]  ;;  %v1559_v7 = vrot.slane %v1558_v58, 4  ;;  %v1654_v50 = vor.u32 %v1653_v32, %v1650_v31 }
 0x12d   : > { %1137 = vst.msk [vmem:[#allocation2 + $0x70] sm:$0xf] %vm1108_vm8, %v1069_v8  ;;  %v1591_v8 = vrot.slane %v1589_v56, 4  ;;  %v1619_v11 = vshll.u32 %v3840_v2, 16  ;;  %v1681_v45 = vshll.u32 %v3848_v34, 16  ;;  %v1643_v56 = vshll.u32 %v3843_v41, 16 }
 0x12e   : > { %1307 = vst.msk [vmem:[#allocation2 + $0x10] sm:$0xf] %vm1302_vm9, %v1215_v12  ;;  %v1616_v10 = vor.u32 %v1615_v59, %v4868_v55  ;;  %v1606_v12 = vor.u32 %v1605_v61, %v1602_v60  ;;  %v1564_v23 = vsel %vm4264_vm2, %v1559_v7, %v4849_v30  ;;  %v1639_v30 = vrot.slane %v1637_v20, 4  ;;  %v3849_v60 = vld [vmem:[%s4253_s17 + $0xa4] sm:$0x1] }
 0x12f   : > { %v1592_v24 = vor.u32 %v1591_v8, %v1587_v63  ;;  %v1621_v28 = vrot.slane %v1619_v11, 5  ;;  %v1661_v58 = vshrl.u32 %v3845_v37, 16  ;;  %v4910_v61 = vrot.slane %v1681_v45, 5  ;;  %v3854_v32 = vld [vmem:[%s4253_s17 + $0xb8] sm:$0xf] }
 0x130   : > { %v1617_v27 = vrot.slane %v1616_v10, 4  ;;  %v1607_v29 = vrot.slane %v1606_v12, 4  ;;  %v1645_v4 = vrot.slane %v1643_v56, 5  ;;  %v1691_v8 = vshll.u32 %v3849_v60, 16 }
 0x131   : > { %1787 = vrot.lane.b32.xlu1 %v1516_v15, %s4214_s21  ;;  %v1588_v15 = vsel %vm4264_vm2, %v1583_v62, %v1587_v63  ;;  %v1593_v42 = vrot.slane %v1592_v24, 4  ;;  %v1687_v62 = vrot.slane %v1685_v46, 4  ;;  %v1663_v10 = vrot.slane %v1661_v58, 4 }
 0x132   : > { %1785 = vrot.lane.b32.xlu0 %v1502_v16, %s4214_s21  ;;  %1783 = vrot.lane.b32.xlu2 %v1492_v22, %s4214_s21  ;;  %v1574_v16 = vsel %vm4264_vm2, %v1569_v52, %v1573_v0  ;;  %v1627_v22 = vshll.u32 %v3841_v9, 16  ;;  %v1622_v49 = vsel %vm4264_vm2, %v1617_v27, %v1621_v28  ;;  %v1612_v53 = vsel %vm4264_vm2, %v1607_v29, %v4868_v55  ;;  %v3851_v9 = vld [vmem:[%s4253_s17 + $0xac] sm:$0xf] }
 0x133   : > { %v1207_v36 = vpop.permute.xlu1 %1206  ;;  %v1598_v59 = vsel %vm4264_vm2, %v1593_v42, %v1597_v43  ;;  %v1655_v55 = vrot.slane %v1654_v50, 4  ;;  %v1659_v0 = vrot.slane %v1657_v51, 5  ;;  %v1688_v11 = vor.u32 %v1687_v62, %v4910_v61 }
 0x134   : > { %1303 = vst.msk [vmem:[#allocation2] sm:$0xf] %vm1302_vm9, %v1207_v36  ;;  %v1075_v39 = vpop.permute.xlu0 %1074  ;;  %v1221_v44 = vpop.permute.xlu2 %1220  ;;  %v3847_v36 = vld [vmem:[%s4253_s17 + $0x9c] sm:$0xf]  ;;  %v1705_v21 = vshll.u32 %v3851_v9, 16  ;;  %v1667_v24 = vshll.u32 %v3846_v14, 16 }
 0x135   : > { %1140 = vst.msk [vmem:[#allocation2 + $0x7c] sm:$0xf] %vm1108_vm8, %v1075_v39  ;;  %v1629_v39 = vrot.slane %v1627_v22, 5  ;;  %v1672_v47 = vshrl.u32 %v3847_v36, 16  ;;  %v1675_v48 = vshll.u32 %v3847_v36, 16  ;;  %v1709_v22 = vshrl.u32 %v3851_v9, 16 }
 0x136   : > { %1310 = vst.msk [vmem:[#allocation2 + $0x1c] sm:$0xf] %vm1302_vm9, %v1221_v44  ;;  %v1689_v28 = vrot.slane %v1688_v11, 4  ;;  %v1693_v29 = vrot.slane %v1691_v8, 5  ;;  %v1669_v42 = vrot.slane %v1667_v24, 5  ;;  %v1733_v58 = vshrl.u32 %v3854_v32, 16 }
 0x137   : > { %v1674_v63 = vrot.slane %v1672_v47, 4  ;;  %v1677_v52 = vrot.slane %v1675_v48, 5  ;;  %v3860_v24 = vld [vmem:[%s4253_s17 + $0x10] sm:$0xf] }
 0x138   : > { %v1694_v45 = vsel %vm4264_vm2, %v1689_v28, %v1693_v29  ;;  %v1735_v8 = vrot.slane %v1733_v58, 4 }
 0x139   : > { %1793 = vrot.lane.b32.xlu1 %v1550_v33, %s4214_s21  ;;  %v1678_v12 = vor.u32 %v1677_v52, %v1674_v63 }
 0x13a   : > { %1791 = vrot.lane.b32.xlu0 %v1540_v54, %s4214_s21  ;;  %1789 = vrot.lane.b32.xlu2 %v1526_v57, %s4214_s21  ;;  %v1640_v54 = vor.u32 %v1639_v30, %v4894_v35  ;;  %v1630_v57 = vor.u32 %v1629_v39, %v1626_v38  ;;  %v1711_v30 = vrot.slane %v1709_v22, 4  ;;  %v3857_v38 = vld [vmem:[%s4253_s17 + $0xc4] sm:$0xf]  ;;  %v3856_v39 = vld [vmem:[%s4253_s17 + $0xc0] sm:$0xf] }
 0x13b   : > { %v1213_v3 = vpop.permute.xlu1 %1212  ;;  %v1679_v31 = vrot.slane %v1678_v12, 4  ;;  %v1753_v50 = vshll.u32 %v3857_v38, 16  ;;  %v1757_v51 = vshrl.u32 %v3857_v38, 16  ;;  %v1744_v56 = vshrl.u32 %v3856_v39, 16 }
 0x13c   : > { %1306 = vst.msk [vmem:[#allocation2 + $0xc] sm:$0xf] %vm1302_vm9, %v1213_v3  ;;  %v1211_v6 = vpop.permute.xlu0 %1210  ;;  %v1227_v13 = vpop.permute.xlu2 %1226  ;;  %v1641_v3 = vrot.slane %v1640_v54, 4  ;;  %v1631_v5 = vrot.slane %v1630_v57, 4  ;;  %v1747_v57 = vshll.u32 %v3856_v39, 16 }
 0x13d   : > { %1305 = vst.msk [vmem:[#allocation2 + $0x8] sm:$0xf] %vm1302_vm9, %v1211_v6  ;;  %v3853_v6 = vld [vmem:[%s4253_s17 + $0xb4] sm:$0xf]  ;;  %v1684_v46 = vsel %vm4264_vm2, %v1679_v31, %v4910_v61  ;;  %v1755_v63 = vrot.slane %v1753_v50, 5  ;;  %v1759_v52 = vrot.slane %v1757_v51, 4 }
 0x13e   : > { %1313 = vst.msk [vmem:[#allocation2 + $0x28] sm:$0xf] %vm1302_vm9, %v1227_v13  ;;  %v1720_v17 = vshrl.u32 %v3853_v6, 16  ;;  %v1723_v18 = vshll.u32 %v3853_v6, 16  ;;  %v1646_v19 = vsel %vm4264_vm2, %v1641_v3, %v1645_v4  ;;  %v1636_v20 = vsel %vm4264_vm2, %v1631_v5, %v4894_v35  ;;  %v3858_v3 = vld [vmem:[%s4253_s17 + $0xc8] sm:$0x1] }
 0x13f   : > { %v1707_v35 = vrot.slane %v1705_v21, 5  ;;  %v1746_v4 = vrot.slane %v1744_v56, 4  ;;  %v1749_v5 = vrot.slane %v1747_v57, 5  ;;  %v1760_v12 = vor.u32 %v1759_v52, %v1755_v63  ;;  %v3865_v50 = vld [vmem:[%s4253_s17 + $0x24] sm:$0xe] }
 0x140   : > { %v1722_v34 = vrot.slane %v1720_v17, 4  ;;  %v1725_v36 = vrot.slane %v1723_v18, 5  ;;  %v3909_v58 = vrot.slane %v3865_v50, 9 }
 0x141   : > { %1799 = vrot.lane.b32.xlu1 %v1588_v15, %s4214_s21  ;;  %v3850_v15 = vld [vmem:[%s4253_s17 + $0xa8] sm:$0xf] }
 0x142   : > { %1797 = vrot.lane.b32.xlu0 %v1574_v16, %s4214_s21  ;;  %1795 = vrot.lane.b32.xlu2 %v1564_v23, %s4214_s21  ;;  %v1660_v16 = vsel %vm4264_vm2, %v1655_v55, %v1659_v0  ;;  %v1664_v23 = vor.u32 %v1663_v10, %v1659_v0  ;;  %v1696_v26 = vshrl.u32 %v3850_v15, 16  ;;  %v1699_v27 = vshll.u32 %v3850_v15, 16  ;;  %v3855_v10 = vld [vmem:[%s4253_s17 + $0xbc] sm:$0x1] }
 0x143   : > { %v1219_v33 = vpop.permute.xlu1 %1218  ;;  %v1726_v48 = vor.u32 %v1725_v36, %v1722_v34  ;;  %v1750_v15 = vor.u32 %v1749_v5, %v1746_v4  ;;  %v1739_v18 = vshll.u32 %v3855_v10, 16  ;;  %v3863_v34 = vld [vmem:[%s4253_s17 + $0x1c] sm:$0xf]  ;;  %v1994_v36 = vrot.slane %v3860_v24, 5  ;;  %v3870_v4 = vld [vmem:[%s4253_s17 + $0x38] sm:$0x1] }
 0x144   : > { %1309 = vst.msk [vmem:[#allocation2 + $0x18] sm:$0xf] %vm1302_vm9, %v1219_v33  ;;  %v1217_v40 = vpop.permute.xlu0 %1216  ;;  %v1233_v44 = vpop.permute.xlu2 %1232  ;;  %v3852_v33 = vld [vmem:[%s4253_s17 + $0xb0] sm:$0x1]  ;;  %v1665_v41 = vrot.slane %v1664_v23, 4  ;;  %v1698_v43 = vrot.slane %v1696_v26, 4 }
 0x145   : > { %1308 = vst.msk [vmem:[#allocation2 + $0x14] sm:$0xf] %vm1302_vm9, %v1217_v40  ;;  %v1715_v54 = vshll.u32 %v3852_v33, 16  ;;  %v1727_v61 = vrot.slane %v1726_v48, 4  ;;  %v1751_v22 = vrot.slane %v1750_v15, 4  ;;  %v2001_v38 = vrot.slane %v3863_v34, 5 }
 0x146   : > { %1316 = vst.msk [vmem:[#allocation2 + $0x34] sm:$0xf] %vm1302_vm9, %v1233_v44  ;;  %v1701_v44 = vrot.slane %v1699_v27, 5  ;;  %v1741_v27 = vrot.slane %v1739_v18, 5  ;;  %v3861_v33 = vld [vmem:[%s4253_s17 + $0x14] sm:$0x1] }
 0x147   : > { %v1756_v31 = vsel %vm4264_vm2, %v1751_v22, %v1755_v63  ;;  %v3873_v22 = vld [vmem:[%s4253_s17 + $0x44] sm:$0x1] }
 0x148   : > { %v1702_v60 = vor.u32 %v1701_v44, %v1698_v43 }
 0x149   : > { %1805 = vrot.lane.b32.xlu1 %v1622_v49, %s4214_s21  ;;  %v1729_v49 = vshll.u32 %v3854_v32, 16  ;;  %v3862_v32 = vld [vmem:[%s4253_s17 + $0x18] sm:$0xe] }
 0x14a   : > { %1803 = vrot.lane.b32.xlu0 %v1612_v53, %s4214_s21  ;;  %1801 = vrot.lane.b32.xlu2 %v1598_v59, %s4214_s21  ;;  %v1712_v53 = vor.u32 %v1711_v30, %v1707_v35  ;;  %v1670_v59 = vsel %vm4264_vm2, %v1665_v41, %v1669_v42  ;;  %v3908_v30 = vrot.slane %v3862_v32, 9  ;;  %v1997_v41 = vrot.slane %v3861_v33, 5  ;;  %v3866_v42 = vld [vmem:[%s4253_s17 + $0x28] sm:$0xf] }
 0x14b   : > { %v1225_v2 = vpop.permute.xlu1 %1224  ;;  %v1731_v62 = vrot.slane %v1729_v49, 5  ;;  %v3867_v49 = vld [vmem:[%s4253_s17 + $0x2c] sm:$0x1]  ;;  %v2025_v32 = vrot.slane %v3873_v22, 5 }
 0x14c   : > { %1312 = vst.msk [vmem:[#allocation2 + $0x24] sm:$0xf] %vm1302_vm9, %v1225_v2  ;;  %v1223_v7 = vpop.permute.xlu0 %1222  ;;  %v1239_v13 = vpop.permute.xlu2 %1238  ;;  %v1713_v0 = vrot.slane %v1712_v53, 4  ;;  %v1717_v2 = vrot.slane %v1715_v54, 5  ;;  %v3864_v53 = vld [vmem:[%s4253_s17 + $0x20] sm:$0x1] }
 0x14d   : > { %1311 = vst.msk [vmem:[#allocation2 + $0x20] sm:$0xf] %vm1302_vm9, %v1223_v7  ;;  %v1703_v7 = vrot.slane %v1702_v60, 4  ;;  %v1732_v11 = vsel %vm4264_vm2, %v1727_v61, %v1731_v62  ;;  %v1736_v17 = vor.u32 %v1735_v8, %v1731_v62  ;;  %v2011_v56 = vrot.slane %v3867_v49, 5  ;;  %v3869_v60 = vld [vmem:[%s4253_s17 + $0x34] sm:$0xf] }
 0x14e   : > { %1319 = vst.msk [vmem:[#allocation2 + $0x40] sm:$0xf] %vm1302_vm9, %v1239_v13  ;;  %v1763_v13 = vshll.u32 %v3858_v3, 16  ;;  %v1718_v14 = vsel %vm4264_vm2, %v1713_v0, %v1717_v2  ;;  %v2003_v61 = vrot.slane %v2001_v38, 4  ;;  %v2004_v62 = vrot.slane %v3864_v53, 5 }
 0x14f   : > { %v1737_v26 = vrot.slane %v1736_v17, 4  ;;  %v3871_v0 = vld [vmem:[%s4253_s17 + $0x3c] sm:$0xe]  ;;  %v3872_v2 = vld [vmem:[%s4253_s17 + $0x40] sm:$0xf]  ;;  %v2015_v3 = vrot.slane %v3869_v60, 5 }
 0x150   : > { %v2005_v5 = vsel %vm4439_vm6, %v2003_v61, %v2004_v62  ;;  %v2022_v8 = vrot.slane %v3872_v2, 5 }
 0x151   : > { %1811 = vrot.lane.b32.xlu1 %v1660_v16, %s4214_s21  ;;  %v1708_v16 = vsel %vm4264_vm2, %v1703_v7, %v1707_v35  ;;  %v3859_v35 = vld [vmem:[%s4253_s17 + $0xc] sm:$0xe]  ;;  %v3911_v7 = vrot.slane %v3871_v0, 9  ;;  %v2017_v10 = vrot.slane %v2015_v3, 4 }
 0x152   : > { %1809 = vrot.lane.b32.xlu0 %v1646_v19, %s4214_s21  ;;  %1807 = vrot.lane.b32.xlu2 %v1636_v20, %s4214_s21  ;;  %v1761_v19 = vrot.slane %v1760_v12, 4  ;;  %v1765_v20 = vrot.slane %v1763_v13, 5  ;;  %v3907_v44 = vrot.slane %v3859_v35, 9  ;;  %v3875_v12 = vld [vmem:[%s4253_s17 + $0x4c] sm:$0xf] }
 0x153   : > { %v1231_v37 = vpop.permute.xlu1 %1230  ;;  %v2029_v17 = vrot.slane %v3875_v12, 5  ;;  %v3881_v35 = vld [vmem:[%s4253_s17 + $0x64] sm:$0xf] }
 0x154   : > { %1315 = vst.msk [vmem:[#allocation2 + $0x30] sm:$0xf] %vm1302_vm9, %v1231_v37  ;;  %v1229_v40 = vpop.permute.xlu0 %1228  ;;  %v1245_v47 = vpop.permute.xlu2 %1244  ;;  %v1766_v29 = vsel %vm4264_vm2, %v1761_v19, %v1765_v20  ;;  %v1742_v37 = vsel %vm4264_vm2, %v1737_v26, %v1741_v27  ;;  %v1995_v51 = vsel %vm4439_vm6, %v3907_v44, %v1994_v36  ;;  %v3876_v19 = vld [vmem:[%s4253_s17 + $0x50] sm:$0x1]  ;;  %v3874_v20 = vld [vmem:[%s4253_s17 + $0x48] sm:$0xe] }
 0x155   : > { %1314 = vst.msk [vmem:[#allocation2 + $0x2c] sm:$0xf] %vm1302_vm9, %v1229_v40  ;;  %v1996_v40 = vrot.slane %v1994_v36, 4  ;;  %v2032_v24 = vrot.slane %v3876_v19, 5  ;;  %v3912_v27 = vrot.slane %v3874_v20, 9 }
 0x156   : > { %1322 = vst.msk [vmem:[#allocation2 + $0x4c] sm:$0xf] %vm1302_vm9, %v1245_v47  ;;  %v2008_v47 = vrot.slane %v3866_v42, 5  ;;  %v2043_v42 = vrot.slane %v3881_v35, 5 }
 0x157   : > { %v1998_v48 = vsel %vm4439_vm6, %v1996_v40, %v1997_v41  ;;  %v2030_v33 = vsel %vm4439_vm6, %v3912_v27, %v2029_v17  ;;  %v3877_v40 = vld [vmem:[%s4253_s17 + $0x54] sm:$0xe]  ;;  %v3891_v27 = vld [vmem:[%s4253_s17 + $0x8c] sm:$0x1] }
 0x158   : > { %v2010_v54 = vrot.slane %v2008_v47, 4 }
 0x159   : > { %1817 = vrot.lane.b32.xlu1 %v1694_v45, %s4214_s21 }
 0x15a   : > { %1815 = vrot.lane.b32.xlu0 %v1684_v46, %s4214_s21  ;;  %1813 = vrot.lane.b32.xlu2 %v1670_v59, %s4214_s21  ;;  %v2002_v46 = vsel %vm4439_vm6, %v3908_v30, %v2001_v38  ;;  %v2012_v52 = vsel %vm4439_vm6, %v2010_v54, %v2011_v56  ;;  %v3879_v38 = vld [vmem:[%s4253_s17 + $0x5c] sm:$0x1]  ;;  %v3885_v54 = vld [vmem:[%s4253_s17 + $0x74] sm:$0x1] }
 0x15b   : > { %v1237_v55 = vpop.permute.xlu1 %1236  ;;  %v3883_v56 = vld [vmem:[%s4253_s17 + $0x6c] sm:$0xe]  ;;  %v2053_v60 = vrot.slane %v3885_v54, 5 }
 0x15c   : > { %1318 = vst.msk [vmem:[#allocation2 + $0x3c] sm:$0xf] %vm1302_vm9, %v1237_v55  ;;  %v1235_v6 = vpop.permute.xlu0 %1234  ;;  %v1251_v9 = vpop.permute.xlu2 %1250  ;;  %v2009_v55 = vsel %vm4439_vm6, %v3909_v58, %v2008_v47  ;;  %v3882_v58 = vld [vmem:[%s4253_s17 + $0x68] sm:$0x1]  ;;  %v3915_v62 = vrot.slane %v3883_v56, 9 }
 0x15d   : > { %1317 = vst.msk [vmem:[#allocation2 + $0x38] sm:$0xf] %vm1302_vm9, %v1235_v6  ;;  %v3868_v6 = vld [vmem:[%s4253_s17 + $0x30] sm:$0xe]  ;;  %v2046_v0 = vrot.slane %v3882_v58, 5 }
 0x15e   : > { %1325 = vst.msk [vmem:[#allocation2 + $0x58] sm:$0xf] %vm1302_vm9, %v1251_v9 }
 0x161   : > { %1823 = vrot.lane.b32.xlu1 %v1732_v11, %s4214_s21  ;;  %v2018_v11 = vrot.slane %v3870_v4, 5 }
 0x162   : > { %1821 = vrot.lane.b32.xlu0 %v1718_v14, %s4214_s21  ;;  %1819 = vrot.lane.b32.xlu2 %v1708_v16, %s4214_s21  ;;  %v3910_v14 = vrot.slane %v3868_v6, 9  ;;  %v2023_v16 = vsel %vm4439_vm6, %v3911_v7, %v2022_v8  ;;  %v3890_v6 = vld [vmem:[%s4253_s17 + $0x88] sm:$0xf] }
 0x163   : > { %v1243_v21 = vpop.permute.xlu1 %1242  ;;  %v2019_v18 = vsel %vm4439_vm6, %v2017_v10, %v2018_v11  ;;  %v3886_v10 = vld [vmem:[%s4253_s17 + $0x78] sm:$0xe]  ;;  %v2064_v12 = vrot.slane %v3890_v6, 5 }
 0x164   : > { %1321 = vst.msk [vmem:[#allocation2 + $0x48] sm:$0xf] %vm1302_vm9, %v1243_v21  ;;  %v1241_v23 = vpop.permute.xlu0 %1240  ;;  %v1257_v28 = vpop.permute.xlu2 %1256  ;;  %v2016_v21 = vsel %vm4439_vm6, %v3910_v14, %v2015_v3 }
 0x165   : > { %1320 = vst.msk [vmem:[#allocation2 + $0x44] sm:$0xf] %vm1302_vm9, %v1241_v23  ;;  %v2031_v23 = vrot.slane %v2029_v17, 4 }
 0x166   : > { %1328 = vst.msk [vmem:[#allocation2 + $0x64] sm:$0xf] %vm1302_vm9, %v1257_v28 }
 0x167   : > { %v2033_v36 = vsel %vm4439_vm6, %v2031_v23, %v2032_v24  ;;  %v3894_v23 = vld [vmem:[%s4253_s17 + $0x98] sm:$0x1]  ;;  %v3892_v24 = vld [vmem:[%s4253_s17 + $0x90] sm:$0xe] }
 0x169   : > { %1829 = vrot.lane.b32.xlu1 %v1766_v29, %s4214_s21  ;;  %v3878_v29 = vld [vmem:[%s4253_s17 + $0x58] sm:$0xf] }
 0x16a   : > { %1827 = vrot.lane.b32.xlu0 %v1756_v31, %s4214_s21  ;;  %1825 = vrot.lane.b32.xlu2 %v1742_v37, %s4214_s21  ;;  %v2024_v31 = vrot.slane %v2022_v8, 4  ;;  %v3880_v37 = vld [vmem:[%s4253_s17 + $0x60] sm:$0xe]  ;;  %v2036_v30 = vrot.slane %v3878_v29, 5  ;;  %v3888_v8 = vld [vmem:[%s4253_s17 + $0x80] sm:$0x1] }
 0x16b   : > { %v1249_v39 = vpop.permute.xlu1 %1248  ;;  %v3914_v41 = vrot.slane %v3880_v37, 9  ;;  %v2074_v29 = vrot.slane %v3894_v23, 5  ;;  %v2067_v37 = vrot.slane %v3891_v27, 5  ;;  %v3925_v27 = vld [vmem:[%s4253_s17 + $0x24] sm:$0xf] }
 0x16c   : > { %1324 = vst.msk [vmem:[#allocation2 + $0x54] sm:$0xf] %vm1302_vm9, %v1249_v39  ;;  %v1247_v43 = vpop.permute.xlu0 %1246  ;;  %v1263_v45 = vpop.permute.xlu2 %1262  ;;  %v2026_v39 = vsel %vm4439_vm6, %v2024_v31, %v2025_v32  ;;  %v2038_v44 = vrot.slane %v2036_v30, 4  ;;  %v3918_v32 = vrot.slane %v3892_v24, 9 }
 0x16d   : > { %1323 = vst.msk [vmem:[#allocation2 + $0x50] sm:$0xf] %vm1302_vm9, %v1247_v43  ;;  %v2044_v50 = vsel %vm4439_vm6, %v3914_v41, %v2043_v42 }
 0x16e   : > { %1331 = vst.msk [vmem:[#allocation2 + $0x70] sm:$0xf] %vm1302_vm9, %v1263_v45  ;;  %v2039_v45 = vrot.slane %v3879_v38, 5 }
 0x170   : > { %v2040_v53 = vsel %vm4439_vm6, %v2038_v44, %v2039_v45  ;;  %v3895_v44 = vld [vmem:[%s4253_s17 + $0x9c] sm:$0xe] }
 0x171   : > { %2108 = vrot.lane.b32.xlu1 %v2002_v46, %s4215_s22  ;;  %v3884_v46 = vld [vmem:[%s4253_s17 + $0x70] sm:$0xf] }
 0x172   : > { %2106 = vrot.lane.b32.xlu0 %v1998_v48, %s4215_s22  ;;  %2104 = vrot.lane.b32.xlu2 %v1995_v51, %s4215_s22  ;;  %v3913_v48 = vrot.slane %v3877_v40, 9  ;;  %v2050_v51 = vrot.slane %v3884_v46, 5  ;;  %v3899_v40 = vld [vmem:[%s4253_s17 + $0xac] sm:$0xf] }
 0x173   : > { %v1255_v57 = vpop.permute.xlu1 %1254  ;;  %v2085_v46 = vrot.slane %v3899_v40, 5  ;;  %v3930_v40 = vld [vmem:[%s4253_s17 + $0x40] sm:$0xf] }
 0x174   : > { %1327 = vst.msk [vmem:[#allocation2 + $0x60] sm:$0xf] %vm1302_vm9, %v1255_v57  ;;  %v1253_v59 = vpop.permute.xlu0 %1252  ;;  %v1269_v63 = vpop.permute.xlu2 %1268  ;;  %v2037_v57 = vsel %vm4439_vm6, %v3913_v48, %v2036_v30  ;;  %v2051_v4 = vsel %vm4439_vm6, %v3915_v62, %v2050_v51  ;;  %v3900_v62 = vld [vmem:[%s4253_s17 + $0xb0] sm:$0x1] }
 0x175   : > { %1326 = vst.msk [vmem:[#allocation2 + $0x5c] sm:$0xf] %vm1302_vm9, %v1253_v59  ;;  %v2052_v59 = vrot.slane %v2050_v51, 4 }
 0x176   : > { %1334 = vst.msk [vmem:[#allocation2 + $0x7c] sm:$0xf] %vm1302_vm9, %v1269_v63 }
 0x177   : > { %v2054_v3 = vsel %vm4439_vm6, %v2052_v59, %v2053_v60  ;;  %v3903_v59 = vld [vmem:[%s4253_s17 + $0xbc] sm:$0x1]  ;;  %v3901_v60 = vld [vmem:[%s4253_s17 + $0xb4] sm:$0xe] }
 0x179   : > { %2114 = vrot.lane.b32.xlu1 %v2012_v52, %s4215_s22  ;;  %v3887_v52 = vld [vmem:[%s4253_s17 + $0x7c] sm:$0xf] }
 0x17a   : > { %2112 = vrot.lane.b32.xlu0 %v2009_v55, %s4215_s22  ;;  %2110 = vrot.lane.b32.xlu2 %v2005_v5, %s4215_s22  ;;  %v2045_v55 = vrot.slane %v2043_v42, 4  ;;  %v3889_v5 = vld [vmem:[%s4253_s17 + $0x84] sm:$0xe]  ;;  %v2057_v7 = vrot.slane %v3887_v52, 5  ;;  %v3897_v42 = vld [vmem:[%s4253_s17 + $0xa4] sm:$0x1] }
 0x17b   : > { %v1261_v9 = vpop.permute.xlu1 %1260  ;;  %v3917_v11 = vrot.slane %v3889_v5, 9  ;;  %v2095_v52 = vrot.slane %v3903_v59, 5  ;;  %v2088_v5 = vrot.slane %v3900_v62, 5 }
 0x17c   : > { %1330 = vst.msk [vmem:[#allocation2 + $0x6c] sm:$0xf] %vm1302_vm9, %v1261_v9  ;;  %v1259_v13 = vpop.permute.xlu0 %1258  ;;  %v1772_v15 = vpop.permute.xlu2 %1771  ;;  %v2047_v9 = vsel %vm4439_vm6, %v2045_v55, %v2046_v0  ;;  %v2059_v14 = vrot.slane %v2057_v7, 4  ;;  %v3921_v0 = vrot.slane %v3901_v60, 9 }
 0x17d   : > { %1329 = vst.msk [vmem:[#allocation2 + $0x68] sm:$0xf] %vm1302_vm9, %v1259_v13  ;;  %v2065_v20 = vsel %vm4439_vm6, %v3917_v11, %v2064_v12 }
 0x17e   : > { %1866 = vst.msk [vmem:[#allocation2 + $0x8] sm:$0xf] %vm1863_vm10, %v1772_v15  ;;  %v2060_v15 = vrot.slane %v3888_v8, 5 }
 0x180   : > { %v2061_v22 = vsel %vm4439_vm6, %v2059_v14, %v2060_v15 }
 0x181   : > { %2120 = vrot.lane.b32.xlu1 %v2023_v16, %s4215_s22  ;;  %v3893_v16 = vld [vmem:[%s4253_s17 + $0x94] sm:$0xf] }
 0x182   : > { %2118 = vrot.lane.b32.xlu0 %v2019_v18, %s4215_s22  ;;  %2116 = vrot.lane.b32.xlu2 %v2016_v21, %s4215_s22  ;;  %v3916_v18 = vrot.slane %v3886_v10, 9  ;;  %v2071_v21 = vrot.slane %v3893_v16, 5  ;;  %v3906_v10 = vld [vmem:[%s4253_s17 + $0xc8] sm:$0x1] }
 0x183   : > { %v1267_v26 = vpop.permute.xlu1 %1266  ;;  %v2102_v15 = vrot.slane %v3906_v10, 5  ;;  %v3948_v10 = vld [vmem:[%s4253_s17 + $0xac] sm:$0xf] }
 0x184   : > { %1333 = vst.msk [vmem:[#allocation2 + $0x78] sm:$0xf] %vm1302_vm9, %v1267_v26  ;;  %v1265_v28 = vpop.permute.xlu0 %1264  ;;  %v1778_v34 = vpop.permute.xlu2 %1777  ;;  %v2058_v26 = vsel %vm4439_vm6, %v3916_v18, %v2057_v7  ;;  %v2072_v38 = vsel %vm4439_vm6, %v3918_v32, %v2071_v21 }
 0x185   : > { %1332 = vst.msk [vmem:[#allocation2 + $0x74] sm:$0xf] %vm1302_vm9, %v1265_v28  ;;  %v2073_v28 = vrot.slane %v2071_v21, 4 }
 0x186   : > { %1869 = vst.msk [vmem:[#allocation2 + $0x14] sm:$0xf] %vm1863_vm10, %v1778_v34 }
 0x187   : > { %v2075_v30 = vsel %vm4439_vm6, %v2073_v28, %v2074_v29  ;;  %v3924_v28 = vld [vmem:[%s4253_s17 + $0x1c] sm:$0xf] }
 0x189   : > { %2126 = vrot.lane.b32.xlu1 %v2033_v36, %s4215_s22  ;;  %v3896_v36 = vld [vmem:[%s4253_s17 + $0xa0] sm:$0xf] }
 0x18a   : > { %2124 = vrot.lane.b32.xlu0 %v2030_v33, %s4215_s22  ;;  %2122 = vrot.lane.b32.xlu2 %v2026_v39, %s4215_s22  ;;  %v2066_v33 = vrot.slane %v2064_v12, 4  ;;  %v3898_v39 = vld [vmem:[%s4253_s17 + $0xa8] sm:$0xe]  ;;  %v2078_v41 = vrot.slane %v3896_v36, 5  ;;  %v3904_v12 = vld [vmem:[%s4253_s17 + $0xc0] sm:$0xe] }
 0x18b   : > { %v1770_v43 = vpop.permute.xlu1 %1769  ;;  %v3920_v45 = vrot.slane %v3898_v39, 9  ;;  %v3928_v36 = vld [vmem:[%s4253_s17 + $0x34] sm:$0xf]  ;;  %v3931_v39 = vld [vmem:[%s4253_s17 + $0x48] sm:$0xf] }
 0x18c   : > { %1865 = vst.msk [vmem:[#allocation2 + $0x4] sm:$0xf] %vm1863_vm10, %v1770_v43  ;;  %v1768_v47 = vpop.permute.xlu0 %1767  ;;  %v1784_v49 = vpop.permute.xlu2 %1783  ;;  %v2068_v43 = vsel %vm4439_vm6, %v2066_v33, %v2067_v37  ;;  %v2080_v48 = vrot.slane %v2078_v41, 4  ;;  %v3927_v33 = vld [vmem:[%s4253_s17 + $0x30] sm:$0xf] }
 0x18d   : > { %1864 = vst.msk [vmem:[#allocation2] sm:$0xf] %vm1863_vm10, %v1768_v47  ;;  %v2086_v56 = vsel %vm4439_vm6, %v3920_v45, %v2085_v46  ;;  %v3934_v45 = vld [vmem:[%s4253_s17 + $0x58] sm:$0xf] }
 0x18e   : > { %1872 = vst.msk [vmem:[#allocation2 + $0x20] sm:$0xf] %vm1863_vm10, %v1784_v49  ;;  %v2081_v49 = vrot.slane %v3897_v42, 5 }
 0x190   : > { %v2082_v58 = vsel %vm4439_vm6, %v2080_v48, %v2081_v49  ;;  %v3991_v48 = vld [vmem:[%s4253_s17 + $0xa8] sm:$0xf] }
 0x191   : > { %2132 = vrot.lane.b32.xlu1 %v2044_v50, %s4215_s22  ;;  %v3902_v50 = vld [vmem:[%s4253_s17 + $0xb8] sm:$0xf] }
 0x192   : > { %2130 = vrot.lane.b32.xlu0 %v2040_v53, %s4215_s22  ;;  %2128 = vrot.lane.b32.xlu2 %v2037_v57, %s4215_s22  ;;  %v3919_v53 = vrot.slane %v3895_v44, 9  ;;  %v2092_v57 = vrot.slane %v3902_v50, 5  ;;  %v3935_v44 = vld [vmem:[%s4253_s17 + $0x60] sm:$0xf]  ;;  %v3980_v50 = vld [vmem:[%s4253_s17 + $0x7c] sm:$0xf] }
 0x193   : > { %v1776_v61 = vpop.permute.xlu1 %1775  ;;  %v2677_v59 = vshll.u32 %v3980_v50, 16  ;;  %v2681_v60 = vshrl.u32 %v3980_v50, 16  ;;  %v3968_v50 = vld [vmem:[%s4253_s17 + $0x4c] sm:$0xf] }
 0x194   : > { %1868 = vst.msk [vmem:[#allocation2 + $0x10] sm:$0xf] %vm1863_vm10, %v1776_v61  ;;  %v1774_v63 = vpop.permute.xlu0 %1773  ;;  %v1790_v2 = vpop.permute.xlu2 %1789  ;;  %v2079_v61 = vsel %vm4439_vm6, %v3919_v53, %v2078_v41  ;;  %v2093_v8 = vsel %vm4439_vm6, %v3921_v0, %v2092_v57  ;;  %v3979_v53 = vld [vmem:[%s4253_s17 + $0x78] sm:$0xf] }
 0x195   : > { %1867 = vst.msk [vmem:[#allocation2 + $0xc] sm:$0xf] %vm1863_vm10, %v1774_v63  ;;  %v2094_v63 = vrot.slane %v2092_v57, 4  ;;  %v2767_v57 = vshll.u32 %v3991_v48, 16  ;;  %v2668_v62 = vshrl.u32 %v3979_v53, 16 }
 0x196   : > { %1875 = vst.msk [vmem:[#allocation2 + $0x2c] sm:$0xf] %vm1863_vm10, %v1790_v2 }
 0x197   : > { %v2096_v7 = vsel %vm4439_vm6, %v2094_v63, %v2095_v52  ;;  %v2671_v63 = vshll.u32 %v3979_v53, 16 }
 0x199   : > { %2138 = vrot.lane.b32.xlu1 %v2054_v3, %s4215_s22  ;;  %v3905_v3 = vld [vmem:[%s4253_s17 + $0xc4] sm:$0xf] }
 0x19a   : > { %2136 = vrot.lane.b32.xlu0 %v2051_v4, %s4215_s22  ;;  %2134 = vrot.lane.b32.xlu2 %v2047_v9, %s4215_s22  ;;  %v2087_v4 = vrot.slane %v2085_v46, 4  ;;  %v2099_v9 = vrot.slane %v3905_v3, 5  ;;  %v3933_v46 = vld [vmem:[%s4253_s17 + $0x54] sm:$0xf]  ;;  %v2679_v3 = vrot.slane %v2677_v59, 5 }
 0x19b   : > { %v1782_v13 = vpop.permute.xlu1 %1781 }
 0x19c   : > { %1871 = vst.msk [vmem:[#allocation2 + $0x1c] sm:$0xf] %vm1863_vm10, %v1782_v13  ;;  %v1780_v17 = vpop.permute.xlu0 %1779  ;;  %v1796_v19 = vpop.permute.xlu2 %1795  ;;  %v2089_v11 = vsel %vm4439_vm6, %v2087_v4, %v2088_v5  ;;  %v2101_v14 = vrot.slane %v2099_v9, 4  ;;  %v2683_v4 = vrot.slane %v2681_v60, 4 }
 0x19d   : > { %1870 = vst.msk [vmem:[#allocation2 + $0x18] sm:$0xf] %vm1863_vm10, %v1780_v17  ;;  %v3922_v17 = vrot.slane %v3904_v12, 9 }
 0x19e   : > { %1878 = vst.msk [vmem:[#allocation2 + $0x38] sm:$0xf] %vm1863_vm10, %v1796_v19  ;;  %v3923_v19 = vld [vmem:[%s4253_s17 + $0x18] sm:$0xf] }
 0x19f   : > { %v2100_v21 = vsel %vm4439_vm6, %v3922_v17, %v2099_v9  ;;  %v3940_v17 = vld [vmem:[%s4253_s17 + $0x7c] sm:$0xf] }
 0x1a1   : > { %2144 = vrot.lane.b32.xlu1 %v2065_v20, %s4215_s22  ;;  %v2103_v20 = vsel %vm4439_vm6, %v2101_v14, %v2102_v15  ;;  %v2684_v14 = vor.u32 %v2683_v4, %v2679_v3 }
 0x1a2   : > { %2142 = vrot.lane.b32.xlu0 %v2061_v22, %s4215_s22  ;;  %2140 = vrot.lane.b32.xlu2 %v2058_v26, %s4215_s22  ;;  %v3926_v26 = vld [vmem:[%s4253_s17 + $0x28] sm:$0xf] }
 0x1a3   : > { %v1788_v31 = vpop.permute.xlu1 %1787 }
 0x1a4   : > { %1874 = vst.msk [vmem:[#allocation2 + $0x28] sm:$0xf] %vm1863_vm10, %v1788_v31  ;;  %v1786_v34 = vpop.permute.xlu0 %1785  ;;  %v1802_v35 = vpop.permute.xlu2 %1801 }
 0x1a5   : > { %1873 = vst.msk [vmem:[#allocation2 + $0x24] sm:$0xf] %vm1863_vm10, %v1786_v34  ;;  %v3929_v34 = vld [vmem:[%s4253_s17 + $0x3c] sm:$0xf] }
 0x1a6   : > { %1881 = vst.msk [vmem:[#allocation2 + $0x44] sm:$0xf] %vm1863_vm10, %v1802_v35 }
 0x1a9   : > { %2150 = vrot.lane.b32.xlu1 %v2075_v30, %s4215_s22 }
 0x1aa   : > { %2148 = vrot.lane.b32.xlu0 %v2072_v38, %s4215_s22  ;;  %2146 = vrot.lane.b32.xlu2 %v2068_v43, %s4215_s22  ;;  %v3932_v38 = vld [vmem:[%s4253_s17 + $0x4c] sm:$0xf] }
 0x1ab   : > { %v1794_v47 = vpop.permute.xlu1 %1793 }
 0x1ac   : > { %1877 = vst.msk [vmem:[#allocation2 + $0x34] sm:$0xf] %vm1863_vm10, %v1794_v47  ;;  %v1792_v51 = vpop.permute.xlu0 %1791  ;;  %v1808_v54 = vpop.permute.xlu2 %1807 }
 0x1ad   : > { %1876 = vst.msk [vmem:[#allocation2 + $0x30] sm:$0xf] %vm1863_vm10, %v1792_v51 }
 0x1ae   : > { %1884 = vst.msk [vmem:[#allocation2 + $0x50] sm:$0xf] %vm1863_vm10, %v1808_v54  ;;  %v3939_v54 = vld [vmem:[%s4253_s17 + $0x78] sm:$0xf] }
 0x1b1   : > { %2156 = vrot.lane.b32.xlu1 %v2086_v56, %s4215_s22  ;;  %v2764_v56 = vshrl.u32 %v3991_v48, 16  ;;  %v3956_v48 = vld [vmem:[%s4253_s17 + $0x1c] sm:$0xf] }
 0x1b2   : > { %2154 = vrot.lane.b32.xlu0 %v2082_v58, %s4215_s22  ;;  %2152 = vrot.lane.b32.xlu2 %v2079_v61, %s4215_s22  ;;  %v3937_v58 = vld [vmem:[%s4253_s17 + $0x6c] sm:$0xf]  ;;  %v3936_v61 = vld [vmem:[%s4253_s17 + $0x64] sm:$0xf]  ;;  %v2485_v60 = vshll.u32 %v3956_v48, 16 }
 0x1b3   : > { %v1800_v55 = vpop.permute.xlu1 %1799  ;;  %v2766_v52 = vrot.slane %v2764_v56, 4  ;;  %v3967_v56 = vld [vmem:[%s4253_s17 + $0x48] sm:$0xf] }
 0x1b4   : > { %1880 = vst.msk [vmem:[#allocation2 + $0x40] sm:$0xf] %vm1863_vm10, %v1800_v55  ;;  %v1798_v2 = vpop.permute.xlu0 %1797  ;;  %v1814_v6 = vpop.permute.xlu2 %1813  ;;  %v2769_v55 = vrot.slane %v2767_v57, 5 }
 0x1b5   : > { %1879 = vst.msk [vmem:[#allocation2 + $0x3c] sm:$0xf] %vm1863_vm10, %v1798_v2  ;;  %v3992_v2 = vld [vmem:[%s4253_s17 + $0xac] sm:$0xf] }
 0x1b6   : > { %1887 = vst.msk [vmem:[#allocation2 + $0x5c] sm:$0xf] %vm1863_vm10, %v1814_v6  ;;  %v3981_v6 = vld [vmem:[%s4253_s17 + $0x80] sm:$0x1]  ;;  %v2773_v12 = vshll.u32 %v3992_v2, 16 }
 0x1b7   : > { %v2687_v15 = vshll.u32 %v3981_v6, 16 }
 0x1b9   : > { %2162 = vrot.lane.b32.xlu1 %v2096_v7, %s4215_s22  ;;  %v2670_v7 = vrot.slane %v2668_v62, 4  ;;  %v2585_v62 = vshrl.u32 %v3968_v50, 16 }
 0x1ba   : > { %2160 = vrot.lane.b32.xlu0 %v2093_v8, %s4215_s22  ;;  %2158 = vrot.lane.b32.xlu2 %v2089_v11, %s4215_s22  ;;  %v2673_v8 = vrot.slane %v2671_v63, 5  ;;  %v2770_v11 = vor.u32 %v2769_v55, %v2766_v52  ;;  %v2572_v55 = vshrl.u32 %v3967_v56, 16 }
 0x1bb   : > { %v1806_v13 = vpop.permute.xlu1 %1805 }
 0x1bc   : > { %1883 = vst.msk [vmem:[#allocation2 + $0x4c] sm:$0xf] %vm1863_vm10, %v1806_v13  ;;  %v1804_v16 = vpop.permute.xlu0 %1803  ;;  %v1820_v18 = vpop.permute.xlu2 %1819  ;;  %v3947_v13 = vld [vmem:[%s4253_s17 + $0xa8] sm:$0xf] }
 0x1bd   : > { %1882 = vst.msk [vmem:[#allocation2 + $0x48] sm:$0xf] %vm1863_vm10, %v1804_v16  ;;  %v2777_v16 = vshrl.u32 %v3992_v2, 16  ;;  %v2489_v2 = vshrl.u32 %v3956_v48, 16 }
 0x1be   : > { %1890 = vst.msk [vmem:[#allocation2 + $0x68] sm:$0xf] %vm1863_vm10, %v1820_v18  ;;  %v2674_v18 = vor.u32 %v2673_v8, %v2670_v7  ;;  %v2487_v7 = vrot.slane %v2485_v60, 5 }
 0x1c1   : > { %2298 = vrot.lane.b32.xlu1 %v3923_v19, %s4216_s23  ;;  %v2771_v19 = vrot.slane %v2770_v11, 4 }
 0x1c2   : > { %2166 = vrot.lane.b32.xlu0 %v2103_v20, %s4215_s22  ;;  %2164 = vrot.lane.b32.xlu2 %v2100_v21, %s4215_s22  ;;  %v2775_v20 = vrot.slane %v2773_v12, 5  ;;  %v4028_v21 = vld [vmem:[%s4253_s17 + $0x7c] sm:$0xf] }
 0x1c3   : > { %v1812_v22 = vpop.permute.xlu1 %1811 }
 0x1c4   : > { %1886 = vst.msk [vmem:[#allocation2 + $0x58] sm:$0xf] %vm1863_vm10, %v1812_v22  ;;  %v1810_v23 = vpop.permute.xlu0 %1809  ;;  %v1826_v24 = vpop.permute.xlu2 %1825 }
 0x1c5   : > { %1885 = vst.msk [vmem:[#allocation2 + $0x54] sm:$0xf] %vm1863_vm10, %v1810_v23  ;;  %v2685_v23 = vrot.slane %v2684_v14, 4  ;;  %v2574_v14 = vrot.slane %v2572_v55, 4 }
 0x1c6   : > { %1893 = vst.msk [vmem:[#allocation2 + $0x74] sm:$0xf] %vm1863_vm10, %v1826_v24  ;;  %v2689_v24 = vrot.slane %v2687_v15, 5 }
 0x1c9   : > { %2304 = vrot.lane.b32.xlu1 %v3926_v26, %s4216_s23  ;;  %v3955_v26 = vld [vmem:[%s4253_s17 + $0x18] sm:$0xf] }
 0x1ca   : > { %2302 = vrot.lane.b32.xlu0 %v3925_v27, %s4216_s23  ;;  %2300 = vrot.lane.b32.xlu2 %v3924_v28, %s4216_s23  ;;  %v2675_v28 = vrot.slane %v2674_v18, 4  ;;  %v2491_v18 = vrot.slane %v2489_v2, 4  ;;  %v3983_v2 = vld [vmem:[%s4253_s17 + $0x88] sm:$0xf] }
 0x1cb   : > { %v1818_v29 = vpop.permute.xlu1 %1817 }
 0x1cc   : > { %1889 = vst.msk [vmem:[#allocation2 + $0x64] sm:$0xf] %vm1863_vm10, %v1818_v29  ;;  %v1816_v31 = vpop.permute.xlu0 %1815  ;;  %v2105_v32 = vpop.permute.xlu2 %2104  ;;  %v2779_v29 = vrot.slane %v2777_v16, 4 }
 0x1cd   : > { %1888 = vst.msk [vmem:[#allocation2 + $0x60] sm:$0xf] %vm1863_vm10, %v1816_v31  ;;  %v3142_v31 = vrot.slane %v4028_v21, 5 }
 0x1ce   : > { %2201 = vst.msk [vmem:[#allocation2] sm:$0xf] %vm2200_vm11, %v2105_v32 }
 0x1d1   : > { %2310 = vrot.lane.b32.xlu1 %v3929_v34, %s4216_s23  ;;  %v3993_v34 = vld [vmem:[%s4253_s17 + $0xb0] sm:$0x1] }
 0x1d2   : > { %2308 = vrot.lane.b32.xlu0 %v3928_v36, %s4216_s23  ;;  %2306 = vrot.lane.b32.xlu2 %v3927_v33, %s4216_s23  ;;  %v2776_v36 = vsel %vm4264_vm2, %v2771_v19, %v2775_v20  ;;  %v4029_v33 = vld [vmem:[%s4253_s17 + $0x80] sm:$0x1] }
 0x1d3   : > { %v1824_v37 = vpop.permute.xlu1 %1823 }
 0x1d4   : > { %1892 = vst.msk [vmem:[#allocation2 + $0x70] sm:$0xf] %vm1863_vm10, %v1824_v37  ;;  %v1822_v35 = vpop.permute.xlu0 %1821  ;;  %v2111_v30 = vpop.permute.xlu2 %2110  ;;  %v2476_v37 = vshrl.u32 %v3955_v26, 16 }
 0x1d5   : > { %1891 = vst.msk [vmem:[#allocation2 + $0x6c] sm:$0xf] %vm1863_vm10, %v1822_v35  ;;  %v2479_v35 = vshll.u32 %v3955_v26, 16 }
 0x1d6   : > { %2204 = vst.msk [vmem:[#allocation2 + $0xc] sm:$0xf] %vm2200_vm11, %v2111_v30  ;;  %v2690_v30 = vsel %vm4264_vm2, %v2685_v23, %v2689_v24 }
 0x1d9   : > { %2316 = vrot.lane.b32.xlu1 %v3932_v38, %s4216_s23  ;;  %v4027_v38 = vld [vmem:[%s4253_s17 + $0x78] sm:$0xe] }
 0x1da   : > { %2314 = vrot.lane.b32.xlu0 %v3931_v39, %s4216_s23  ;;  %2312 = vrot.lane.b32.xlu2 %v3930_v40, %s4216_s23  ;;  %v2680_v39 = vsel %vm4264_vm2, %v2675_v28, %v2679_v3  ;;  %v2780_v40 = vor.u32 %v2779_v29, %v2775_v20  ;;  %v4041_v3 = vld [vmem:[%s4253_s17 + $0xb0] sm:$0x1]  ;;  %v3957_v20 = vld [vmem:[%s4253_s17 + $0x20] sm:$0x1]  ;;  %v2492_v28 = vor.u32 %v2491_v18, %v2487_v7 }
 0x1db   : > { %v1830_v41 = vpop.permute.xlu1 %1829  ;;  %v3173_v12 = vrot.slane %v4041_v3, 5  ;;  %v2495_v29 = vshll.u32 %v3957_v20, 16  ;;  %v3995_v3 = vld [vmem:[%s4253_s17 + $0xb8] sm:$0xf] }
 0x1dc   : > { %1895 = vst.msk [vmem:[#allocation2 + $0x7c] sm:$0xf] %vm1863_vm10, %v1830_v41  ;;  %v1828_v42 = vpop.permute.xlu0 %1827  ;;  %v2117_v43 = vpop.permute.xlu2 %2116  ;;  %v2783_v41 = vshll.u32 %v3993_v34, 16  ;;  %v2781_v53 = vrot.slane %v2780_v40, 4 }
 0x1dd   : > { %1894 = vst.msk [vmem:[#allocation2 + $0x78] sm:$0xf] %vm1863_vm10, %v1828_v42  ;;  %v3144_v42 = vrot.slane %v3142_v31, 4 }
 0x1de   : > { %2207 = vst.msk [vmem:[#allocation2 + $0x18] sm:$0xf] %vm2200_vm11, %v2117_v43  ;;  %v3145_v43 = vrot.slane %v4029_v33, 5 }
 0x1e0   : > { %v3146_v57 = vsel %vm4439_vm6, %v3144_v42, %v3145_v43  ;;  %v4016_v42 = vld [vmem:[%s4253_s17 + $0x4c] sm:$0xf] }
 0x1e1   : > { %2322 = vrot.lane.b32.xlu1 %v3935_v44, %s4216_s23  ;;  %v4059_v44 = vrot.slane %v4027_v38, 9  ;;  %v3114_v48 = vrot.slane %v4016_v42, 5 }
 0x1e2   : > { %2320 = vrot.lane.b32.xlu0 %v3934_v45, %s4216_s23  ;;  %2318 = vrot.lane.b32.xlu2 %v3933_v46, %s4216_s23  ;;  %v2478_v45 = vrot.slane %v2476_v37, 4  ;;  %v2481_v46 = vrot.slane %v2479_v35, 5  ;;  %v4004_v37 = vld [vmem:[%s4253_s17 + $0x1c] sm:$0xf]  ;;  %v2493_v35 = vrot.slane %v2492_v28, 4 }
 0x1e3   : > { %v2109_v47 = vpop.permute.xlu1 %2108  ;;  %v3143_v63 = vsel %vm4439_vm6, %v4059_v44, %v3142_v31  ;;  %v3086_v43 = vrot.slane %v4004_v37, 5  ;;  %v4005_v44 = vld [vmem:[%s4253_s17 + $0x20] sm:$0x1]  ;;  %v3950_v37 = vld [vmem:[%s4253_s17 + $0xb8] sm:$0xf] }
 0x1e4   : > { %2203 = vst.msk [vmem:[#allocation2 + $0x8] sm:$0xf] %vm2200_vm11, %v2109_v47  ;;  %v2107_v49 = vpop.permute.xlu0 %2106  ;;  %v2123_v51 = vpop.permute.xlu2 %2122  ;;  %v2482_v59 = vor.u32 %v2481_v46, %v2478_v45  ;;  %v4003_v46 = vld [vmem:[%s4253_s17 + $0x18] sm:$0xe] }
 0x1e5   : > { %2202 = vst.msk [vmem:[#allocation2 + $0x4] sm:$0xf] %vm2200_vm11, %v2107_v49  ;;  %v4040_v49 = vld [vmem:[%s4253_s17 + $0xac] sm:$0xf] }
 0x1e6   : > { %2210 = vst.msk [vmem:[#allocation2 + $0x24] sm:$0xf] %vm2200_vm11, %v2123_v51  ;;  %v3170_v52 = vrot.slane %v4040_v49, 5  ;;  %v2483_v6 = vrot.slane %v2482_v59, 4 }
 0x1e8   : > { %v3172_v11 = vrot.slane %v3170_v52, 4  ;;  %v2488_v21 = vsel %vm4264_vm2, %v2483_v6, %v2487_v7  ;;  %v3994_v7 = vld [vmem:[%s4253_s17 + $0xb4] sm:$0xf] }
 0x1e9   : > { %2330 = vrot.lane.b32.xlu1 %v3939_v54, %s4216_s23  ;;  %v2785_v54 = vrot.slane %v2783_v41, 5  ;;  %v4015_v41 = vld [vmem:[%s4253_s17 + $0x48] sm:$0xe] }
 0x1ea   : > { %2326 = vrot.lane.b32.xlu0 %v3937_v58, %s4216_s23  ;;  %2324 = vrot.lane.b32.xlu2 %v3936_v61, %s4216_s23  ;;  %v2581_v61 = vshll.u32 %v3968_v50, 16  ;;  %v3174_v24 = vsel %vm4439_vm6, %v3172_v11, %v3173_v12  ;;  %v3088_v50 = vrot.slane %v3086_v43, 4  ;;  %v2701_v11 = vshll.u32 %v3983_v2, 16 }
 0x1eb   : > { %v2115_v0 = vpop.permute.xlu1 %2114  ;;  %v2786_v4 = vsel %vm4264_vm2, %v2781_v53, %v2785_v54  ;;  %v3982_v53 = vld [vmem:[%s4253_s17 + $0x84] sm:$0xf]  ;;  %v2797_v12 = vshll.u32 %v3995_v3, 16 }
 0x1ec   : > { %2206 = vst.msk [vmem:[#allocation2 + $0x14] sm:$0xf] %vm2200_vm11, %v2115_v0  ;;  %v2113_v5 = vpop.permute.xlu0 %2112  ;;  %v2129_v9 = vpop.permute.xlu2 %2128  ;;  %v2575_v0 = vshll.u32 %v3967_v56, 16  ;;  %v2583_v8 = vrot.slane %v2581_v61, 5  ;;  %v4051_v56 = vrot.slane %v4003_v46, 9  ;;  %v2692_v59 = vshrl.u32 %v3982_v53, 16 }
 0x1ed   : > { %2205 = vst.msk [vmem:[#allocation2 + $0x10] sm:$0xf] %vm2200_vm11, %v2113_v5  ;;  %v4039_v5 = vld [vmem:[%s4253_s17 + $0xa8] sm:$0xe]  ;;  %v2695_v60 = vshll.u32 %v3982_v53, 16  ;;  %v2703_v20 = vrot.slane %v2701_v11, 5 }
 0x1ee   : > { %2213 = vst.msk [vmem:[#allocation2 + $0x30] sm:$0xf] %vm2200_vm11, %v2129_v9  ;;  %v2587_v9 = vrot.slane %v2585_v62, 4  ;;  %v2577_v15 = vrot.slane %v2575_v0, 5  ;;  %v3087_v62 = vsel %vm4439_vm6, %v4051_v56, %v3086_v43  ;;  %v4042_v53 = vld [vmem:[%s4253_s17 + $0xb4] sm:$0xe] }
 0x1ef   : > { %v2697_v55 = vrot.slane %v2695_v60, 5 }
 0x1f0   : > { %v2578_v26 = vor.u32 %v2577_v15, %v2574_v14  ;;  %v3941_v14 = vld [vmem:[%s4253_s17 + $0x84] sm:$0xf]  ;;  %v2788_v15 = vshrl.u32 %v3994_v7, 16 }
 0x1f1   : > { %2348 = vrot.lane.b32.xlu1 %v3948_v10, %s4216_s23 }
 0x1f2   : > { %2346 = vrot.lane.b32.xlu0 %v3947_v13, %s4216_s23  ;;  %2332 = vrot.lane.b32.xlu2 %v3940_v17, %s4216_s23  ;;  %v3969_v13 = vld [vmem:[%s4253_s17 + $0x50] sm:$0x1]  ;;  %v4063_v17 = vrot.slane %v4039_v5, 9  ;;  %v3116_v5 = vrot.slane %v3114_v48, 4 }
 0x1f3   : > { %v2121_v22 = vpop.permute.xlu1 %2120  ;;  %v2591_v23 = vshll.u32 %v3969_v13, 16  ;;  %v2801_v13 = vshrl.u32 %v3995_v3, 16 }
 0x1f4   : > { %2209 = vst.msk [vmem:[#allocation2 + $0x20] sm:$0xf] %vm2200_vm11, %v2121_v22  ;;  %v2119_v27 = vpop.permute.xlu0 %2118  ;;  %v2135_v32 = vpop.permute.xlu2 %2134  ;;  %v2588_v22 = vor.u32 %v2587_v9, %v2583_v8 }
 0x1f5   : > { %2208 = vst.msk [vmem:[#allocation2 + $0x1c] sm:$0xf] %vm2200_vm11, %v2119_v27  ;;  %v3171_v27 = vsel %vm4439_vm6, %v4063_v17, %v3170_v52  ;;  %v2694_v52 = vrot.slane %v2692_v59, 4  ;;  %v2705_v17 = vshrl.u32 %v3983_v2, 16 }
 0x1f6   : > { %2216 = vst.msk [vmem:[#allocation2 + $0x3c] sm:$0xf] %vm2200_vm11, %v2135_v32  ;;  %v2589_v31 = vrot.slane %v2588_v22, 4  ;;  %v2593_v32 = vrot.slane %v2591_v23, 5  ;;  %v2803_v22 = vrot.slane %v2801_v13, 4 }
 0x1f9   : > { %2907 = vrot.lane.b32.xlu1 %v2776_v36, %s4217_s24  ;;  %v2579_v36 = vrot.slane %v2578_v26, 4  ;;  %v2790_v26 = vrot.slane %v2788_v15, 4 }
 0x1fa   : > { %2893 = vrot.lane.b32.xlu0 %v2690_v30, %s4217_s24  ;;  %2891 = vrot.lane.b32.xlu2 %v2680_v39, %s4217_s24  ;;  %v2497_v30 = vrot.slane %v2495_v29, 5  ;;  %v2594_v39 = vsel %vm4264_vm2, %v2589_v31, %v2593_v32  ;;  %v2707_v29 = vrot.slane %v2705_v17, 4  ;;  %v3984_v32 = vld [vmem:[%s4253_s17 + $0x8c] sm:$0x1] }
 0x1fb   : > { %v2127_v47 = vpop.permute.xlu1 %2126  ;;  %v2584_v40 = vsel %vm4264_vm2, %v2579_v36, %v2583_v8  ;;  %v3942_v8 = vld [vmem:[%s4253_s17 + $0x88] sm:$0xf] }
 0x1fc   : > { %2212 = vst.msk [vmem:[#allocation2 + $0x2c] sm:$0xf] %vm2200_vm11, %v2127_v47  ;;  %v2125_v51 = vpop.permute.xlu0 %2124  ;;  %v2141_v58 = vpop.permute.xlu2 %2140  ;;  %v2498_v45 = vsel %vm4264_vm2, %v2493_v35, %v2497_v30  ;;  %v4055_v47 = vrot.slane %v4015_v41, 9  ;;  %v3949_v30 = vld [vmem:[%s4253_s17 + $0xb4] sm:$0xf] }
 0x1fd   : > { %2211 = vst.msk [vmem:[#allocation2 + $0x28] sm:$0xf] %vm2200_vm11, %v2125_v51  ;;  %v3089_v51 = vrot.slane %v4005_v44, 5  ;;  %v4031_v44 = vld [vmem:[%s4253_s17 + $0x88] sm:$0xf] }
 0x1fe   : > { %2219 = vst.msk [vmem:[#allocation2 + $0x48] sm:$0xf] %vm2200_vm11, %v2141_v58  ;;  %v3115_v58 = vsel %vm4439_vm6, %v4055_v47, %v3114_v48  ;;  %v3149_v59 = vrot.slane %v4031_v44, 5 }
 0x1ff   : > { %v3090_v61 = vsel %vm4439_vm6, %v3088_v50, %v3089_v51 }
 0x201   : > { %3230 = vrot.lane.b32.xlu1 %v3146_v57, %s4218_s25 }
 0x202   : > { %3228 = vrot.lane.b32.xlu0 %v3143_v63, %s4218_s25  ;;  %2909 = vrot.lane.b32.xlu2 %v2786_v4, %s4217_s24  ;;  %v4017_v63 = vld [vmem:[%s4253_s17 + $0x50] sm:$0x1] }
 0x203   : > { %v2133_v10 = vpop.permute.xlu1 %2132  ;;  %v3117_v6 = vrot.slane %v4017_v63, 5 }
 0x204   : > { %2215 = vst.msk [vmem:[#allocation2 + $0x38] sm:$0xf] %vm2200_vm11, %v2133_v10  ;;  %v2131_v16 = vpop.permute.xlu0 %2130  ;;  %v2147_v19 = vpop.permute.xlu2 %2146  ;;  %v2698_v10 = vor.u32 %v2697_v55, %v2694_v52  ;;  %v4030_v52 = vld [vmem:[%s4253_s17 + $0x84] sm:$0xe]  ;;  %v4064_v55 = vrot.slane %v4042_v53, 9 }
 0x205   : > { %2214 = vst.msk [vmem:[#allocation2 + $0x34] sm:$0xf] %vm2200_vm11, %v2131_v16  ;;  %v2791_v16 = vshll.u32 %v3994_v7, 16  ;;  %v3118_v18 = vsel %vm4439_vm6, %v3116_v5, %v3117_v6  ;;  %v3151_v5 = vrot.slane %v3149_v59, 4  ;;  %v3960_v7 = vld [vmem:[%s4253_s17 + $0x2c] sm:$0x1] }
 0x206   : > { %2222 = vst.msk [vmem:[#allocation2 + $0x54] sm:$0xf] %vm2200_vm11, %v2147_v19  ;;  %v2699_v19 = vrot.slane %v2698_v10, 4  ;;  %v4060_v11 = vrot.slane %v4030_v52, 9  ;;  %v2519_v17 = vshll.u32 %v3960_v7, 16 }
 0x209   : > { %2859 = vrot.lane.b32.xlu1 %v2488_v21, %s4217_s24  ;;  %v2799_v21 = vrot.slane %v2797_v12, 5  ;;  %v3971_v12 = vld [vmem:[%s4253_s17 + $0x58] sm:$0xf] }
 0x20a   : > { %3246 = vrot.lane.b32.xlu0 %v3174_v24, %s4218_s25  ;;  %3244 = vrot.lane.b32.xlu2 %v3171_v27, %s4218_s25  ;;  %v3996_v24 = vld [vmem:[%s4253_s17 + $0xbc] sm:$0x1]  ;;  %v2793_v27 = vrot.slane %v2791_v16, 5 }
 0x20b   : > { %v2139_v34 = vpop.permute.xlu1 %2138  ;;  %v2804_v36 = vor.u32 %v2803_v22, %v2799_v21  ;;  %v3150_v22 = vsel %vm4439_vm6, %v4060_v11, %v3149_v59 }
 0x20c   : > { %2218 = vst.msk [vmem:[#allocation2 + $0x44] sm:$0xf] %vm2200_vm11, %v2139_v34  ;;  %v2137_v33 = vpop.permute.xlu0 %2136  ;;  %v2153_v38 = vpop.permute.xlu2 %2152  ;;  %v2704_v34 = vsel %vm4264_vm2, %v2699_v19, %v2703_v20  ;;  %v2794_v35 = vor.u32 %v2793_v27, %v2790_v26  ;;  %v4044_v26 = vld [vmem:[%s4253_s17 + $0xbc] sm:$0x1] }
 0x20d   : > { %2217 = vst.msk [vmem:[#allocation2 + $0x40] sm:$0xf] %vm2200_vm11, %v2137_v33  ;;  %v2807_v33 = vshll.u32 %v3996_v24, 16 }
 0x20e   : > { %2225 = vst.msk [vmem:[#allocation2 + $0x60] sm:$0xf] %vm2200_vm11, %v2153_v38  ;;  %v2708_v38 = vor.u32 %v2707_v29, %v2703_v20  ;;  %v2795_v43 = vrot.slane %v2794_v35, 4  ;;  %v2605_v20 = vshll.u32 %v3971_v12, 16  ;;  %v3180_v35 = vrot.slane %v4044_v26, 5 }
 0x20f   : > { %v2809_v41 = vrot.slane %v2807_v33, 5 }
 0x210   : > { %v2709_v47 = vrot.slane %v2708_v38, 4 }
 0x211   : > { %2877 = vrot.lane.b32.xlu1 %v2594_v39, %s4217_s24  ;;  %v2711_v39 = vshll.u32 %v3984_v32, 16  ;;  %v3972_v32 = vld [vmem:[%s4253_s17 + $0x5c] sm:$0x1] }
 0x212   : > { %2875 = vrot.lane.b32.xlu0 %v2584_v40, %s4217_s24  ;;  %2861 = vrot.lane.b32.xlu2 %v2498_v45, %s4217_s24  ;;  %v2805_v40 = vrot.slane %v2804_v36, 4  ;;  %v3959_v45 = vld [vmem:[%s4253_s17 + $0x28] sm:$0xf] }
 0x213   : > { %v2145_v49 = vpop.permute.xlu1 %2144  ;;  %v2713_v48 = vrot.slane %v2711_v39, 5  ;;  %v2513_v56 = vshrl.u32 %v3959_v45, 16 }
 0x214   : > { %2221 = vst.msk [vmem:[#allocation2 + $0x50] sm:$0xf] %vm2200_vm11, %v2145_v49  ;;  %v2143_v54 = vpop.permute.xlu0 %2142  ;;  %v2159_v57 = vpop.permute.xlu2 %2158  ;;  %v3958_v49 = vld [vmem:[%s4253_s17 + $0x24] sm:$0xf]  ;;  %v2810_v51 = vsel %vm4264_vm2, %v2805_v40, %v2809_v41 }
 0x215   : > { %2220 = vst.msk [vmem:[#allocation2 + $0x4c] sm:$0xf] %vm2200_vm11, %v2143_v54  ;;  %v2509_v54 = vshll.u32 %v3959_v45, 16  ;;  %v2500_v60 = vshrl.u32 %v3958_v49, 16  ;;  %v2714_v63 = vsel %vm4264_vm2, %v2709_v47, %v2713_v48  ;;  %v2515_v3 = vrot.slane %v2513_v56, 4 }
 0x216   : > { %2228 = vst.msk [vmem:[#allocation2 + $0x6c] sm:$0xf] %vm2200_vm11, %v2159_v57  ;;  %v2800_v57 = vsel %vm4264_vm2, %v2795_v43, %v2799_v21  ;;  %v2609_v21 = vshrl.u32 %v3971_v12, 16  ;;  %v4007_v43 = vld [vmem:[%s4253_s17 + $0x28] sm:$0xf]  ;;  %v2615_v45 = vshll.u32 %v3972_v32, 16 }
 0x217   : > { %v2511_v2 = vrot.slane %v2509_v54, 5  ;;  %v4019_v54 = vld [vmem:[%s4253_s17 + $0x58] sm:$0xf] }
 0x218   : > { %v2611_v36 = vrot.slane %v2609_v21, 4  ;;  %v2617_v53 = vrot.slane %v2615_v45, 5 }
 0x219   : > { %3212 = vrot.lane.b32.xlu1 %v3115_v58, %s4218_s25  ;;  %v4043_v58 = vld [vmem:[%s4253_s17 + $0xb8] sm:$0xf]  ;;  %v2516_v16 = vor.u32 %v2515_v3, %v2511_v2 }
 0x21a   : > { %3198 = vrot.lane.b32.xlu0 %v3090_v61, %s4218_s25  ;;  %3196 = vrot.lane.b32.xlu2 %v3087_v62, %s4218_s25  ;;  %v2503_v61 = vshll.u32 %v3958_v49, 16  ;;  %v4032_v62 = vld [vmem:[%s4253_s17 + $0x8c] sm:$0x1]  ;;  %v3093_v49 = vrot.slane %v4007_v43, 5 }
 0x21b   : > { %v2151_v0 = vpop.permute.xlu1 %2150  ;;  %v3152_v6 = vrot.slane %v4032_v62, 5  ;;  %v2517_v27 = vrot.slane %v2516_v16, 4  ;;  %v4020_v62 = vld [vmem:[%s4253_s17 + $0x5c] sm:$0x1] }
 0x21c   : > { %2224 = vst.msk [vmem:[#allocation2 + $0x5c] sm:$0xf] %vm2200_vm11, %v2151_v0  ;;  %v2149_v4 = vpop.permute.xlu0 %2148  ;;  %v2165_v9 = vpop.permute.xlu2 %2164  ;;  %v3177_v0 = vrot.slane %v4043_v58, 5  ;;  %v3095_v7 = vrot.slane %v3093_v49, 4 }
 0x21d   : > { %2223 = vst.msk [vmem:[#allocation2 + $0x58] sm:$0xf] %vm2200_vm11, %v2149_v4 }
 0x21e   : > { %2231 = vst.msk [vmem:[#allocation2 + $0x78] sm:$0xf] %vm2200_vm11, %v2165_v9  ;;  %v2505_v9 = vrot.slane %v2503_v61, 5  ;;  %v3178_v15 = vsel %vm4439_vm6, %v4064_v55, %v3177_v0  ;;  %v4008_v55 = vld [vmem:[%s4253_s17 + $0x2c] sm:$0x1] }
 0x221   : > { %2336 = vrot.lane.b32.xlu1 %v3942_v8, %s4216_s23  ;;  %v2502_v8 = vrot.slane %v2500_v60, 4  ;;  %v3121_v60 = vrot.slane %v4019_v54, 5 }
 0x222   : > { %2334 = vrot.lane.b32.xlu0 %v3941_v14, %s4216_s23  ;;  %3214 = vrot.lane.b32.xlu2 %v3118_v18, %s4218_s25  ;;  %v3970_v14 = vld [vmem:[%s4253_s17 + $0x54] sm:$0xf]  ;;  %v3153_v18 = vsel %vm4439_vm6, %v3151_v5, %v3152_v6 }
 0x223   : > { %v2157_v23 = vpop.permute.xlu1 %2156  ;;  %v2506_v19 = vor.u32 %v2505_v9, %v2502_v8  ;;  %v2599_v24 = vshll.u32 %v3970_v14, 16  ;;  %v3986_v5 = vld [vmem:[%s4253_s17 + $0x94] sm:$0xf]  ;;  %v3096_v8 = vrot.slane %v4008_v55, 5  ;;  %v3985_v9 = vld [vmem:[%s4253_s17 + $0x90] sm:$0xf] }
 0x224   : > { %2227 = vst.msk [vmem:[#allocation2 + $0x68] sm:$0xf] %vm2200_vm11, %v2157_v23  ;;  %v2155_v28 = vpop.permute.xlu0 %2154  ;;  %v2301_v31 = vpop.permute.xlu2 %2300  ;;  %v2596_v23 = vshrl.u32 %v3970_v14, 16  ;;  %v2725_v12 = vshll.u32 %v3986_v5, 16  ;;  %v2719_v16 = vshll.u32 %v3985_v9, 16 }
 0x225   : > { %2226 = vst.msk [vmem:[#allocation2 + $0x64] sm:$0xf] %vm2200_vm11, %v2155_v28  ;;  %v2521_v28 = vrot.slane %v2519_v17, 5  ;;  %v2601_v38 = vrot.slane %v2599_v24, 5  ;;  %v3361_v17 = vld [vmem:[%s5785_s1 + $0x10] sm:$0x3] }
 0x226   : > { %2396 = vst.msk [vmem:[#allocation2 + $0x4] sm:$0xf] %vm2394_vm12, %v2301_v31  ;;  %v2507_v31 = vrot.slane %v2506_v19, 4  ;;  %v3455_v19 = vunpack.c.l.b16 %v3361_v17  ;;  %v3987_v24 = vld [vmem:[%s4253_s17 + $0x98] sm:$0x1] }
 0x227   : > { %v2522_v40 = vsel %vm4264_vm2, %v2517_v27, %v2521_v28  ;;  %v2721_v27 = vrot.slane %v2719_v16, 5 }
 0x228   : > { %v2512_v41 = vsel %vm4264_vm2, %v2507_v31, %v2511_v2  ;;  %v3124_v2 = vrot.slane %v4020_v62, 5 }
 0x229   : > { %2895 = vrot.lane.b32.xlu1 %v2704_v34, %s4217_s24  ;;  %v2607_v34 = vrot.slane %v2605_v20, 5  ;;  %v5400_v20 = vrot.slane %v2725_v12, 5 }
 0x22a   : > { %2352 = vrot.lane.b32.xlu0 %v3950_v37, %s4216_s23  ;;  %2350 = vrot.lane.b32.xlu2 %v3949_v30, %s4216_s23  ;;  %v3179_v37 = vrot.slane %v3177_v0, 4  ;;  %v2598_v30 = vrot.slane %v2596_v23, 4  ;;  %v3123_v0 = vrot.slane %v3121_v60, 4 }
 0x22b   : > { %v2163_v42 = vpop.permute.xlu1 %2162  ;;  %v2612_v44 = vor.u32 %v2611_v36, %v2607_v34  ;;  %v3997_v36 = vld [vmem:[%s4253_s17 + $0xc0] sm:$0xf] }
 0x22c   : > { %2230 = vst.msk [vmem:[#allocation2 + $0x74] sm:$0xf] %vm2200_vm11, %v2163_v42  ;;  %v2161_v46 = vpop.permute.xlu0 %2160  ;;  %v2307_v50 = vpop.permute.xlu2 %2306  ;;  %v4006_v42 = vld [vmem:[%s4253_s17 + $0x24] sm:$0xe]  ;;  %v2602_v47 = vor.u32 %v2601_v38, %v2598_v30  ;;  %v3125_v11 = vsel %vm4439_vm6, %v3123_v0, %v3124_v2  ;;  %v3944_v30 = vld [vmem:[%s4253_s17 + $0x94] sm:$0xf] }
 0x22d   : > { %2229 = vst.msk [vmem:[#allocation2 + $0x70] sm:$0xf] %vm2200_vm11, %v2161_v46  ;;  %v3181_v46 = vsel %vm4439_vm6, %v3179_v37, %v3180_v35  ;;  %v4052_v48 = vrot.slane %v4006_v42, 9  ;;  %v2735_v35 = vshll.u32 %v3987_v24, 16  ;;  %v2812_v42 = vshrl.u32 %v3997_v36, 16 }
 0x22e   : > { %2399 = vst.msk [vmem:[#allocation2 + $0x10] sm:$0xf] %vm2394_vm12, %v2307_v50  ;;  %v2815_v43 = vshll.u32 %v3997_v36, 16  ;;  %v4035_v24 = vld [vmem:[%s4253_s17 + $0x98] sm:$0x1] }
 0x22f   : > { %v3094_v59 = vsel %vm4439_vm6, %v4052_v48, %v3093_v49  ;;  %v2814_v54 = vrot.slane %v2812_v42, 4  ;;  %v3974_v36 = vld [vmem:[%s4253_s17 + $0x64] sm:$0xf] }
 0x231   : > { %2913 = vrot.lane.b32.xlu1 %v2810_v51, %s4217_s24  ;;  %v2613_v51 = vrot.slane %v2612_v44, 4  ;;  %v4174_v44 = vld [vmem:[%s5785_s1] sm:$0xff] }
 0x232   : > { %2911 = vrot.lane.b32.xlu0 %v2800_v57, %s4217_s24  ;;  %2897 = vrot.lane.b32.xlu2 %v2714_v63, %s4217_s24  ;;  %v2603_v57 = vrot.slane %v2602_v47, 4  ;;  %v4018_v63 = vld [vmem:[%s4253_s17 + $0x54] sm:$0xe] }
 0x233   : > { %v2299_v4 = vpop.permute.xlu1 %2298  ;;  %v2618_v61 = vsel %vm4264_vm2, %v2613_v51, %v2617_v53  ;;  %v3999_v53 = vld [vmem:[%s4253_s17 + $0xc8] sm:$0x1] }
 0x234   : > { %2395 = vst.msk [vmem:[#allocation2] sm:$0xf] %vm2394_vm12, %v2299_v4  ;;  %v2167_v10 = vpop.permute.xlu0 %2166  ;;  %v2313_v13 = vpop.permute.xlu2 %2312  ;;  %v2608_v52 = vsel %vm4264_vm2, %v2603_v57, %v2607_v34  ;;  %v4056_v4 = vrot.slane %v4018_v63, 9  ;;  %v4175_v34 = vld [vmem:[%s5785_s1 + $0x8] sm:$0xff]  ;;  %v2831_v63 = vshll.u32 %v3999_v53, 16 }
 0x235   : > { %2232 = vst.msk [vmem:[#allocation2 + $0x7c] sm:$0xf] %vm2200_vm11, %v2167_v10 }
 0x236   : > { %2402 = vst.msk [vmem:[#allocation2 + $0x1c] sm:$0xf] %vm2394_vm12, %v2313_v13  ;;  %v2729_v13 = vshrl.u32 %v3986_v5, 16  ;;  %v3122_v14 = vsel %vm4439_vm6, %v4056_v4, %v3121_v60  ;;  %v4033_v60 = vld [vmem:[%s4253_s17 + $0x90] sm:$0xe]  ;;  %v2833_v5 = vrot.slane %v2831_v63, 5 }
 0x237   : > { %v4061_v0 = vrot.slane %v4033_v60, 9 }
 0x238   : > { %v2731_v21 = vrot.slane %v2729_v13, 4 }
 0x239   : > { %3248 = vrot.lane.b32.xlu1 %v3178_v15, %s4218_s25  ;;  %v2716_v15 = vshrl.u32 %v3985_v9, 16 }
 0x23a   : > { %3234 = vrot.lane.b32.xlu0 %v3153_v18, %s4218_s25  ;;  %3232 = vrot.lane.b32.xlu2 %v3150_v22, %s4218_s25  ;;  %v3097_v18 = vsel %vm4439_vm6, %v3095_v7, %v3096_v8  ;;  %v3458_v22 = vpack.c.b16 %v3455_v19, %v3455_v19  ;;  %v2732_v37 = vor.u32 %v2731_v21, %v5400_v20  ;;  %v3973_v7 = vld [vmem:[%s4253_s17 + $0x60] sm:$0xf] }
 0x23b   : > { %v2305_v29 = vpop.permute.xlu1 %2304  ;;  %v2718_v26 = vrot.slane %v2716_v15, 4  ;;  %v2620_v15 = vshrl.u32 %v3973_v7, 16  ;;  %v2623_v16 = vshll.u32 %v3973_v7, 16 }
 0x23c   : > { %2398 = vst.msk [vmem:[#allocation2 + $0xc] sm:$0xf] %vm2394_vm12, %v2305_v29  ;;  %v2303_v33 = vpop.permute.xlu0 %2302  ;;  %v2319_v39 = vpop.permute.xlu2 %2318  ;;  %v3998_v29 = vld [vmem:[%s4253_s17 + $0xc4] sm:$0xf]  ;;  %v3512_v31 = vsel %vm3510_vm13, %v3458_v22, 0  ;;  %v2733_v45 = vrot.slane %v2732_v37, 4 }
 0x23d   : > { %2397 = vst.msk [vmem:[#allocation2 + $0x8] sm:$0xf] %vm2394_vm12, %v2303_v33  ;;  %4177 = vmatpush.bf16.msra.mxu2 %v3512_v31  ;;  %4178 = vmatpush.bf16.msra.mxu3 %v3512_v31  ;;  %v3951_v33 = vld [vmem:[%s4253_s17 + $0xc0] sm:$0xf]  ;;  %v2722_v38 = vor.u32 %v2721_v27, %v2718_v26  ;;  %v3961_v22 = vld [vmem:[%s4253_s17 + $0x30] sm:$0xf] }
 0x23e   : > { %2405 = vst.msk [vmem:[#allocation2 + $0x28] sm:$0xf] %vm2394_vm12, %v2319_v39  ;;  %3519 = vmatpush.bf16.msra.mxu0 %v3512_v31  ;;  %4176 = vmatpush.bf16.msra.mxu1 %v3512_v31  ;;  %v2821_v39 = vshll.u32 %v3998_v29, 16  ;;  %v2524_v26 = vshrl.u32 %v3961_v22, 16  ;;  %v2527_v27 = vshll.u32 %v3961_v22, 16  ;;  %v2622_v31 = vrot.slane %v2620_v15, 4 }
 0x23f   : > { %v2723_v48 = vrot.slane %v2722_v38, 4 }
 0x240   : > { %v5421_v49 = vrot.slane %v2821_v39, 5  ;;  %v3159_v39 = vrot.slane %v4035_v24, 5 }
 0x241   : > { %2865 = vrot.lane.b32.xlu1 %v2522_v40, %s4217_s24  ;;  %v2825_v40 = vshrl.u32 %v3998_v29, 16  ;;  %4180 = vmatpush.bf16.msra.mxu2 %v4175_v34 }
 0x242   : > { %2863 = vrot.lane.b32.xlu0 %v2512_v41, %s4217_s24  ;;  %3250 = vrot.lane.b32.xlu2 %v3181_v46, %s4218_s25  ;;  %v3943_v41 = vld [vmem:[%s4253_s17 + $0x90] sm:$0xf]  ;;  %v2737_v46 = vrot.slane %v2735_v35, 5 }
 0x243   : > { %v2311_v50 = vpop.permute.xlu1 %2310  ;;  %4181 = vmatpush.bf16.msra.mxu3 %v4175_v34  ;;  %3520 = vmatpush.bf16.msra.mxu0 %v4175_v34 }
 0x244   : > { %2401 = vst.msk [vmem:[#allocation2 + $0x18] sm:$0xf] %vm2394_vm12, %v2311_v50  ;;  %v2309_v56 = vpop.permute.xlu0 %2308  ;;  %v2325_v58 = vpop.permute.xlu2 %2324  ;;  %v2827_v50 = vrot.slane %v2825_v40, 4  ;;  %4179 = vmatpush.bf16.msra.mxu1 %v4175_v34  ;;  %v2526_v40 = vrot.slane %v2524_v26, 4 }
 0x245   : > { %2400 = vst.msk [vmem:[#allocation2 + $0x14] sm:$0xf] %vm2394_vm12, %v2309_v56  ;;  %v2817_v56 = vrot.slane %v2815_v43, 5  ;;  %4183 = vmatpush.bf16.msra.mxu2 %v4174_v44 }
 0x246   : > { %2408 = vst.msk [vmem:[#allocation2 + $0x34] sm:$0xf] %vm2394_vm12, %v2325_v58  ;;  %v2738_v58 = vsel %vm4264_vm2, %v2733_v45, %v2737_v46  ;;  %v2828_v62 = vor.u32 %v2827_v50, %v5421_v49  ;;  %v2629_v45 = vshll.u32 %v3974_v36, 16 }
 0x247   : > { %4184 = vmatpush.bf16.msra.mxu3 %v4174_v44  ;;  %3521 = vmatpush.bf16.msra.mxu0 %v4174_v44  ;;  %v2818_v55 = vor.u32 %v2817_v56, %v2814_v54 }
 0x248   : > { %4182 = vmatpush.bf16.msra.mxu1 %v4174_v44  ;;  %v2829_v4 = vrot.slane %v2828_v62, 4  ;;  %v2631_v54 = vrot.slane %v2629_v45, 5 }
 0x249   : > { %3200 = vrot.lane.b32.xlu1 %v3094_v59, %s4218_s25  ;;  %v2728_v59 = vsel %vm4264_vm2, %v2723_v48, %v5400_v20  ;;  %v2819_v9 = vrot.slane %v2818_v55, 4 }
 0x24a   : > { %2881 = vrot.lane.b32.xlu0 %v2618_v61, %s4217_s24  ;;  %2879 = vrot.lane.b32.xlu2 %v2608_v52, %s4217_s24  ;;  %v4034_v61 = vld [vmem:[%s4253_s17 + $0x94] sm:$0xf]  ;;  %v3952_v52 = vld [vmem:[%s4253_s17 + $0xc4] sm:$0xf]  ;;  %v2834_v17 = vsel %vm4264_vm2, %v2829_v4, %v2833_v5 }
 0x24b   : > { %v2317_v3 = vpop.permute.xlu1 %2316  ;;  %v3156_v2 = vrot.slane %v4034_v61, 5  ;;  %v2824_v21 = vsel %vm4264_vm2, %v2819_v9, %v5421_v49  ;;  %v2633_v49 = vshrl.u32 %v3974_v36, 16  ;;  %v4009_v4 = vld [vmem:[%s4253_s17 + $0x30] sm:$0xe] }
 0x24c   : > { %2404 = vst.msk [vmem:[#allocation2 + $0x24] sm:$0xf] %vm2394_vm12, %v2317_v3  ;;  %v2315_v6 = vpop.permute.xlu0 %2314  ;;  %v2333_v10 = vpop.permute.xlu2 %2332 }
 0x24d   : > { %2403 = vst.msk [vmem:[#allocation2 + $0x20] sm:$0xf] %vm2394_vm12, %v2315_v6  ;;  %v4046_v6 = vld [vmem:[%s4253_s17 + $0xc4] sm:$0xf]  ;;  %v3157_v13 = vsel %vm4439_vm6, %v4061_v0, %v3156_v2  ;;  %v3158_v38 = vrot.slane %v3156_v2, 4  ;;  %v2635_v62 = vrot.slane %v2633_v49, 4 }
 0x24e   : > { %2412 = vst.msk [vmem:[#allocation2 + $0x44] sm:$0xf] %vm2394_vm12, %v2333_v10  ;;  %v3962_v10 = vld [vmem:[%s4253_s17 + $0x34] sm:$0xf] }
 0x24f   : > { %v2533_v19 = vshll.u32 %v3962_v10, 16  ;;  %v2537_v20 = vshrl.u32 %v3962_v10, 16  ;;  %v3160_v50 = vsel %vm4439_vm6, %v3158_v38, %v3159_v39 }
 0x251   : > { %3218 = vrot.lane.b32.xlu1 %v3125_v11, %s4218_s25  ;;  %v4047_v11 = vld [vmem:[%s4253_s17 + $0xc8] sm:$0x1]  ;;  %v2535_v37 = vrot.slane %v2533_v19, 5  ;;  %v2539_v35 = vrot.slane %v2537_v20, 4 }
 0x252   : > { %3216 = vrot.lane.b32.xlu0 %v3122_v14, %s4218_s25  ;;  %3202 = vrot.lane.b32.xlu2 %v3097_v18, %s4218_s25  ;;  %v3184_v14 = vrot.slane %v4046_v6, 5  ;;  %v4045_v18 = vld [vmem:[%s4253_s17 + $0xc0] sm:$0xe]  ;;  %v2636_v6 = vor.u32 %v2635_v62, %v2631_v54 }
 0x253   : > { %v2323_v23 = vpop.permute.xlu1 %2322  ;;  %v4065_v29 = vrot.slane %v4045_v18, 9 }
 0x254   : > { %2407 = vst.msk [vmem:[#allocation2 + $0x30] sm:$0xf] %vm2394_vm12, %v2323_v23  ;;  %v2321_v28 = vpop.permute.xlu0 %2320  ;;  %v2892_v32 = vpop.permute.xlu2 %2891  ;;  %v3187_v23 = vrot.slane %v4047_v11, 5  ;;  %v4053_v11 = vrot.slane %v4009_v4, 9  ;;  %v2637_v15 = vrot.slane %v2636_v6, 4 }
 0x255   : > { %2406 = vst.msk [vmem:[#allocation2 + $0x2c] sm:$0xf] %vm2394_vm12, %v2321_v28  ;;  %v3186_v28 = vrot.slane %v3184_v14, 4  ;;  %v3185_v46 = vsel %vm4439_vm6, %v4065_v29, %v3184_v14 }
 0x257   : > { %v3188_v43 = vsel %vm4439_vm6, %v3186_v28, %v3187_v23  ;;  %v4021_v23 = vld [vmem:[%s4253_s17 + $0x60] sm:$0xe]  ;;  %v4000_v28 = vld [vmem:[%s4253_s17 + $0xcc] sm:$0xf] }
 0x259   : > { %2354 = vrot.lane.b32.xlu1 %v3951_v33, %s4216_s23  ;;  %v3963_v33 = vld [vmem:[%s4253_s17 + $0x38] sm:$0x1] }
 0x25a   : > { %2340 = vrot.lane.b32.xlu0 %v3944_v30, %s4216_s23  ;;  %2338 = vrot.lane.b32.xlu2 %v3943_v41, %s4216_s23  ;;  %v2529_v41 = vrot.slane %v2527_v27, 5  ;;  %v2543_v48 = vshll.u32 %v3963_v33, 16  ;;  %v3945_v33 = vld [vmem:[%s4253_s17 + $0x9c] sm:$0xf] }
 0x25b   : > { %v2331_v47 = vpop.permute.xlu1 %2330 }
 0x25c   : > { %2411 = vst.msk [vmem:[#allocation2 + $0x40] sm:$0xf] %vm2394_vm12, %v2331_v47  ;;  %v2327_v51 = vpop.permute.xlu0 %2326  ;;  %v2910_v57 = vpop.permute.xlu2 %2909  ;;  %v2540_v47 = vor.u32 %v2539_v35, %v2535_v37  ;;  %v2839_v35 = vshll.u32 %v4000_v28, 16 }
 0x25d   : > { %2409 = vst.msk [vmem:[#allocation2 + $0x38] sm:$0xf] %vm2394_vm12, %v2327_v51  ;;  %v2530_v51 = vor.u32 %v2529_v41, %v2526_v40  ;;  %v3988_v41 = vld [vmem:[%s4253_s17 + $0x9c] sm:$0xf] }
 0x25e   : > { %2972 = vst.msk [vmem:[#allocation2 + $0x40] sm:$0xf] %vm2955_vm14, %v2892_v32  ;;  %v2625_v32 = vrot.slane %v2623_v16, 5  ;;  %v2841_v45 = vrot.slane %v2839_v35, 5 }
 0x25f   : > { %v2531_v61 = vrot.slane %v2530_v51, 4  ;;  %v3990_v51 = vld [vmem:[%s4253_s17 + $0xa4] sm:$0x1] }
 0x260   : > { %v2626_v44 = vor.u32 %v2625_v32, %v2622_v31  ;;  %v3989_v32 = vld [vmem:[%s4253_s17 + $0xa0] sm:$0xf]  ;;  %v2759_v62 = vshll.u32 %v3990_v51, 16 }
 0x261   : > { %2901 = vrot.lane.b32.xlu1 %v2738_v58, %s4217_s24  ;;  %v2545_v58 = vrot.slane %v2543_v48, 5  ;;  %v2536_v5 = vsel %vm4264_vm2, %v2531_v61, %v2535_v37  ;;  %v2836_v37 = vshrl.u32 %v4000_v28, 16  ;;  %v2749_v38 = vshll.u32 %v3989_v32, 16  ;;  %v3976_v28 = vld [vmem:[%s4253_s17 + $0x6c] sm:$0xf] }
 0x262   : > { %2899 = vrot.lane.b32.xlu0 %v2728_v59, %s4217_s24  ;;  %2356 = vrot.lane.b32.xlu2 %v3952_v52, %s4216_s23  ;;  %v2627_v53 = vrot.slane %v2626_v44, 4  ;;  %v4010_v59 = vld [vmem:[%s4253_s17 + $0x34] sm:$0xf]  ;;  %v3975_v52 = vld [vmem:[%s4253_s17 + $0x68] sm:$0x1]  ;;  %v2753_v39 = vshrl.u32 %v3989_v32, 16 }
 0x263   : > { %v2349_v3 = vpop.permute.xlu1 %2348  ;;  %v3100_v0 = vrot.slane %v4010_v59, 5  ;;  %v2639_v7 = vshll.u32 %v3975_v52, 16  ;;  %v2838_v44 = vrot.slane %v2836_v37, 4  ;;  %v2751_v48 = vrot.slane %v2749_v38, 5  ;;  %v3946_v52 = vld [vmem:[%s4253_s17 + $0xa0] sm:$0xf] }
 0x264   : > { %2420 = vst.msk [vmem:[#allocation2 + $0x64] sm:$0xf] %vm2394_vm12, %v2349_v3  ;;  %v2347_v8 = vpop.permute.xlu0 %2346  ;;  %v3245_v12 = vpop.permute.xlu2 %3244  ;;  %v2632_v55 = vsel %vm4264_vm2, %v2627_v53, %v2631_v54  ;;  %v4011_v3 = vld [vmem:[%s4253_s17 + $0x38] sm:$0x1]  ;;  %v2755_v49 = vrot.slane %v2753_v39, 4  ;;  %v2761_v6 = vrot.slane %v2759_v62, 5 }
 0x265   : > { %2419 = vst.msk [vmem:[#allocation2 + $0x60] sm:$0xf] %vm2394_vm12, %v2347_v8  ;;  %v3102_v8 = vrot.slane %v3100_v0, 4  ;;  %v3103_v9 = vrot.slane %v4011_v3, 5  ;;  %v2641_v16 = vrot.slane %v2639_v7, 5  ;;  %v3101_v19 = vsel %vm4439_vm6, %v4053_v11, %v3100_v0 }
 0x266   : > { %2981 = vst.msk [vmem:[#allocation2 + $0x64] sm:$0xf] %vm2955_vm14, %v2910_v57  ;;  %v2541_v57 = vrot.slane %v2540_v47, 4  ;;  %v4001_v47 = vld [vmem:[%s4253_s17 + $0xd0] sm:$0xf]  ;;  %v2756_v61 = vor.u32 %v2755_v49, %v2751_v48  ;;  %v2644_v35 = vshrl.u32 %v3976_v28, 16 }
 0x267   : > { %v3104_v18 = vsel %vm4439_vm6, %v3102_v8, %v3103_v9  ;;  %v2642_v22 = vsel %vm4264_vm2, %v2637_v15, %v2641_v16  ;;  %v2845_v59 = vshll.u32 %v4001_v47, 16  ;;  %v4037_v7 = vld [vmem:[%s4253_s17 + $0xa0] sm:$0xf]  ;;  %v4050_v39 = vld [vmem:[%s4253_s17 + $0xd4] sm:$0x1] }
 0x268   : > { %v2546_v2 = vsel %vm4264_vm2, %v2541_v57, %v2545_v58  ;;  %v3954_v57 = vld [vmem:[%s4253_s17 + $0xd0] sm:$0xf]  ;;  %v2842_v58 = vor.u32 %v2841_v45, %v2838_v44  ;;  %v3163_v15 = vrot.slane %v4037_v7, 5  ;;  %v4048_v44 = vld [vmem:[%s4253_s17 + $0xcc] sm:$0xe]  ;;  %v2646_v49 = vrot.slane %v2644_v35, 4 }
 0x269   : > { %3236 = vrot.lane.b32.xlu1 %v3157_v13, %s4218_s25 }
 0x26a   : > { %2917 = vrot.lane.b32.xlu0 %v2834_v17, %s4217_s24  ;;  %2915 = vrot.lane.b32.xlu2 %v2824_v21, %s4217_s24  ;;  %v4023_v21 = vld [vmem:[%s4253_s17 + $0x68] sm:$0x1]  ;;  %v2843_v0 = vrot.slane %v2842_v58, 4 }
 0x26b   : > { %v2908_v34 = vpop.permute.xlu1 %2907  ;;  %v3131_v27 = vrot.slane %v4023_v21, 5 }
 0x26c   : > { %2980 = vst.msk [vmem:[#allocation2 + $0x60] sm:$0xf] %vm2955_vm14, %v2908_v34  ;;  %v2894_v30 = vpop.permute.xlu0 %2893  ;;  %v2862_v42 = vpop.permute.xlu2 %2861  ;;  %v4057_v34 = vrot.slane %v4021_v23, 9 }
 0x26d   : > { %2973 = vst.msk [vmem:[#allocation2 + $0x44] sm:$0xf] %vm2955_vm14, %v2894_v30 }
 0x26e   : > { %3317 = vst.msk [vmem:[#allocation2 + $0x60] sm:$0xf] %vm3292_vm15, %v3245_v12  ;;  %v4022_v12 = vld [vmem:[%s4253_s17 + $0x64] sm:$0xf] }
 0x26f   : > { %2957 = vst.msk [vmem:[#allocation2 + $0x4] sm:$0xf] %vm2955_vm14, %v2862_v42  ;;  %v3128_v20 = vrot.slane %v4022_v12, 5  ;;  %v2740_v42 = vshrl.u32 %v3988_v41, 16 }
 0x271   : > { %3254 = vrot.lane.b32.xlu1 %v3188_v43, %s4218_s25  ;;  %v3130_v26 = vrot.slane %v3128_v20, 4  ;;  %v3129_v40 = vsel %vm4439_vm6, %v4057_v34, %v3128_v20  ;;  %v2743_v43 = vshll.u32 %v3988_v41, 16  ;;  %v2742_v53 = vrot.slane %v2740_v42, 4 }
 0x272   : > { %3252 = vrot.lane.b32.xlu0 %v3185_v46, %s4218_s25  ;;  %3238 = vrot.lane.b32.xlu2 %v3160_v50, %s4218_s25 }
 0x273   : > { %v3231_v56 = vpop.permute.xlu1 %3230  ;;  %v3132_v30 = vsel %vm4439_vm6, %v3130_v26, %v3131_v27  ;;  %v2745_v54 = vrot.slane %v2743_v43, 5  ;;  %v4049_v27 = vld [vmem:[%s4253_s17 + $0xd0] sm:$0xf]  ;;  %v3964_v43 = vld [vmem:[%s4253_s17 + $0x3c] sm:$0xf] }
 0x274   : > { %3310 = vst.msk [vmem:[#allocation2 + $0x44] sm:$0xf] %vm3292_vm15, %v3231_v56  ;;  %v3229_v60 = vpop.permute.xlu0 %3228  ;;  %v3197_v63 = vpop.permute.xlu2 %3196  ;;  %v3191_v37 = vrot.slane %v4049_v27, 5  ;;  %v2548_v45 = vshrl.u32 %v3964_v43, 16 }
 0x275   : > { %3309 = vst.msk [vmem:[#allocation2 + $0x40] sm:$0xf] %vm3292_vm15, %v3229_v60  ;;  %v3953_v60 = vld [vmem:[%s4253_s17 + $0xcc] sm:$0xf] }
 0x279   : > { %2883 = vrot.lane.b32.xlu1 %v2632_v55, %s4217_s24  ;;  %v2746_v55 = vor.u32 %v2745_v54, %v2742_v53  ;;  %v3977_v53 = vld [vmem:[%s4253_s17 + $0x70] sm:$0xf]  ;;  %v3966_v54 = vld [vmem:[%s4253_s17 + $0x44] sm:$0x1] }
 0x27a   : > { %2869 = vrot.lane.b32.xlu0 %v2546_v2, %s4217_s24  ;;  %2867 = vrot.lane.b32.xlu2 %v2536_v5, %s4217_s24  ;;  %v2847_v2 = vrot.slane %v2845_v59, 5  ;;  %v2757_v5 = vrot.slane %v2756_v61, 4  ;;  %v4066_v59 = vrot.slane %v4048_v44, 9 }
 0x27b   : > { %v2860_v10 = vpop.permute.xlu1 %2859 }
 0x27c   : > { %2956 = vst.msk [vmem:[#allocation2] sm:$0xf] %vm2955_vm14, %v2860_v10  ;;  %v3247_v13 = vpop.permute.xlu0 %3246  ;;  %v4166_v14 = vld [vmem:[#allocation2 + $0x40] sm:$0xff]  ;;  %v3215_v17 = vpop.permute.xlu2 %3214  ;;  %v2747_v10 = vrot.slane %v2746_v55, 4  ;;  %v2762_v16 = vsel %vm4264_vm2, %v2757_v5, %v2761_v6  ;;  %v2653_v55 = vshll.u32 %v3977_v53, 16  ;;  %v3192_v5 = vsel %vm4439_vm6, %v4066_v59, %v3191_v37 }
 0x27d   : > { %3318 = vst.msk [vmem:[#allocation2 + $0x64] sm:$0xf] %vm3292_vm15, %v3247_v13  ;;  %4147 = vmatmul.msk.bf16.vlgmr.msra.gmra.mxu2 %vm3461_vm0, %v4166_v14  ;;  %v4002_v13 = vld [vmem:[%s4253_s17 + $0xd4] sm:$0x1]  ;;  %v2848_v14 = vsel %vm4264_vm2, %v2843_v0, %v2847_v2 }
 0x27e   : > { %3293 = vst.msk [vmem:[#allocation2] sm:$0xf] %vm3292_vm15, %v3197_v63  ;;  %v2849_v63 = vshrl.u32 %v4001_v47, 16  ;;  %v2855_v21 = vshll.u32 %v4002_v13, 16  ;;  %v3193_v47 = vrot.slane %v3191_v37, 4 }
 0x280   : > { %v2851_v11 = vrot.slane %v2849_v63, 4  ;;  %v2857_v34 = vrot.slane %v2855_v21, 5  ;;  %v3938_v63 = vld [vmem:[%s4253_s17 + $0x70] sm:$0xf]  ;;  %v4014_v21 = vld [vmem:[%s4253_s17 + $0x44] sm:$0x1] }
 0x281   : > { %3206 = vrot.lane.b32.xlu1 %v3104_v18, %s4218_s25  ;;  %v4036_v18 = vld [vmem:[%s4253_s17 + $0x9c] sm:$0xe] }
 0x282   : > { %3204 = vrot.lane.b32.xlu0 %v3101_v19, %s4218_s25  ;;  %2885 = vrot.lane.b32.xlu2 %v2642_v22, %s4217_s24  ;;  %v2752_v19 = vsel %vm4264_vm2, %v2747_v10, %v2751_v48  ;;  %v2852_v20 = vor.u32 %v2851_v11, %v2847_v2  ;;  %v3165_v22 = vrot.slane %v3163_v15, 4  ;;  %v4062_v26 = vrot.slane %v4036_v18, 9 }
 0x283   : > { %v2878_v24 = vpop.permute.xlu1 %2877  ;;  %v3194_v48 = vrot.slane %v4050_v39, 5 }
 0x284   : > { %2965 = vst.msk [vmem:[#allocation2 + $0x24] sm:$0xf] %vm2955_vm14, %v2878_v24  ;;  %v2876_v29 = vpop.permute.xlu0 %2875  ;;  %v4170_v31 = vld [vmem:[#allocation2 + $0x60] sm:$0xff]  ;;  %v2351_v36 = vpop.permute.xlu2 %2350  ;;  %v2853_v32 = vrot.slane %v2852_v20, 4  ;;  %v3164_v38 = vsel %vm4439_vm6, %v4062_v26, %v3163_v15 }
 0x285   : > { %2964 = vst.msk [vmem:[#allocation2 + $0x20] sm:$0xf] %vm2955_vm14, %v2876_v29  ;;  %4151 = vmatmul.msk.bf16.vlgmr.msra.gmra.mxu3 %vm3461_vm0, %v4170_v31  ;;  %v3965_v31 = vld [vmem:[%s4253_s17 + $0x40] sm:$0xf]  ;;  %v3195_v0 = vsel %vm4439_vm6, %v3193_v47, %v3194_v48 }
 0x286   : > { %3302 = vst.msk [vmem:[#allocation2 + $0x24] sm:$0xf] %vm3292_vm15, %v3215_v17  ;;  %v4038_v17 = vld [vmem:[%s4253_s17 + $0xa4] sm:$0x1]  ;;  %v2561_v41 = vshrl.u32 %v3965_v31, 16  ;;  %v2858_v42 = vsel %vm4264_vm2, %v2853_v32, %v2857_v34 }
 0x287   : > { %2421 = vst.msk [vmem:[#allocation2 + $0x68] sm:$0xf] %vm2394_vm12, %v2351_v36  ;;  %v3166_v23 = vrot.slane %v4038_v17, 5  ;;  %v3978_v17 = vld [vmem:[%s4253_s17 + $0x74] sm:$0x1] }
 0x288   : > { %v2663_v26 = vshll.u32 %v3978_v17, 16  ;;  %v4025_v34 = vld [vmem:[%s4253_s17 + $0x70] sm:$0xf] }
 0x289   : > { %2342 = vrot.lane.b32.xlu1 %v3945_v33, %s4216_s23  ;;  %v3167_v33 = vsel %vm4439_vm6, %v3165_v22, %v3166_v23  ;;  %v4012_v22 = vld [vmem:[%s4253_s17 + $0x3c] sm:$0xe] }
 0x28a   : > { %3222 = vrot.lane.b32.xlu0 %v3132_v30, %s4218_s25  ;;  %3220 = vrot.lane.b32.xlu2 %v3129_v40, %s4218_s25  ;;  %v2647_v30 = vshll.u32 %v3976_v28, 16  ;;  %v2557_v40 = vshll.u32 %v3965_v31, 16  ;;  %v3110_v28 = vrot.slane %v4014_v21, 5  ;;  %v4054_v32 = vrot.slane %v4012_v22, 9 }
 0x28b   : > { %v3213_v46 = vpop.permute.xlu1 %3212  ;;  %v2665_v35 = vrot.slane %v2663_v26, 5 }
 0x28c   : > { %3301 = vst.msk [vmem:[#allocation2 + $0x20] sm:$0xf] %vm3292_vm15, %v3213_v46  ;;  %v3199_v50 = vpop.permute.xlu0 %3198  ;;  %v2898_v56 = vpop.permute.xlu2 %2897  ;;  %v2551_v46 = vshll.u32 %v3964_v43, 16  ;;  %v4024_v43 = vld [vmem:[%s4253_s17 + $0x6c] sm:$0xe] }
 0x28d   : > { %3294 = vst.msk [vmem:[#allocation2 + $0x4] sm:$0xf] %vm3292_vm15, %v3199_v50  ;;  %v2649_v50 = vrot.slane %v2647_v30, 5  ;;  %v4058_v48 = vrot.slane %v4024_v43, 9 }
 0x28e   : > { %v2553_v61 = vrot.slane %v2551_v46, 5 }
 0x291   : > { %2360 = vrot.lane.b32.xlu1 %v3954_v57, %s4216_s23  ;;  %v2563_v57 = vrot.slane %v2561_v41, 4  ;;  %v4026_v41 = vld [vmem:[%s4253_s17 + $0x74] sm:$0x1] }
 0x292   : > { %2358 = vrot.lane.b32.xlu0 %v3953_v60, %s4216_s23  ;;  %2344 = vrot.lane.b32.xlu2 %v3946_v52, %s4216_s23  ;;  %v2550_v60 = vrot.slane %v2548_v45, 4  ;;  %v2650_v52 = vor.u32 %v2649_v50, %v2646_v49  ;;  %v3138_v46 = vrot.slane %v4026_v41, 5 }
 0x293   : > { %v2337_v3 = vpop.permute.xlu1 %2336  ;;  %v4162_v4 = vld [vmem:[#allocation2 + $0x20] sm:$0xff] }
 0x294   : > { %2414 = vst.msk [vmem:[#allocation2 + $0x4c] sm:$0xf] %vm2394_vm12, %v2337_v3  ;;  %v2335_v8 = vpop.permute.xlu0 %2334  ;;  %v4158_v9 = vld [vmem:[#allocation2] sm:$0xff]  ;;  %4143 = vmatmul.msk.bf16.vlgmr.msra.gmra.mxu1 %vm3461_vm0, %v4162_v4  ;;  %v3233_v12 = vpop.permute.xlu2 %3232  ;;  %v2567_v3 = vshll.u32 %v3966_v54, 16  ;;  %v2657_v4 = vshrl.u32 %v3977_v53, 16  ;;  %v2554_v6 = vor.u32 %v2553_v61, %v2550_v60  ;;  %v2651_v7 = vrot.slane %v2650_v52, 4 }
 0x295   : > { %2413 = vst.msk [vmem:[#allocation2 + $0x48] sm:$0xf] %vm2394_vm12, %v2335_v8  ;;  %4139 = vmatmul.msk.bf16.vlgmr.msra.gmra.mxu0 %vm3461_vm0, %v4158_v9  ;;  %v2655_v8 = vrot.slane %v2653_v55, 5 }
 0x296   : > { %2975 = vst.msk [vmem:[#allocation2 + $0x4c] sm:$0xf] %vm2955_vm14, %v2898_v56  ;;  %v2559_v56 = vrot.slane %v2557_v40, 5  ;;  %v2569_v11 = vrot.slane %v2567_v3, 5  ;;  %v2659_v15 = vrot.slane %v2657_v4, 4  ;;  %v3135_v40 = vrot.slane %v4025_v34, 5 }
 0x297   : > { %v2656_v18 = vsel %vm4264_vm2, %v2651_v7, %v2655_v8 }
 0x298   : > { %v2564_v2 = vor.u32 %v2563_v57, %v2559_v56  ;;  %v3137_v45 = vrot.slane %v3135_v40, 4  ;;  %v3136_v50 = vsel %vm4439_vm6, %v4058_v48, %v3135_v40 }
 0x299   : > { %2919 = vrot.lane.b32.xlu1 %v2848_v14, %s4217_s24  ;;  %v2555_v14 = vrot.slane %v2554_v6, 4 }
 0x29a   : > { %2905 = vrot.lane.b32.xlu0 %v2762_v16, %s4217_s24  ;;  %2903 = vrot.lane.b32.xlu2 %v2752_v19, %s4217_s24  ;;  %v2565_v10 = vrot.slane %v2564_v2, 4  ;;  %v3139_v25 = vsel %vm4439_vm6, %v3137_v45, %v3138_v46 }
 0x29b   : > { %v2896_v24 = vpop.permute.xlu1 %2895  ;;  %v2560_v23 = vsel %vm4264_vm2, %v2555_v14, %v2559_v56 }
 0x29c   : > { %2974 = vst.msk [vmem:[#allocation2 + $0x48] sm:$0xf] %vm2955_vm14, %v2896_v24  ;;  %v2353_v29 = vpop.permute.xlu0 %2352  ;;  %v3251_v36 = vpop.permute.xlu2 %3250  ;;  %v2570_v20 = vsel %vm4264_vm2, %v2565_v10, %v2569_v11  ;;  %v2660_v24 = vor.u32 %v2659_v15, %v2655_v8 }
 0x29d   : > { %2422 = vst.msk [vmem:[#allocation2 + $0x6c] sm:$0xf] %vm2394_vm12, %v2353_v29 }
 0x29e   : > { %3311 = vst.msk [vmem:[#allocation2 + $0x48] sm:$0xf] %vm3292_vm15, %v3233_v12  ;;  %v4013_v12 = vld [vmem:[%s4253_s17 + $0x40] sm:$0xf]  ;;  %v2661_v37 = vrot.slane %v2660_v24, 4 }
 0x29f   : > { %v3107_v19 = vrot.slane %v4013_v12, 5 }
 0x2a1   : > { %3242 = vrot.lane.b32.xlu1 %v3167_v33, %s4218_s25  ;;  %v3109_v27 = vrot.slane %v3107_v19, 4  ;;  %v3108_v39 = vsel %vm4439_vm6, %v4054_v32, %v3107_v19 }
 0x2a2   : > { %3240 = vrot.lane.b32.xlu0 %v3164_v38, %s4218_s25  ;;  %2921 = vrot.lane.b32.xlu2 %v2858_v42, %s4217_s24  ;;  %v2666_v42 = vsel %vm4264_vm2, %v2661_v37, %v2665_v35 }
 0x2a3   : > { %v2914_v51 = vpop.permute.xlu1 %2913  ;;  %v3111_v38 = vsel %vm4439_vm6, %v3109_v27, %v3110_v28 }
 0x2a4   : > { %2983 = vst.msk [vmem:[#allocation2 + $0x6c] sm:$0xf] %vm2955_vm14, %v2914_v51  ;;  %v2912_v58 = vpop.permute.xlu0 %2911  ;;  %v2880_v62 = vpop.permute.xlu2 %2879 }
 0x2a5   : > { %2982 = vst.msk [vmem:[#allocation2 + $0x68] sm:$0xf] %vm2955_vm14, %v2912_v58 }
 0x2a6   : > { %3320 = vst.msk [vmem:[#allocation2 + $0x6c] sm:$0xf] %vm3292_vm15, %v3251_v36 }
 0x2a7   : > { %2966 = vst.msk [vmem:[#allocation2 + $0x28] sm:$0xf] %vm2955_vm14, %v2880_v62 }
 0x2a9   : > { %2328 = vrot.lane.b32.xlu1 %v3938_v63, %s4216_s23 }
 0x2aa   : > { %3258 = vrot.lane.b32.xlu0 %v3195_v0, %s4218_s25  ;;  %3256 = vrot.lane.b32.xlu2 %v3192_v5, %s4218_s25 }
 0x2ab   : > { %v3249_v9 = vpop.permute.xlu1 %3248 }
 0x2ac   : > { %3319 = vst.msk [vmem:[#allocation2 + $0x68] sm:$0xf] %vm3292_vm15, %v3249_v9  ;;  %v3235_v13 = vpop.permute.xlu0 %3234  ;;  %v3203_v16 = vpop.permute.xlu2 %3202 }
 0x2ad   : > { %3312 = vst.msk [vmem:[#allocation2 + $0x4c] sm:$0xf] %vm3292_vm15, %v3235_v13 }
 0x2b1   : > { %2887 = vrot.lane.b32.xlu1 %v2656_v18, %s4217_s24 }
 0x2b2   : > { %2873 = vrot.lane.b32.xlu0 %v2570_v20, %s4217_s24  ;;  %2871 = vrot.lane.b32.xlu2 %v2560_v23, %s4217_s24 }
 0x2b3   : > { %v2866_v29 = vpop.permute.xlu1 %2865  ;;  %v4171_v31 = vld [vmem:[#allocation2 + $0x68] sm:$0xff] }
 0x2b4   : > { %2959 = vst.msk [vmem:[#allocation2 + $0xc] sm:$0xf] %vm2955_vm14, %v2866_v29  ;;  %v2864_v36 = vpop.permute.xlu0 %2863  ;;  %v4167_v33 = vld [vmem:[#allocation2 + $0x48] sm:$0xff]  ;;  %4152 = vmatmul.msk.bf16.gmra.mxu3 %vm3461_vm0, %v4171_v31  ;;  %v2339_v30 = vpop.permute.xlu2 %2338 }
 0x2b5   : > { %2958 = vst.msk [vmem:[#allocation2 + $0x8] sm:$0xf] %vm2955_vm14, %v2864_v36  ;;  %4148 = vmatmul.msk.bf16.gmra.mxu2 %vm3461_vm0, %v4167_v33 }
 0x2b6   : > { %3296 = vst.msk [vmem:[#allocation2 + $0xc] sm:$0xf] %vm3292_vm15, %v3203_v16  ;;  %v5653_v16 = vld [vmem:[%s5786_s2] ss:$0 sm:$0xff] }
 0x2b7   : > { %2415 = vst.msk [vmem:[#allocation2 + $0x50] sm:$0xf] %vm2394_vm12, %v2339_v30 }
 0x2b9   : > { %3210 = vrot.lane.b32.xlu1 %v3111_v38, %s4218_s25 }
 0x2ba   : > { %3208 = vrot.lane.b32.xlu0 %v3108_v39, %s4218_s25  ;;  %2889 = vrot.lane.b32.xlu2 %v2666_v42, %s4217_s24 }
 0x2bb   : > { %v3201_v44 = vpop.permute.xlu1 %3200 }
 0x2bc   : > { %3295 = vst.msk [vmem:[#allocation2 + $0x8] sm:$0xf] %vm3292_vm15, %v3201_v44  ;;  %v2882_v47 = vpop.permute.xlu0 %2881  ;;  %v2357_v49 = vpop.permute.xlu2 %2356 }
 0x2bd   : > { %2967 = vst.msk [vmem:[#allocation2 + $0x2c] sm:$0xf] %vm2955_vm14, %v2882_v47 }
 0x2be   : > { %2424 = vst.msk [vmem:[#allocation2 + $0x74] sm:$0xf] %vm2394_vm12, %v2357_v49 }
 0x2c2   : > { %3226 = vrot.lane.b32.xlu0 %v3139_v25, %s4218_s25  ;;  %3224 = vrot.lane.b32.xlu2 %v3136_v50, %s4218_s25 }
 0x2c3   : > { %v3219_v51 = vpop.permute.xlu1 %3218  ;;  %v4159_v53 = vld [vmem:[#allocation2 + $0x8] sm:$0xff] }
 0x2c4   : > { %3304 = vst.msk [vmem:[#allocation2 + $0x2c] sm:$0xf] %vm3292_vm15, %v3219_v51  ;;  %v3217_v54 = vpop.permute.xlu0 %3216  ;;  %4140 = vmatmul.msk.bf16.gmra.mxu0 %vm3461_vm0, %v4159_v53  ;;  %v2916_v56 = vpop.permute.xlu2 %2915 }
 0x2c5   : > { %3303 = vst.msk [vmem:[#allocation2 + $0x28] sm:$0xf] %vm3292_vm15, %v3217_v54 }
 0x2cb   : > { %v2355_v57 = vpop.permute.xlu1 %2354 }
 0x2cc   : > { %2423 = vst.msk [vmem:[#allocation2 + $0x70] sm:$0xf] %vm2394_vm12, %v2355_v57  ;;  %v2341_v58 = vpop.permute.xlu0 %2340  ;;  %v4163_v1 = vld [vmem:[#allocation2 + $0x28] sm:$0xff]  ;;  %v3239_v59 = vpop.permute.xlu2 %3238 }
 0x2cd   : > { %2416 = vst.msk [vmem:[#allocation2 + $0x54] sm:$0xf] %vm2394_vm12, %v2341_v58  ;;  %4144 = vmatmul.msk.bf16.gmra.mxu1 %vm3461_vm0, %v4163_v1 }
 0x2ce   : > { %2984 = vst.msk [vmem:[#allocation2 + $0x70] sm:$0xf] %vm2955_vm14, %v2916_v56 }
 0x2d3   : > { %v2902_v60 = vpop.permute.xlu1 %2901 }
 0x2d4   : > { %2977 = vst.msk [vmem:[#allocation2 + $0x54] sm:$0xf] %vm2955_vm14, %v2902_v60  ;;  %v2900_v61 = vpop.permute.xlu0 %2899  ;;  %v2868_v62 = vpop.permute.xlu2 %2867 }
 0x2d5   : > { %2976 = vst.msk [vmem:[#allocation2 + $0x50] sm:$0xf] %vm2955_vm14, %v2900_v61 }
 0x2d6   : > { %3314 = vst.msk [vmem:[#allocation2 + $0x54] sm:$0xf] %vm3292_vm15, %v3239_v59 }
 0x2d7   : > { %2960 = vst.msk [vmem:[#allocation2 + $0x10] sm:$0xf] %vm2955_vm14, %v2868_v62 }
 0x2db   : > { %v3237_v63 = vpop.permute.xlu1 %3236 }
 0x2dc   : > { %3313 = vst.msk [vmem:[#allocation2 + $0x50] sm:$0xf] %vm3292_vm15, %v3237_v63  ;;  %v2918_v52 = vpop.permute.xlu0 %2917  ;;  %v2886_v55 = vpop.permute.xlu2 %2885 }
 0x2dd   : > { %2985 = vst.msk [vmem:[#allocation2 + $0x74] sm:$0xf] %vm2955_vm14, %v2918_v52 }
 0x2de   : > { %2969 = vst.msk [vmem:[#allocation2 + $0x34] sm:$0xf] %vm2955_vm14, %v2886_v55 }
 0x2e3   : > { %v3255_v0 = vpop.permute.xlu1 %3254  ;;  %v4168_v2 = vld [vmem:[#allocation2 + $0x50] sm:$0xff] }
 0x2e4   : > { %3322 = vst.msk [vmem:[#allocation2 + $0x74] sm:$0xf] %vm3292_vm15, %v3255_v0  ;;  %v3253_v3 = vpop.permute.xlu0 %3252  ;;  %4149 = vmatmul.msk.bf16.gmra.mxu2 %vm3461_vm0, %v4168_v2  ;;  %v3221_v4 = vpop.permute.xlu2 %3220 }
 0x2e5   : > { %3321 = vst.msk [vmem:[#allocation2 + $0x70] sm:$0xf] %vm3292_vm15, %v3253_v3 }
 0x2eb   : > { %v2884_v5 = vpop.permute.xlu1 %2883 }
 0x2ec   : > { %2968 = vst.msk [vmem:[#allocation2 + $0x30] sm:$0xf] %vm2955_vm14, %v2884_v5  ;;  %v2870_v6 = vpop.permute.xlu0 %2869  ;;  %v4172_v7 = vld [vmem:[#allocation2 + $0x70] sm:$0xff]  ;;  %v2345_v8 = vpop.permute.xlu2 %2344 }
 0x2ed   : > { %2961 = vst.msk [vmem:[#allocation2 + $0x14] sm:$0xf] %vm2955_vm14, %v2870_v6  ;;  %4153 = vmatmul.msk.bf16.gmra.mxu3 %vm3461_vm0, %v4172_v7 }
 0x2ee   : > { %3305 = vst.msk [vmem:[#allocation2 + $0x30] sm:$0xf] %vm3292_vm15, %v3221_v4 }
 0x2ef   : > { %2418 = vst.msk [vmem:[#allocation2 + $0x5c] sm:$0xf] %vm2394_vm12, %v2345_v8 }
 0x2f3   : > { %v3207_v9 = vpop.permute.xlu1 %3206 }
 0x2f4   : > { %3298 = vst.msk [vmem:[#allocation2 + $0x14] sm:$0xf] %vm3292_vm15, %v3207_v9  ;;  %v3205_v10 = vpop.permute.xlu0 %3204  ;;  %v2904_v11 = vpop.permute.xlu2 %2903 }
 0x2f5   : > { %3297 = vst.msk [vmem:[#allocation2 + $0x10] sm:$0xf] %vm3292_vm15, %v3205_v10 }
 0x2fb   : > { %v2343_v12 = vpop.permute.xlu1 %2342 }
 0x2fc   : > { %2417 = vst.msk [vmem:[#allocation2 + $0x58] sm:$0xf] %vm2394_vm12, %v2343_v12  ;;  %v3223_v13 = vpop.permute.xlu0 %3222  ;;  %v4160_v14 = vld [vmem:[#allocation2 + $0x10] sm:$0xff]  ;;  %v2922_v15 = vpop.permute.xlu2 %2921 }
 0x2fd   : > { %3306 = vst.msk [vmem:[#allocation2 + $0x34] sm:$0xf] %vm3292_vm15, %v3223_v13  ;;  %4141 = vmatmul.msk.bf16.gmra.mxu0 %vm3461_vm0, %v4160_v14 }
 0x2fe   : > { %2978 = vst.msk [vmem:[#allocation2 + $0x58] sm:$0xf] %vm2955_vm14, %v2904_v11 }
 0x300   : > { %v3563_v17 = vpop.f32.mrf.mxu2 }
 0x301   : > { %v3564_v18 = vadd.f32 %v5653_v16, %v3563_v17 }
 0x303   : > { %v2361_v19 = vpop.permute.xlu1 %2360  ;;  %v3619_v20 = vmax.f32 %v3564_v18, 0.0 }
 0x304   : > { %2426 = vst.msk [vmem:[#allocation2 + $0x7c] sm:$0xf] %vm2394_vm12, %v2361_v19  ;;  %v2359_v21 = vpop.permute.xlu0 %2358  ;;  %v4164_v22 = vld [vmem:[#allocation2 + $0x30] sm:$0xff]  ;;  %v3257_v23 = vpop.permute.xlu2 %3256 }
 0x305   : > { %2425 = vst.msk [vmem:[#allocation2 + $0x78] sm:$0xf] %vm2394_vm12, %v2359_v21  ;;  %v3651_v24 = vpack.c.bf16 %v3619_v20, %v3619_v20  ;;  %4145 = vmatmul.msk.bf16.gmra.mxu1 %vm3461_vm0, %v4164_v22 }
 0x306   : > { %2987 = vst.msk [vmem:[#allocation2 + $0x7c] sm:$0xf] %vm2955_vm14, %v2922_v15 }
 0x307   : > { %3684 = vst.msk [vmem:[%s5662_s10 + $0x40] sm:$0xf] %vm3667_vm1, %v3651_v24 }
 0x308   : > { %v3565_v26 = vpop.f32.mrf.mxu2  ;;  %v3583_v27 = vpop.f32.mrf.mxu3 }
 0x309   : > { %v3566_v28 = vadd.f32 %v5653_v16, %v3565_v26  ;;  %v3584_v29 = vadd.f32 %v5653_v16, %v3583_v27 }
 0x30b   : > { %v2920_v31 = vpop.permute.xlu1 %2919  ;;  %v3620_v32 = vmax.f32 %v3566_v28, 0.0  ;;  %v3627_v34 = vmax.f32 %v3584_v29, 0.0 }
 0x30c   : > { %2986 = vst.msk [vmem:[#allocation2 + $0x78] sm:$0xf] %vm2955_vm14, %v2920_v31  ;;  %v2906_v36 = vpop.permute.xlu0 %2905  ;;  %v2872_v33 = vpop.permute.xlu2 %2871 }
 0x30d   : > { %2979 = vst.msk [vmem:[#allocation2 + $0x5c] sm:$0xf] %vm2955_vm14, %v2906_v36  ;;  %v3652_v37 = vpack.c.bf16 %v3620_v32, %v3620_v32  ;;  %v3659_v35 = vpack.c.bf16 %v3627_v34, %v3627_v34 }
 0x30e   : > { %3323 = vst.msk [vmem:[#allocation2 + $0x78] sm:$0xf] %vm3292_vm15, %v3257_v23 }
 0x30f   : > { %2962 = vst.msk [vmem:[#allocation2 + $0x18] sm:$0xf] %vm2955_vm14, %v2872_v33 }
 0x310   : > { %3685 = vst.msk [vmem:[%s5662_s10 + $0x44] sm:$0xf] %vm3667_vm1, %v3652_v37  ;;  %v3585_v30 = vpop.f32.mrf.mxu3 }
 0x311   : > { %3692 = vst.msk [vmem:[%s5662_s10 + $0x60] sm:$0xf] %vm3667_vm1, %v3659_v35  ;;  %v3586_v38 = vadd.f32 %v5653_v16, %v3585_v30  ;;  %v3543_v39 = vpop.f32.mrf.mxu1 }
 0x312   : > { %v3523_v41 = vpop.f32.mrf.mxu0  ;;  %v3544_v42 = vadd.f32 %v5653_v16, %v3543_v39 }
 0x313   : > { %v3243_v40 = vpop.permute.xlu1 %3242  ;;  %v3628_v43 = vmax.f32 %v3586_v38, 0.0  ;;  %v3524_v45 = vadd.f32 %v5653_v16, %v3523_v41 }
 0x314   : > { %3316 = vst.msk [vmem:[#allocation2 + $0x5c] sm:$0xf] %vm3292_vm15, %v3243_v40  ;;  %v3241_v44 = vpop.permute.xlu0 %3240  ;;  %v3611_v46 = vmax.f32 %v3544_v42, 0.0  ;;  %v2890_v50 = vpop.permute.xlu2 %2889 }
 0x315   : > { %3315 = vst.msk [vmem:[#allocation2 + $0x58] sm:$0xf] %vm3292_vm15, %v3241_v44  ;;  %v3660_v47 = vpack.c.bf16 %v3628_v43, %v3628_v43  ;;  %v3603_v48 = vmax.f32 %v3524_v45, 0.0 }
 0x316   : > { %v3643_v49 = vpack.c.bf16 %v3611_v46, %v3611_v46 }
 0x317   : > { %3693 = vst.msk [vmem:[%s5662_s10 + $0x64] sm:$0xf] %vm3667_vm1, %v3660_v47  ;;  %v3635_v25 = vpack.c.bf16 %v3603_v48, %v3603_v48 }
 0x318   : > { %3676 = vst.msk [vmem:[%s5662_s10 + $0x20] sm:$0xf] %vm3667_vm1, %v3643_v49 }
 0x319   : > { %3668 = vst.msk [vmem:[%s5662_s10] sm:$0xf] %vm3667_vm1, %v3635_v25  ;;  %v3545_v51 = vpop.f32.mrf.mxu1 }
 0x31a   : > { %v3525_v54 = vpop.f32.mrf.mxu0  ;;  %v3546_v56 = vadd.f32 %v5653_v16, %v3545_v51 }
 0x31b   : > { %v2329_v53 = vpop.permute.xlu1 %2328  ;;  %v3526_v58 = vadd.f32 %v5653_v16, %v3525_v54 }
 0x31c   : > { %2410 = vst.msk [vmem:[#allocation2 + $0x3c] sm:$0xf] %vm2394_vm12, %v2329_v53  ;;  %v3259_v57 = vpop.permute.xlu0 %3258  ;;  %v4169_v1 = vld [vmem:[#allocation2 + $0x58] sm:$0xff]  ;;  %v3612_v59 = vmax.f32 %v3546_v56, 0.0  ;;  %v3225_v52 = vpop.permute.xlu2 %3224 }
 0x31d   : > { %3324 = vst.msk [vmem:[#allocation2 + $0x7c] sm:$0xf] %vm3292_vm15, %v3259_v57  ;;  %v3604_v60 = vmax.f32 %v3526_v58, 0.0  ;;  %4150 = vmatmul.msk.bf16.gmra.mxu2 %vm3461_vm0, %v4169_v1 }
 0x31e   : > { %2971 = vst.msk [vmem:[#allocation2 + $0x3c] sm:$0xf] %vm2955_vm14, %v2890_v50  ;;  %v3644_v61 = vpack.c.bf16 %v3612_v59, %v3612_v59 }
 0x31f   : > { %v3636_v62 = vpack.c.bf16 %v3604_v60, %v3604_v60 }
 0x320   : > { %3677 = vst.msk [vmem:[%s5662_s10 + $0x24] sm:$0xf] %vm3667_vm1, %v3644_v61 }
 0x321   : > { %3669 = vst.msk [vmem:[%s5662_s10 + $0x4] sm:$0xf] %vm3667_vm1, %v3636_v62 }
 0x323   : > { %v2888_v63 = vpop.permute.xlu1 %2887 }
 0x324   : > { %2970 = vst.msk [vmem:[#allocation2 + $0x38] sm:$0xf] %vm2955_vm14, %v2888_v63  ;;  %v2874_v55 = vpop.permute.xlu0 %2873  ;;  %v4173_v0 = vld [vmem:[#allocation2 + $0x78] sm:$0xff] }
 0x325   : > { %2963 = vst.msk [vmem:[#allocation2 + $0x1c] sm:$0xf] %vm2955_vm14, %v2874_v55  ;;  %4154 = vmatmul.msk.bf16.gmra.mxu3 %vm3461_vm0, %v4173_v0 }
 0x326   : > { %3307 = vst.msk [vmem:[#allocation2 + $0x38] sm:$0xf] %vm3292_vm15, %v3225_v52 }
 0x32b   : > { %v3211_v2 = vpop.permute.xlu1 %3210 }
 0x32c   : > { %3300 = vst.msk [vmem:[#allocation2 + $0x1c] sm:$0xf] %vm3292_vm15, %v3211_v2  ;;  %v3209_v3 = vpop.permute.xlu0 %3208 }
 0x32d   : > { %3299 = vst.msk [vmem:[#allocation2 + $0x18] sm:$0xf] %vm3292_vm15, %v3209_v3 }
 0x334   : > { %v3227_v4 = vpop.permute.xlu0 %3226  ;;  %v4161_v5 = vld [vmem:[#allocation2 + $0x18] sm:$0xff] }
 0x335   : > { %3308 = vst.msk [vmem:[#allocation2 + $0x3c] sm:$0xf] %vm3292_vm15, %v3227_v4  ;;  %4142 = vmatmul.msk.bf16.gmra.mxu0 %vm3461_vm0, %v4161_v5 }
 0x337   : > { %v3588_v6 = vpop.f32.mrf.mxu3 }
 0x338   : > { %v3568_v7 = vpop.f32.mrf.mxu2  ;;  %v3589_v8 = vadd.f32 %v5653_v16, %v3588_v6 }
 0x339   : > { %v3569_v9 = vadd.f32 %v5653_v16, %v3568_v7 }
 0x33a   : > { %v3629_v10 = vmax.f32 %v3589_v8, 0.0 }
 0x33b   : > { %v3621_v11 = vmax.f32 %v3569_v9, 0.0 }
 0x33c   : > { %v4165_v12 = vld [vmem:[#allocation2 + $0x38] sm:$0xff]  ;;  %v3661_v13 = vpack.c.bf16 %v3629_v10, %v3629_v10 }
 0x33d   : > { %v3653_v14 = vpack.c.bf16 %v3621_v11, %v3621_v11  ;;  %4146 = vmatmul.msk.bf16.gmra.mxu1 %vm3461_vm0, %v4165_v12 }
 0x33e   : > { %3694 = vst.msk [vmem:[%s5662_s10 + $0x68] sm:$0xf] %vm3667_vm1, %v3661_v13 }
 0x33f   : > { %3686 = vst.msk [vmem:[%s5662_s10 + $0x48] sm:$0xf] %vm3667_vm1, %v3653_v14  ;;  %v3590_v15 = vpop.f32.mrf.mxu3 }
 0x340   : > { %v3570_v17 = vpop.f32.mrf.mxu2  ;;  %v3591_v18 = vadd.f32 %v5653_v16, %v3590_v15 }
 0x341   : > { %v3571_v19 = vadd.f32 %v5653_v16, %v3570_v17  ;;  %v3528_v20 = vpop.f32.mrf.mxu0 }
 0x342   : > { %v3630_v21 = vmax.f32 %v3591_v18, 0.0  ;;  %v3529_v22 = vadd.f32 %v5653_v16, %v3528_v20 }
 0x343   : > { %v3622_v23 = vmax.f32 %v3571_v19, 0.0 }
 0x344   : > { %v3662_v24 = vpack.c.bf16 %v3630_v21, %v3630_v21  ;;  %v3605_v26 = vmax.f32 %v3529_v22, 0.0 }
 0x345   : > { %v3654_v27 = vpack.c.bf16 %v3622_v23, %v3622_v23 }
 0x346   : > { %3695 = vst.msk [vmem:[%s5662_s10 + $0x6c] sm:$0xf] %vm3667_vm1, %v3662_v24  ;;  %v3637_v28 = vpack.c.bf16 %v3605_v26, %v3605_v26 }
 0x347   : > { %3687 = vst.msk [vmem:[%s5662_s10 + $0x4c] sm:$0xf] %vm3667_vm1, %v3654_v27 }
 0x348   : > { %3670 = vst.msk [vmem:[%s5662_s10 + $0x8] sm:$0xf] %vm3667_vm1, %v3637_v28 }
 0x349   : > { %v3530_v29 = vpop.f32.mrf.mxu0 }
 0x34a   : > { %v3531_v31 = vadd.f32 %v5653_v16, %v3530_v29  ;;  %v3548_v32 = vpop.f32.mrf.mxu1 }
 0x34b   : > { %v3549_v34 = vadd.f32 %v5653_v16, %v3548_v32 }
 0x34c   : > { %v3606_v36 = vmax.f32 %v3531_v31, 0.0 }
 0x34d   : > { %v3613_v33 = vmax.f32 %v3549_v34, 0.0 }
 0x34e   : > { %v3638_v37 = vpack.c.bf16 %v3606_v36, %v3606_v36 }
 0x34f   : > { %v3645_v35 = vpack.c.bf16 %v3613_v33, %v3613_v33 }
 0x350   : > { %3671 = vst.msk [vmem:[%s5662_s10 + $0xc] sm:$0xf] %vm3667_vm1, %v3638_v37 }
 0x351   : > { %3678 = vst.msk [vmem:[%s5662_s10 + $0x28] sm:$0xf] %vm3667_vm1, %v3645_v35 }
 0x352   : > { %v3550_v30 = vpop.f32.mrf.mxu1 }
 0x353   : > { %v3551_v38 = vadd.f32 %v5653_v16, %v3550_v30 }
 0x355   : > { %v3614_v39 = vmax.f32 %v3551_v38, 0.0 }
 0x357   : > { %v3646_v40 = vpack.c.bf16 %v3614_v39, %v3614_v39 }
 0x359   : > { %3679 = vst.msk [vmem:[%s5662_s10 + $0x2c] sm:$0xf] %vm3667_vm1, %v3646_v40 }
 0x367   : > { %v3573_v41 = vpop.f32.mrf.mxu2 }
 0x368   : > { %v3574_v42 = vadd.f32 %v5653_v16, %v3573_v41 }
 0x36a   : > { %v3623_v43 = vmax.f32 %v3574_v42, 0.0 }
 0x36c   : > { %v3655_v44 = vpack.c.bf16 %v3623_v43, %v3623_v43 }
 0x36e   : > { %3688 = vst.msk [vmem:[%s5662_s10 + $0x50] sm:$0xf] %vm3667_vm1, %v3655_v44 }
 0x36f   : > { %v3575_v45 = vpop.f32.mrf.mxu2 }
 0x370   : > { %v3576_v46 = vadd.f32 %v5653_v16, %v3575_v45  ;;  %v3593_v47 = vpop.f32.mrf.mxu3 }
 0x371   : > { %v3594_v48 = vadd.f32 %v5653_v16, %v3593_v47 }
 0x372   : > { %v3624_v49 = vmax.f32 %v3576_v46, 0.0 }
 0x373   : > { %v3631_v25 = vmax.f32 %v3594_v48, 0.0 }
 0x374   : > { %v3656_v50 = vpack.c.bf16 %v3624_v49, %v3624_v49 }
 0x375   : > { %v3663_v51 = vpack.c.bf16 %v3631_v25, %v3631_v25 }
 0x376   : > { %3689 = vst.msk [vmem:[%s5662_s10 + $0x54] sm:$0xf] %vm3667_vm1, %v3656_v50 }
 0x377   : > { %3696 = vst.msk [vmem:[%s5662_s10 + $0x70] sm:$0xf] %vm3667_vm1, %v3663_v51 }
 0x378   : > { %v3595_v53 = vpop.f32.mrf.mxu3 }
 0x379   : > { %v3596_v54 = vadd.f32 %v5653_v16, %v3595_v53 }
 0x37a   : > { %v3533_v56 = vpop.f32.mrf.mxu0 }
 0x37b   : > { %v3632_v57 = vmax.f32 %v3596_v54, 0.0  ;;  %v3534_v58 = vadd.f32 %v5653_v16, %v3533_v56 }
 0x37d   : > { %v3664_v1 = vpack.c.bf16 %v3632_v57, %v3632_v57  ;;  %v3607_v59 = vmax.f32 %v3534_v58, 0.0 }
 0x37f   : > { %3697 = vst.msk [vmem:[%s5662_s10 + $0x74] sm:$0xf] %vm3667_vm1, %v3664_v1  ;;  %v3639_v60 = vpack.c.bf16 %v3607_v59, %v3607_v59 }
 0x381   : > { %3672 = vst.msk [vmem:[%s5662_s10 + $0x10] sm:$0xf] %vm3667_vm1, %v3639_v60 }
 0x382   : > { %v3535_v61 = vpop.f32.mrf.mxu0  ;;  %v3553_v62 = vpop.f32.mrf.mxu1 }
 0x383   : > { %v3536_v63 = vadd.f32 %v5653_v16, %v3535_v61  ;;  %v3554_v52 = vadd.f32 %v5653_v16, %v3553_v62 }
 0x385   : > { %v3608_v55 = vmax.f32 %v3536_v63, 0.0  ;;  %v3615_v0 = vmax.f32 %v3554_v52, 0.0 }
 0x387   : > { %v3640_v2 = vpack.c.bf16 %v3608_v55, %v3608_v55  ;;  %v3647_v3 = vpack.c.bf16 %v3615_v0, %v3615_v0 }
 0x389   : > { %3673 = vst.msk [vmem:[%s5662_s10 + $0x14] sm:$0xf] %vm3667_vm1, %v3640_v2 }
 0x38a   : > { %3680 = vst.msk [vmem:[%s5662_s10 + $0x30] sm:$0xf] %vm3667_vm1, %v3647_v3  ;;  %v3555_v4 = vpop.f32.mrf.mxu1 }
 0x38b   : > { %v3556_v5 = vadd.f32 %v5653_v16, %v3555_v4 }
 0x38d   : > { %v3616_v6 = vmax.f32 %v3556_v5, 0.0 }
 0x38f   : > { %v3648_v7 = vpack.c.bf16 %v3616_v6, %v3616_v6 }
 0x391   : > { %3681 = vst.msk [vmem:[%s5662_s10 + $0x34] sm:$0xf] %vm3667_vm1, %v3648_v7 }
 0x3a0   : > { %v3578_v8 = vpop.f32.mrf.mxu2 }
 0x3a1   : > { %v3579_v9 = vadd.f32 %v5653_v16, %v3578_v8 }
 0x3a3   : > { %v3625_v10 = vmax.f32 %v3579_v9, 0.0 }
 0x3a5   : > { %v3657_v11 = vpack.c.bf16 %v3625_v10, %v3625_v10 }
 0x3a7   : > { %3690 = vst.msk [vmem:[%s5662_s10 + $0x58] sm:$0xf] %vm3667_vm1, %v3657_v11 }
 0x3a8   : > { %v3580_v12 = vpop.f32.mrf.mxu2  ;;  %v3598_v13 = vpop.f32.mrf.mxu3 }
 0x3a9   : > { %v3581_v14 = vadd.f32 %v5653_v16, %v3580_v12  ;;  %v3599_v15 = vadd.f32 %v5653_v16, %v3598_v13 }
 0x3ab   : > { %v3626_v17 = vmax.f32 %v3581_v14, 0.0  ;;  %v3633_v18 = vmax.f32 %v3599_v15, 0.0 }
 0x3ad   : > { %v3658_v19 = vpack.c.bf16 %v3626_v17, %v3626_v17  ;;  %v3665_v20 = vpack.c.bf16 %v3633_v18, %v3633_v18 }
 0x3af   : > { %3691 = vst.msk [vmem:[%s5662_s10 + $0x5c] sm:$0xf] %vm3667_vm1, %v3658_v19 }
 0x3b0   : > { %3698 = vst.msk [vmem:[%s5662_s10 + $0x78] sm:$0xf] %vm3667_vm1, %v3665_v20  ;;  %v3600_v21 = vpop.f32.mrf.mxu3 }
 0x3b1   : > { %v3601_v22 = vadd.f32 %v5653_v16, %v3600_v21 }
 0x3b2   : > { %v3538_v23 = vpop.f32.mrf.mxu0 }
 0x3b3   : > { %v3634_v24 = vmax.f32 %v3601_v22, 0.0  ;;  %v3539_v26 = vadd.f32 %v5653_v16, %v3538_v23 }
 0x3b5   : > { %v3666_v27 = vpack.c.bf16 %v3634_v24, %v3634_v24  ;;  %v3609_v28 = vmax.f32 %v3539_v26, 0.0 }
 0x3b7   : > { %3699 = vst.msk [vmem:[%s5662_s10 + $0x7c] sm:$0xf] %vm3667_vm1, %v3666_v27  ;;  %v3641_v29 = vpack.c.bf16 %v3609_v28, %v3609_v28 }
 0x3b9   : > { %3674 = vst.msk [vmem:[%s5662_s10 + $0x18] sm:$0xf] %vm3667_vm1, %v3641_v29 }
 0x3ba   : > { %v3540_v31 = vpop.f32.mrf.mxu0  ;;  %v3558_v32 = vpop.f32.mrf.mxu1 }
 0x3bb   : > { %v3541_v34 = vadd.f32 %v5653_v16, %v3540_v31  ;;  %v3559_v36 = vadd.f32 %v5653_v16, %v3558_v32 }
 0x3bd   : > { %v3610_v33 = vmax.f32 %v3541_v34, 0.0  ;;  %v3617_v37 = vmax.f32 %v3559_v36, 0.0 }
 0x3bf   : > { %v3642_v35 = vpack.c.bf16 %v3610_v33, %v3610_v33  ;;  %v3649_v30 = vpack.c.bf16 %v3617_v37, %v3617_v37 }
 0x3c1   : > { %3675 = vst.msk [vmem:[%s5662_s10 + $0x1c] sm:$0xf] %vm3667_vm1, %v3642_v35 }
 0x3c2   : > { %3682 = vst.msk [vmem:[%s5662_s10 + $0x38] sm:$0xf] %vm3667_vm1, %v3649_v30  ;;  %v3560_v38 = vpop.f32.mrf.mxu1 }
 0x3c3   : > { %v3561_v39 = vadd.f32 %v5653_v16, %v3560_v38 }
 0x3c5   : > { %v3618_v40 = vmax.f32 %v3561_v39, 0.0 }
 0x3c7   : > { %v3650_v41 = vpack.c.bf16 %v3618_v40, %v3618_v40 }
 0x3c9   : > { %3683 = vst.msk [vmem:[%s5662_s10 + $0x3c] sm:$0xf] %vm3667_vm1, %v3650_v41 }
 0x3ca PF: > { %s13_s12 = sadd.s32 1, %s4209_s12  }
 0x3cb   : > { %p10_p4 = scmp.ge.s32.totalorder %s13_s12, 4  }
 0x3cd   :  { %12 = sbr.rel (!%p10_p4) target bundleno = 1 (0x1), region = 64 }

</bundles_post_ra>
